<compile_context>
chip_gen: v7x
topology: tpu7x:2x2x1
jax: 0.10.0
libtpu: 0.0.40
codegen_flags: <defaults>
</compile_context>

<pallas_src>
import math

import numpy as np
import jax
import jax.numpy as jnp
from jax.experimental import pallas as pl
from jax.experimental.pallas import tpu as pltpu  # noqa: F401  (gridless, no compiler params needed at this size)

# ----------------------------- LRN constants (PyTorch defaults) ----------------
LRN_SIZE = 5
LRN_ALPHA = 1e-4
LRN_BETA = 0.75
LRN_K = 1.0


# ------------------------------- Pallas kernel ----------------------------------
def _make_dcfnet_kernel(n_img, fpad, blk, lambda0):
    """One fused kernel: conv1+ReLU -> conv2 -> LRN -> rfft2 -> DCF -> irfft2."""
    zf_w = n_img * fpad                       # lane width of the z half of the spectrum

    def kernel(xcol_ref, w1_ref, b1_ref, w2_ref, b2_ref, band_ref,
               d2r_ref, d2i_ref, yfr_ref, yfi_ref, er_ref, ei_ref, o_ref):
        # ---- conv1 + ReLU on the tap-expanded im2col --------------------------------
        # y1[c, (tap2, b, m)] = relu(W1[c,:] @ Xcol[:, (tap2, b, m)] + b1[c])
        y1 = jnp.dot(w1_ref[...], xcol_ref[...], preferred_element_type=jnp.float32)
        y1 = jnp.maximum(y1 + b1_ref[...], 0.0)                     # [32, 9*blk]

        # ---- conv2: 9 taps, each a [32,32] @ [32,blk] dot on a vreg-aligned slab -----
        acc = jnp.dot(w2_ref[0], y1[:, 0:blk], preferred_element_type=jnp.float32)
        for t in range(1, 9):
            acc = acc + jnp.dot(w2_ref[t], y1[:, t * blk:(t + 1) * blk],
                                preferred_element_type=jnp.float32)
        a2 = acc + b2_ref[...]                                       # [32, blk]

        # ---- LocalResponseNorm(size=5, alpha, beta, k=1) across channels ------------
        # (alpha / size) is pre-folded into the banded window matrix; divide via exp/log.
        wsum = jnp.dot(band_ref[...], a2 * a2, preferred_element_type=jnp.float32)
        feat = a2 * jnp.exp(-LRN_BETA * jnp.log(LRN_K + wsum))       # == a2 / (k+ws)**beta

        # ---- ortho rfft2 of every (image, channel) plane: block-diag DFT matmuls -----
        gr = jnp.dot(feat, d2r_ref[...], preferred_element_type=jnp.float32)  # [32, 2N*fpad]
        gi = jnp.dot(feat, d2i_ref[...], preferred_element_type=jnp.float32)
        zr, zi = gr[:, :zf_w], gi[:, :zf_w]                          # z images first
        xr, xi = gr[:, zf_w:], gi[:, zf_w:]

        # ---- DCF head ----------------------------------------------------------------
        # kzzf = sum_c |zf|^2 ; kxzf = sum_c xf * conj(zf)   (channel = sublane axis)
        kzz = jnp.sum(zr * zr + zi * zi, axis=0, keepdims=True)      # [1, N*fpad]
        kxr = jnp.sum(xr * zr + xi * zi, axis=0, keepdims=True)
        kxi = jnp.sum(xi * zr - xr * zi, axis=0, keepdims=True)
        inv = 1.0 / (kzz + lambda0)
        ar = yfr_ref[...] * inv                                      # alphaf = yf / (kzzf + l0)
        ai = yfi_ref[...] * inv
        ofr = kxr * ar - kxi * ai                                    # complex_mul(kxzf, alphaf)
        ofi = kxr * ai + kxi * ar

        # ---- ortho irfft2 back to the spatial response (lane-dense [1, N*Hs*Ws]) -----
        o_ref[...] = (jnp.dot(ofr, er_ref[...], preferred_element_type=jnp.float32)
                      - jnp.dot(ofi, ei_ref[...], preferred_element_type=jnp.float32))

    return kernel


# --------------------------- constants (built once, numpy) ----------------------
def _build_constants(n_img, C, Hs, Ws, blk, fpad):
    B = 2 * n_img
    ns, Wf = Hs * Ws, Ws // 2 + 1
    nf = Hs * Wf
    s = 1.0 / math.sqrt(Hs * Ws)

    # Exact DFT matrices for ortho rfft2 / irfft2 at size Hs x Ws.
    ii, jj = np.meshgrid(np.arange(Hs), np.arange(Ws), indexing="ij")   # spatial (i, j)
    uu, vv = np.meshgrid(np.arange(Hs), np.arange(Wf), indexing="ij")   # freq   (u, v)
    theta = 2.0 * np.pi * (np.outer(ii.ravel(), uu.ravel()) / Hs
                           + np.outer(jj.ravel(), vv.ravel()) / Ws)     # [ns, nf]
    fwd_r = np.cos(theta) * s
    fwd_i = -np.sin(theta) * s
    cv = np.full((Wf,), 2.0)                                            # Hermitian doubling
    cv[0] = 1.0
    if Ws % 2 == 0:
        cv[Wf - 1] = 1.0
    cw = np.tile(cv, Hs)[:, None]                                       # weight per (u, v)
    inv_r = cw * np.cos(theta.T) * s
    inv_i = cw * np.sin(theta.T) * s

    # Block-diagonal forward DFT: rows = conv2 output lanes (b*ns + m, pad lanes zero),
    # cols = per-image 128-lane frequency slabs (valid 0..nf-1, rest zero).
    d2r = np.zeros((blk, B * fpad), np.float32)
    d2i = np.zeros((blk, B * fpad), np.float32)
    for b in range(B):
        d2r[b * ns:(b + 1) * ns, b * fpad:b * fpad + nf] = fwd_r
        d2i[b * ns:(b + 1) * ns, b * fpad:b * fpad + nf] = fwd_i

    # Block-diagonal inverse DFT for the N z/x pairs.
    er = np.zeros((n_img * fpad, n_img * ns), np.float32)
    ei = np.zeros((n_img * fpad, n_img * ns), np.float32)
    for n in range(n_img):
        er[n * fpad:n * fpad + nf, n * ns:(n + 1) * ns] = inv_r
        ei[n * fpad:n * fpad + nf, n * ns:(n + 1) * ns] = inv_i

    # LRN banded channel-window matrix with alpha/size folded in.
    idx = np.arange(C)
    band = (np.abs(idx[:, None] - idx[None, :]) <= (LRN_SIZE - 1) // 2)
    band = band.astype(np.float32) * (LRN_ALPHA / LRN_SIZE)
    return d2r, d2i, er, ei, band


# --------------------------------- JAX wrapper -----------------------------------
def make_dcfnet_forward(w1, b1, w2, b2, yf, lambda0, n_img, H, W):
    """w1:[32,1,3,3] OIHW, w2:[32,32,3,3] OIHW, b*:[32], yf: complex [Hs, Wf]."""
    C = w1.shape[0]                                   # 32
    B = 2 * n_img
    Hs, Ws = H - 4, W - 4
    ns, Wf = Hs * Ws, Ws // 2 + 1
    nf = Hs * Wf
    blk = ((B * ns + 127) // 128) * 128               # per-tap lane block (vreg aligned)
    fpad = ((nf + 127) // 128) * 128                  # per-image frequency slab

    d2r, d2i, er, ei, band = _build_constants(n_img, C, Hs, Ws, blk, fpad)

    yf = np.asarray(yf)
    yfr = np.zeros((1, n_img * fpad), np.float32)
    yfi = np.zeros((1, n_img * fpad), np.float32)
    for n in range(n_img):
        yfr[0, n * fpad:n * fpad + nf] = np.real(yf).ravel()
        yfi[0, n * fpad:n * fpad + nf] = np.imag(yf).ravel()

    # Weights in native PyTorch OIHW layout -> matmul layouts.
    w1_r = jnp.asarray(w1, jnp.float32).reshape(C, 9)                         # [Cout, ky*3+kx]
    b1_c = jnp.asarray(b1, jnp.float32).reshape(C, 1)
    w2_t = jnp.asarray(w2, jnp.float32).transpose(2, 3, 0, 1).reshape(9, C, C)  # [tap, Cout, Cin]
    b2_c = jnp.asarray(b2, jnp.float32).reshape(C, 1)

    consts = tuple(jnp.asarray(a) for a in (band, d2r, d2i, yfr, yfi, er, ei))
    kernel = _make_dcfnet_kernel(n_img, fpad, blk, float(lambda0))

    # conv1-tap row r=(ky1,kx1) inside conv2-tap block t=(ky2,kx2) needs the 12x12
    # window of the raw image at total offset (ky1+ky2, kx1+kx2) -> 25 distinct windows.
    tap_idx = np.array([[(ky1 + ky2) * 5 + (kx1 + kx2)
                         for ky2 in range(3) for kx2 in range(3)]
                        for ky1 in range(3) for kx1 in range(3)], dtype=np.int32)

    @jax.jit
    def forward(z, x):
        imgs = jnp.concatenate([z, x], axis=0)[:, 0]                 # [B, H, W], z first
        patches = jnp.stack([imgs[:, a:a + Hs, c:c + Ws].reshape(B * ns)
                             for a in range(5) for c in range(5)])   # [25, B*ns]
        blocks = patches[tap_idx]                                    # [9, 9, B*ns]
        blocks = jnp.pad(blocks, ((0, 0), (0, 0), (0, blk - B * ns)))
        xcol = blocks.reshape(9, 9 * blk)                            # tap-expanded im2col

        resp = pl.pallas_call(
            kernel,
            out_shape=jax.ShapeDtypeStruct((1, n_img * ns), jnp.float32),
        )(xcol, w1_r, b1_c, w2_t, b2_c, *consts)

        return resp.reshape(n_img, 1, Hs, Ws)

    return forward


# ----------------------------------- main ----------------------------------------
if __name__ == "__main__":
    key = jax.random.PRNGKey(0)
    k1, k2, k3, k4, k5, k6 = jax.random.split(key, 6)

    N, H, W = 2, 16, 16
    z = jax.random.normal(k1, (N, 1, H, W), jnp.float32)
    x = jax.random.normal(k2, (N, 1, H, W), jnp.float32)

    # Parameters in native PyTorch layouts: Conv2d(1,32,3), Conv2d(32,32,3) (OIHW), bias (32,).
    w1 = jax.random.normal(k3, (32, 1, 3, 3), jnp.float32) * 0.1
    b1 = jax.random.normal(k4, (32,), jnp.float32) * 0.01
    w2 = jax.random.normal(k5, (32, 32, 3, 3), jnp.float32) * 0.05
    b2 = jax.random.normal(k6, (32,), jnp.float32) * 0.01

    # config.yf: ortho rfft2 of a circular Gaussian label at feature resolution (test constant).
    Hs, Ws = H - 4, W - 4
    sigma = 2.0
    dy = np.minimum(np.arange(Hs), Hs - np.arange(Hs)).astype(np.float32)
    dx = np.minimum(np.arange(Ws), Ws - np.arange(Ws)).astype(np.float32)
    ylabel = np.exp(-0.5 * (dy[:, None] ** 2 + dx[None, :] ** 2) / sigma ** 2)
    yf = np.fft.rfft2(ylabel, norm="ortho")            # [12, 7] complex
    lambda0 = 1e-4

    fwd = make_dcfnet_forward(w1, b1, w2, b2, yf, lambda0, N, H, W)
    response = fwd(z, x)
    jax.block_until_ready(response)

    assert response.shape == (N, 1, Hs, Ws), response.shape
    assert bool(jnp.all(jnp.isfinite(response)))
    print("KERNEL_OK")
</pallas_src>

<mosaic_0001>
module attributes {stable_mosaic.version = 11 : i64} {
  func.func @kernel(%arg0: memref<9x5760xf32, #tpu.memory_space<vmem>>, %arg1: memref<32x9xf32, #tpu.memory_space<vmem>>, %arg2: memref<32x1xf32, #tpu.memory_space<vmem>>, %arg3: memref<9x32x32xf32, #tpu.memory_space<vmem>>, %arg4: memref<32x1xf32, #tpu.memory_space<vmem>>, %arg5: memref<32x32xf32, #tpu.memory_space<vmem>>, %arg6: memref<640x512xf32, #tpu.memory_space<vmem>>, %arg7: memref<640x512xf32, #tpu.memory_space<vmem>>, %arg8: memref<1x256xf32, #tpu.memory_space<vmem>>, %arg9: memref<1x256xf32, #tpu.memory_space<vmem>>, %arg10: memref<256x288xf32, #tpu.memory_space<vmem>>, %arg11: memref<256x288xf32, #tpu.memory_space<vmem>>, %arg12: memref<1x288xf32, #tpu.memory_space<vmem>>) attributes {dimension_semantics = [], scalar_prefetch = 0 : i64, scratch_operands = 0 : i64, tpu.core_type = #tpu.core_type<tc>} {
    %c0 = arith.constant 0 : index
    %c0_0 = arith.constant 0 : index
    %0 = vector.load %arg1[%c0, %c0_0] : memref<32x9xf32, #tpu.memory_space<vmem>>, vector<32x9xf32>
    %c0_1 = arith.constant 0 : index
    %c0_2 = arith.constant 0 : index
    %1 = vector.load %arg0[%c0_1, %c0_2] : memref<9x5760xf32, #tpu.memory_space<vmem>>, vector<9x5760xf32>
    %cst = arith.constant dense<0.000000e+00> : vector<32x5760xf32>
    %2 = tpu.matmul %0, %1, %cst {dimension_numbers = #tpu.dot_dimension_numbers<[1], [0], [0], [1], [0, 0, 1, 1], [], []>} : vector<32x9xf32>, vector<9x5760xf32>, vector<32x5760xf32> -> vector<32x5760xf32>
    %c0_3 = arith.constant 0 : index
    %c0_4 = arith.constant 0 : index
    %3 = vector.load %arg2[%c0_3, %c0_4] : memref<32x1xf32, #tpu.memory_space<vmem>>, vector<32x1xf32>
    %4 = vector.broadcast %3 : vector<32x1xf32> to vector<32x5760xf32>
    %5 = arith.addf %2, %4 : vector<32x5760xf32>
    %cst_5 = arith.constant 0.000000e+00 : f32
    %6 = vector.broadcast %cst_5 : f32 to vector<32x5760xf32>
    %7 = arith.maximumf %5, %6 : vector<32x5760xf32>
    %c0_6 = arith.constant 0 : index
    %c0_7 = arith.constant 0 : index
    %c0_8 = arith.constant 0 : index
    %8 = vector.load %arg3[%c0_6, %c0_7, %c0_8] : memref<9x32x32xf32, #tpu.memory_space<vmem>>, vector<1x32x32xf32>
    %9 = vector.shape_cast %8 : vector<1x32x32xf32> to vector<32x32xf32>
    %10 = vector.extract_strided_slice %7 {offsets = [0, 0], sizes = [32, 640], strides = [1, 1]} : vector<32x5760xf32> to vector<32x640xf32>
    %cst_9 = arith.constant dense<0.000000e+00> : vector<32x640xf32>
    %11 = tpu.matmul %9, %10, %cst_9 {dimension_numbers = #tpu.dot_dimension_numbers<[1], [0], [0], [1], [0, 0, 1, 1], [], []>} : vector<32x32xf32>, vector<32x640xf32>, vector<32x640xf32> -> vector<32x640xf32>
    %c1 = arith.constant 1 : index
    %c0_10 = arith.constant 0 : index
    %c0_11 = arith.constant 0 : index
    %12 = vector.load %arg3[%c1, %c0_10, %c0_11] : memref<9x32x32xf32, #tpu.memory_space<vmem>>, vector<1x32x32xf32>
    %13 = vector.shape_cast %12 : vector<1x32x32xf32> to vector<32x32xf32>
    %14 = vector.extract_strided_slice %7 {offsets = [0, 640], sizes = [32, 640], strides = [1, 1]} : vector<32x5760xf32> to vector<32x640xf32>
    %cst_12 = arith.constant dense<0.000000e+00> : vector<32x640xf32>
    %15 = tpu.matmul %13, %14, %cst_12 {dimension_numbers = #tpu.dot_dimension_numbers<[1], [0], [0], [1], [0, 0, 1, 1], [], []>} : vector<32x32xf32>, vector<32x640xf32>, vector<32x640xf32> -> vector<32x640xf32>
    %16 = arith.addf %11, %15 : vector<32x640xf32>
    %c2 = arith.constant 2 : index
    %c0_13 = arith.constant 0 : index
    %c0_14 = arith.constant 0 : index
    %17 = vector.load %arg3[%c2, %c0_13, %c0_14] : memref<9x32x32xf32, #tpu.memory_space<vmem>>, vector<1x32x32xf32>
    %18 = vector.shape_cast %17 : vector<1x32x32xf32> to vector<32x32xf32>
    %19 = vector.extract_strided_slice %7 {offsets = [0, 1280], sizes = [32, 640], strides = [1, 1]} : vector<32x5760xf32> to vector<32x640xf32>
    %cst_15 = arith.constant dense<0.000000e+00> : vector<32x640xf32>
    %20 = tpu.matmul %18, %19, %cst_15 {dimension_numbers = #tpu.dot_dimension_numbers<[1], [0], [0], [1], [0, 0, 1, 1], [], []>} : vector<32x32xf32>, vector<32x640xf32>, vector<32x640xf32> -> vector<32x640xf32>
    %21 = arith.addf %16, %20 : vector<32x640xf32>
    %c3 = arith.constant 3 : index
    %c0_16 = arith.constant 0 : index
    %c0_17 = arith.constant 0 : index
    %22 = vector.load %arg3[%c3, %c0_16, %c0_17] : memref<9x32x32xf32, #tpu.memory_space<vmem>>, vector<1x32x32xf32>
    %23 = vector.shape_cast %22 : vector<1x32x32xf32> to vector<32x32xf32>
    %24 = vector.extract_strided_slice %7 {offsets = [0, 1920], sizes = [32, 640], strides = [1, 1]} : vector<32x5760xf32> to vector<32x640xf32>
    %cst_18 = arith.constant dense<0.000000e+00> : vector<32x640xf32>
    %25 = tpu.matmul %23, %24, %cst_18 {dimension_numbers = #tpu.dot_dimension_numbers<[1], [0], [0], [1], [0, 0, 1, 1], [], []>} : vector<32x32xf32>, vector<32x640xf32>, vector<32x640xf32> -> vector<32x640xf32>
    %26 = arith.addf %21, %25 : vector<32x640xf32>
    %c4 = arith.constant 4 : index
    %c0_19 = arith.constant 0 : index
    %c0_20 = arith.constant 0 : index
    %27 = vector.load %arg3[%c4, %c0_19, %c0_20] : memref<9x32x32xf32, #tpu.memory_space<vmem>>, vector<1x32x32xf32>
    %28 = vector.shape_cast %27 : vector<1x32x32xf32> to vector<32x32xf32>
    %29 = vector.extract_strided_slice %7 {offsets = [0, 2560], sizes = [32, 640], strides = [1, 1]} : vector<32x5760xf32> to vector<32x640xf32>
    %cst_21 = arith.constant dense<0.000000e+00> : vector<32x640xf32>
    %30 = tpu.matmul %28, %29, %cst_21 {dimension_numbers = #tpu.dot_dimension_numbers<[1], [0], [0], [1], [0, 0, 1, 1], [], []>} : vector<32x32xf32>, vector<32x640xf32>, vector<32x640xf32> -> vector<32x640xf32>
    %31 = arith.addf %26, %30 : vector<32x640xf32>
    %c5 = arith.constant 5 : index
    %c0_22 = arith.constant 0 : index
    %c0_23 = arith.constant 0 : index
    %32 = vector.load %arg3[%c5, %c0_22, %c0_23] : memref<9x32x32xf32, #tpu.memory_space<vmem>>, vector<1x32x32xf32>
    %33 = vector.shape_cast %32 : vector<1x32x32xf32> to vector<32x32xf32>
    %34 = vector.extract_strided_slice %7 {offsets = [0, 3200], sizes = [32, 640], strides = [1, 1]} : vector<32x5760xf32> to vector<32x640xf32>
    %cst_24 = arith.constant dense<0.000000e+00> : vector<32x640xf32>
    %35 = tpu.matmul %33, %34, %cst_24 {dimension_numbers = #tpu.dot_dimension_numbers<[1], [0], [0], [1], [0, 0, 1, 1], [], []>} : vector<32x32xf32>, vector<32x640xf32>, vector<32x640xf32> -> vector<32x640xf32>
    %36 = arith.addf %31, %35 : vector<32x640xf32>
    %c6 = arith.constant 6 : index
    %c0_25 = arith.constant 0 : index
    %c0_26 = arith.constant 0 : index
    %37 = vector.load %arg3[%c6, %c0_25, %c0_26] : memref<9x32x32xf32, #tpu.memory_space<vmem>>, vector<1x32x32xf32>
    %38 = vector.shape_cast %37 : vector<1x32x32xf32> to vector<32x32xf32>
    %39 = vector.extract_strided_slice %7 {offsets = [0, 3840], sizes = [32, 640], strides = [1, 1]} : vector<32x5760xf32> to vector<32x640xf32>
    %cst_27 = arith.constant dense<0.000000e+00> : vector<32x640xf32>
    %40 = tpu.matmul %38, %39, %cst_27 {dimension_numbers = #tpu.dot_dimension_numbers<[1], [0], [0], [1], [0, 0, 1, 1], [], []>} : vector<32x32xf32>, vector<32x640xf32>, vector<32x640xf32> -> vector<32x640xf32>
    %41 = arith.addf %36, %40 : vector<32x640xf32>
    %c7 = arith.constant 7 : index
    %c0_28 = arith.constant 0 : index
    %c0_29 = arith.constant 0 : index
    %42 = vector.load %arg3[%c7, %c0_28, %c0_29] : memref<9x32x32xf32, #tpu.memory_space<vmem>>, vector<1x32x32xf32>
    %43 = vector.shape_cast %42 : vector<1x32x32xf32> to vector<32x32xf32>
    %44 = vector.extract_strided_slice %7 {offsets = [0, 4480], sizes = [32, 640], strides = [1, 1]} : vector<32x5760xf32> to vector<32x640xf32>
    %cst_30 = arith.constant dense<0.000000e+00> : vector<32x640xf32>
    %45 = tpu.matmul %43, %44, %cst_30 {dimension_numbers = #tpu.dot_dimension_numbers<[1], [0], [0], [1], [0, 0, 1, 1], [], []>} : vector<32x32xf32>, vector<32x640xf32>, vector<32x640xf32> -> vector<32x640xf32>
    %46 = arith.addf %41, %45 : vector<32x640xf32>
    %c8 = arith.constant 8 : index
    %c0_31 = arith.constant 0 : index
    %c0_32 = arith.constant 0 : index
    %47 = vector.load %arg3[%c8, %c0_31, %c0_32] : memref<9x32x32xf32, #tpu.memory_space<vmem>>, vector<1x32x32xf32>
    %48 = vector.shape_cast %47 : vector<1x32x32xf32> to vector<32x32xf32>
    %49 = vector.extract_strided_slice %7 {offsets = [0, 5120], sizes = [32, 640], strides = [1, 1]} : vector<32x5760xf32> to vector<32x640xf32>
    %cst_33 = arith.constant dense<0.000000e+00> : vector<32x640xf32>
    %50 = tpu.matmul %48, %49, %cst_33 {dimension_numbers = #tpu.dot_dimension_numbers<[1], [0], [0], [1], [0, 0, 1, 1], [], []>} : vector<32x32xf32>, vector<32x640xf32>, vector<32x640xf32> -> vector<32x640xf32>
    %51 = arith.addf %46, %50 : vector<32x640xf32>
    %c0_34 = arith.constant 0 : index
    %c0_35 = arith.constant 0 : index
    %52 = vector.load %arg4[%c0_34, %c0_35] : memref<32x1xf32, #tpu.memory_space<vmem>>, vector<32x1xf32>
    %53 = vector.broadcast %52 : vector<32x1xf32> to vector<32x640xf32>
    %54 = arith.addf %51, %53 : vector<32x640xf32>
    %c0_36 = arith.constant 0 : index
    %c0_37 = arith.constant 0 : index
    %55 = vector.load %arg5[%c0_36, %c0_37] : memref<32x32xf32, #tpu.memory_space<vmem>>, vector<32x32xf32>
    %56 = arith.mulf %54, %54 : vector<32x640xf32>
    %cst_38 = arith.constant dense<0.000000e+00> : vector<32x640xf32>
    %57 = tpu.matmul %55, %56, %cst_38 {dimension_numbers = #tpu.dot_dimension_numbers<[1], [0], [0], [1], [0, 0, 1, 1], [], []>} : vector<32x32xf32>, vector<32x640xf32>, vector<32x640xf32> -> vector<32x640xf32>
    %cst_39 = arith.constant 1.000000e+00 : f32
    %58 = vector.broadcast %cst_39 : f32 to vector<32x640xf32>
    %59 = arith.addf %58, %57 : vector<32x640xf32>
    %60 = math.log %59 : vector<32x640xf32>
    %cst_40 = arith.constant -7.500000e-01 : f32
    %61 = vector.broadcast %cst_40 : f32 to vector<32x640xf32>
    %62 = arith.mulf %61, %60 : vector<32x640xf32>
    %63 = math.exp %62 : vector<32x640xf32>
    %64 = arith.mulf %54, %63 : vector<32x640xf32>
    %c0_41 = arith.constant 0 : index
    %c0_42 = arith.constant 0 : index
    %65 = vector.load %arg6[%c0_41, %c0_42] : memref<640x512xf32, #tpu.memory_space<vmem>>, vector<640x512xf32>
    %cst_43 = arith.constant dense<0.000000e+00> : vector<32x512xf32>
    %66 = tpu.matmul %64, %65, %cst_43 {dimension_numbers = #tpu.dot_dimension_numbers<[1], [0], [0], [1], [0, 0, 1, 1], [], []>} : vector<32x640xf32>, vector<640x512xf32>, vector<32x512xf32> -> vector<32x512xf32>
    %c0_44 = arith.constant 0 : index
    %c0_45 = arith.constant 0 : index
    %67 = vector.load %arg7[%c0_44, %c0_45] : memref<640x512xf32, #tpu.memory_space<vmem>>, vector<640x512xf32>
    %cst_46 = arith.constant dense<0.000000e+00> : vector<32x512xf32>
    %68 = tpu.matmul %64, %67, %cst_46 {dimension_numbers = #tpu.dot_dimension_numbers<[1], [0], [0], [1], [0, 0, 1, 1], [], []>} : vector<32x640xf32>, vector<640x512xf32>, vector<32x512xf32> -> vector<32x512xf32>
    %69 = vector.extract_strided_slice %66 {offsets = [0, 0], sizes = [32, 256], strides = [1, 1]} : vector<32x512xf32> to vector<32x256xf32>
    %70 = vector.extract_strided_slice %68 {offsets = [0, 0], sizes = [32, 256], strides = [1, 1]} : vector<32x512xf32> to vector<32x256xf32>
    %71 = vector.extract_strided_slice %66 {offsets = [0, 256], sizes = [32, 256], strides = [1, 1]} : vector<32x512xf32> to vector<32x256xf32>
    %72 = vector.extract_strided_slice %68 {offsets = [0, 256], sizes = [32, 256], strides = [1, 1]} : vector<32x512xf32> to vector<32x256xf32>
    %73 = arith.mulf %69, %69 : vector<32x256xf32>
    %74 = arith.mulf %70, %70 : vector<32x256xf32>
    %75 = arith.addf %73, %74 : vector<32x256xf32>
    %cst_47 = arith.constant dense<0.000000e+00> : vector<256xf32>
    %76 = vector.multi_reduction <add>, %75, %cst_47 [0] : vector<32x256xf32> to vector<256xf32>
    %77 = vector.shape_cast %76 : vector<256xf32> to vector<1x256xf32>
    %78 = arith.mulf %71, %69 : vector<32x256xf32>
    %79 = arith.mulf %72, %70 : vector<32x256xf32>
    %80 = arith.addf %78, %79 : vector<32x256xf32>
    %cst_48 = arith.constant dense<0.000000e+00> : vector<256xf32>
    %81 = vector.multi_reduction <add>, %80, %cst_48 [0] : vector<32x256xf32> to vector<256xf32>
    %82 = vector.shape_cast %81 : vector<256xf32> to vector<1x256xf32>
    %83 = arith.mulf %72, %69 : vector<32x256xf32>
    %84 = arith.mulf %71, %70 : vector<32x256xf32>
    %85 = arith.subf %83, %84 : vector<32x256xf32>
    %cst_49 = arith.constant dense<0.000000e+00> : vector<256xf32>
    %86 = vector.multi_reduction <add>, %85, %cst_49 [0] : vector<32x256xf32> to vector<256xf32>
    %87 = vector.shape_cast %86 : vector<256xf32> to vector<1x256xf32>
    %cst_50 = arith.constant 9.99999974E-5 : f32
    %88 = vector.broadcast %cst_50 : f32 to vector<1x256xf32>
    %89 = arith.addf %77, %88 : vector<1x256xf32>
    %cst_51 = arith.constant 1.000000e+00 : f32
    %90 = vector.broadcast %cst_51 : f32 to vector<1x256xf32>
    %91 = arith.divf %90, %89 : vector<1x256xf32>
    %c0_52 = arith.constant 0 : index
    %c0_53 = arith.constant 0 : index
    %92 = vector.load %arg8[%c0_52, %c0_53] : memref<1x256xf32, #tpu.memory_space<vmem>>, vector<1x256xf32>
    %93 = arith.mulf %92, %91 : vector<1x256xf32>
    %c0_54 = arith.constant 0 : index
    %c0_55 = arith.constant 0 : index
    %94 = vector.load %arg9[%c0_54, %c0_55] : memref<1x256xf32, #tpu.memory_space<vmem>>, vector<1x256xf32>
    %95 = arith.mulf %94, %91 : vector<1x256xf32>
    %96 = arith.mulf %82, %93 : vector<1x256xf32>
    %97 = arith.mulf %87, %95 : vector<1x256xf32>
    %98 = arith.subf %96, %97 : vector<1x256xf32>
    %99 = arith.mulf %82, %95 : vector<1x256xf32>
    %100 = arith.mulf %87, %93 : vector<1x256xf32>
    %101 = arith.addf %99, %100 : vector<1x256xf32>
    %c0_56 = arith.constant 0 : index
    %c0_57 = arith.constant 0 : index
    %102 = vector.load %arg10[%c0_56, %c0_57] : memref<256x288xf32, #tpu.memory_space<vmem>>, vector<256x288xf32>
    %cst_58 = arith.constant dense<0.000000e+00> : vector<1x288xf32>
    %103 = tpu.matmul %98, %102, %cst_58 {dimension_numbers = #tpu.dot_dimension_numbers<[1], [0], [0], [1], [0, 0, 1, 1], [], []>} : vector<1x256xf32>, vector<256x288xf32>, vector<1x288xf32> -> vector<1x288xf32>
    %c0_59 = arith.constant 0 : index
    %c0_60 = arith.constant 0 : index
    %104 = vector.load %arg11[%c0_59, %c0_60] : memref<256x288xf32, #tpu.memory_space<vmem>>, vector<256x288xf32>
    %cst_61 = arith.constant dense<0.000000e+00> : vector<1x288xf32>
    %105 = tpu.matmul %101, %104, %cst_61 {dimension_numbers = #tpu.dot_dimension_numbers<[1], [0], [0], [1], [0, 0, 1, 1], [], []>} : vector<1x256xf32>, vector<256x288xf32>, vector<1x288xf32> -> vector<1x288xf32>
    %106 = arith.subf %103, %105 : vector<1x288xf32>
    %c0_62 = arith.constant 0 : index
    %c0_63 = arith.constant 0 : index
    %107 = vector.load %arg12[%c0_62, %c0_63] : memref<1x288xf32, #tpu.memory_space<vmem>>, vector<1x288xf32>
    tpu.vector_store %arg12[%c0_62, %c0_63], %106 {strides = array<i32>} : memref<1x288xf32, #tpu.memory_space<vmem>>, vector<1x288xf32>,
    return
  }
}

</mosaic_0001>

<bundles_post_ra>
// kernel: forward.1
= control target key start
LH: loop header
LB: loop body
LE: loop exit
PB: predicated region body
PF: predicated region fallthrough
CT: control target
= control target key end

     0   :  { %vm172_vm0 = vcmask 1040384   ;;  %vm10182_vm1 = vmmov 1   ;;  %v10183_v3 = vmov 0.0   ;;  %v10184_v8 = vmov 0   ;;  %s14677_s0 = inlined_call_operand.vmem [shape: f32[9,5760], index: 0, kind: input, shape index: {}]   ;;  %s14678_s1 = inlined_call_operand.vmem [shape: f32[32,9], index: 1, kind: input, shape index: {}]   ;;  %s14679_s2 = inlined_call_operand.vmem [shape: f32[32,1], index: 2, kind: input, shape index: {}]   ;;  %s14680_s4 = inlined_call_operand.vmem [shape: f32[32,1], index: 4, kind: input, shape index: {}]   ;;  %s14681_s3 = inlined_call_operand.vmem [shape: f32[9,32,32], index: 3, kind: input, shape index: {}]   ;;  %s14682_s6 = inlined_call_operand.vmem [shape: f32[640,512], index: 6, kind: input, shape index: {}]   ;;  %s14683_s5 = inlined_call_operand.vmem [shape: f32[32,32], index: 5, kind: input, shape index: {}]   ;;  %s14684_s7 = inlined_call_operand.vmem [shape: f32[640,512], index: 7, kind: input, shape index: {}]   ;;  %s14685_s10 = inlined_call_operand.vmem [shape: f32[256,288], index: 10, kind: input, shape index: {}]   ;;  %s14686_s11 = inlined_call_operand.vmem [shape: f32[256,288], index: 11, kind: input, shape index: {}]   ;;  %s14687_s8 = inlined_call_operand.vmem [shape: f32[1,256], index: 8, kind: input, shape index: {}]   ;;  %s14688_s9 = inlined_call_operand.vmem [shape: f32[1,256], index: 9, kind: input, shape index: {}]   ;;  %s14689_s12 = inlined_call_operand.vmem [shape: f32[1,288], index: 12, kind: output, shape index: {}]  }
   0x1   :  { %v46_v0 = vld [vmem:[%s14677_s0 + $0x8] sm:$0xff]  ;;  %v91_v1 = vld [vmem:[%s14677_s0 + $0x170] sm:$0x1]  ;;  %vm10257_vm2 = vmpackc.low %vm172_vm0, %vm10182_vm1  ;;  %372 = vmatprep.mubr.f32.mxu0 %v10183_v3  ;;  %461 = vmatprep.mubr.f32.mxu1 %v10183_v3  ;;  %vm159_vm3 = vcmask 72704   ;;  %vm2540_vm4 = vcmask 261120  }
   0x2   :  { %v8658_v4 = vpack.c.bf16 %v91_v1, %v46_v0  ;;  %v48_v5 = vld [vmem:[%s14677_s0 + $0x18] sm:$0xff]  ;;  %v93_v6 = vld [vmem:[%s14677_s0 + $0x180] sm:$0x1]  ;;  %10096 = vset.pattern.permute.xlu0 %v10184_v8  ;;  %10097 = vset.pattern.permute.xlu1 %v10184_v8  ;;  %v90_v10 = vld [vmem:[%s14677_s0 + $0x168] sm:$0x1] }
   0x3   :  { %v45_v7 = vld [vmem:[%s14677_s0] sm:$0xff]  ;;  %v8664_v9 = vpack.c.bf16 %v93_v6, %v48_v5  ;;  %v47_v11 = vld [vmem:[%s14677_s0 + $0x10] sm:$0xff]  ;;  %v92_v12 = vld [vmem:[%s14677_s0 + $0x178] sm:$0x1] }
   0x4   :  { %8660 = vmatprep.subr.msk.bf16.mxu0 %vm10257_vm2, %v8658_v4  ;;  %v8661_v13 = vpack.c.bf16 %v90_v10, %v45_v7  ;;  %v8667_v14 = vpack.c.bf16 %v92_v12, %v47_v11  ;;  %v10286_v15 = vld [vmem:[%s14678_s1] sm:$0xff]  ;;  %v50_v16 = vld [vmem:[%s14677_s0 + $0x28] sm:$0xff]  ;;  %v95_v17 = vld [vmem:[%s14677_s0 + $0x190] sm:$0x1] }
   0x5   :  { %8666 = vmatprep.subr.msk.bf16.mxu1 %vm10257_vm2, %v8664_v9  ;;  %v49_v18 = vld [vmem:[%s14677_s0 + $0x20] sm:$0xff]  ;;  %v94_v19 = vld [vmem:[%s14677_s0 + $0x188] sm:$0x1]  ;;  %v8670_v20 = vpack.c.bf16 %v95_v17, %v50_v16  ;;  %v52_v21 = vld [vmem:[%s14677_s0 + $0x38] sm:$0xff] }
   0x6   :  { %8663 = vmatpush1.bf16.msk.msra.mxu0 %vm10257_vm2, %v8661_v13  ;;  %8669 = vmatpush1.bf16.msk.msra.mxu1 %vm10257_vm2, %v8667_v14  ;;  %v97_v22 = vld [vmem:[%s14677_s0 + $0x1a0] sm:$0x1]  ;;  %v51_v23 = vld [vmem:[%s14677_s0 + $0x30] sm:$0xff]  ;;  %v8673_v24 = vpack.c.bf16 %v94_v19, %v49_v18  ;;  %v96_v26 = vld [vmem:[%s14677_s0 + $0x198] sm:$0x1] }
   0x7   :  { %v8676_v25 = vpack.c.bf16 %v97_v22, %v52_v21  ;;  %8672 = vmatprep.subr.msk.bf16.mxu0 %vm10257_vm2, %v8670_v20  ;;  %v8679_v27 = vpack.c.bf16 %v96_v26, %v51_v23  ;;  %v54_v28 = vld [vmem:[%s14677_s0 + $0x48] sm:$0xff]  ;;  %v99_v29 = vld [vmem:[%s14677_s0 + $0x1b0] sm:$0x1]  ;;  %v56_v31 = vld [vmem:[%s14677_s0 + $0x58] sm:$0xff] }
   0x8   :  { %v8682_v30 = vpack.c.bf16 %v99_v29, %v54_v28  ;;  %v101_v32 = vld [vmem:[%s14677_s0 + $0x1c0] sm:$0x1]  ;;  %v10341_v33 = vld [vmem:[%s14678_s1 + $0x8] sm:$0xff]  ;;  %v10360_v35 = vld [vmem:[%s14678_s1 + $0x10] sm:$0xff] }
   0x9   :  { %8065 = vmatmul.mubr.msk.f32.vlgmr.msra.gmra.mrb[0].mxu0 %vm159_vm3, %v10286_v15  ;;  %8071 = vmatmul.mubr.msk.f32.vlgmr.msra.gmra.mrb[0].mxu1 %vm159_vm3, %v10286_v15  ;;  %v8688_v34 = vpack.c.bf16 %v101_v32, %v56_v31  ;;  %v10373_v36 = vld [vmem:[%s14678_s1 + $0x18] sm:$0xff]  ;;  %v53_v37 = vld [vmem:[%s14677_s0 + $0x40] sm:$0xff]  ;;  %v98_v39 = vld [vmem:[%s14677_s0 + $0x1a8] sm:$0x1] }
   0xa   :  { %378 = vmatprep.mubr.f32.mxu0 %v10183_v3  ;;  %467 = vmatprep.mubr.f32.mxu1 %v10183_v3  ;;  %v135_v38 = vld [vmem:[%s14679_s2] sm:$0xff]  ;;  %v55_v40 = vld [vmem:[%s14677_s0 + $0x50] sm:$0xff]  ;;  %v100_v42 = vld [vmem:[%s14677_s0 + $0x1b8] sm:$0x1]  ;;  %v8685_v49 = vpack.c.bf16 %v98_v39, %v53_v37 }
   0xb   :  { %8675 = vmatpush1.bf16.msk.msra.mxu0 %vm10257_vm2, %v8673_v24  ;;  %8678 = vmatprep.subr.msk.bf16.mxu1 %vm10257_vm2, %v8676_v25  ;;  %v137_v41 = vld [vmem:[%s14679_s2 + $0x10] sm:$0xff]  ;;  %v58_v43 = vld [vmem:[%s14677_s0 + $0x68] sm:$0xff]  ;;  %v60_v46 = vld [vmem:[%s14677_s0 + $0x78] sm:$0xff]  ;;  %v8691_v50 = vpack.c.bf16 %v100_v42, %v55_v40 }
   0xc   :  { %8681 = vmatpush1.bf16.msk.msra.mxu1 %vm10257_vm2, %v8679_v27  ;;  %8684 = vmatprep.subr.msk.bf16.mxu0 %vm10257_vm2, %v8682_v30  ;;  %v136_v44 = vld [vmem:[%s14679_s2 + $0x8] sm:$0xff]  ;;  %v103_v45 = vld [vmem:[%s14677_s0 + $0x1d0] sm:$0x1]  ;;  %v105_v47 = vld [vmem:[%s14677_s0 + $0x1e0] sm:$0x1] }
   0xd   :  { %8066 = vmatmul.mubr.msk.f32.gmra.mrb[2].mxu0 %vm159_vm3, %v10341_v33  ;;  %8072 = vmatmul.mubr.msk.f32.gmra.mrb[2].mxu1 %vm159_vm3, %v10341_v33  ;;  %v138_v48 = vld [vmem:[%s14679_s2 + $0x18] sm:$0xff]  ;;  %v8694_v51 = vpack.c.bf16 %v103_v45, %v58_v43  ;;  %v8700_v52 = vpack.c.bf16 %v105_v47, %v60_v46  ;;  %v5191_v53 = vld [vmem:[%s14680_s4] sm:$0xff]  ;;  %v5192_v54 = vld [vmem:[%s14680_s4 + $0x8] sm:$0xff] }
   0xe   :  { %384 = vmatprep.mubr.f32.mxu0 %v10183_v3  ;;  %473 = vmatprep.mubr.f32.mxu1 %v10183_v3  ;;  %v5193_v55 = vld [vmem:[%s14680_s4 + $0x10] sm:$0xff]  ;;  %v5194_v56 = vld [vmem:[%s14680_s4 + $0x18] sm:$0xff]  ;;  %v57_v57 = vld [vmem:[%s14677_s0 + $0x60] sm:$0xff] }
   0xf   :  { %8690 = vmatprep.subr.msk.bf16.mxu1 %vm10257_vm2, %v8688_v34  ;;  %141 = vperm.xlu0 %10096, %v135_v38   ;;  %v102_v58 = vld [vmem:[%s14677_s0 + $0x1c8] sm:$0x1]  ;;  %v59_v59 = vld [vmem:[%s14677_s0 + $0x70] sm:$0xff]  ;;  %v104_v60 = vld [vmem:[%s14677_s0 + $0x1d8] sm:$0x1] }
  0x10   :  { %151 = vperm.xlu1 %10097, %v137_v41   ;;  %v62_v61 = vld [vmem:[%s14677_s0 + $0x88] sm:$0xff]  ;;  %v107_v62 = vld [vmem:[%s14677_s0 + $0x1f0] sm:$0x1]  ;;  %v64_v63 = vld [vmem:[%s14677_s0 + $0x98] sm:$0xff]  ;;  %v8697_v1 = vpack.c.bf16 %v102_v58, %v57_v57  ;;  %v8703_v4 = vpack.c.bf16 %v104_v60, %v59_v59 }
  0x11   :  { %8067 = vmatmul.mubr.msk.f32.gmra.mrb[4].mxu0 %vm159_vm3, %v10360_v35  ;;  %8073 = vmatmul.mubr.msk.f32.gmra.mrb[4].mxu1 %vm159_vm3, %v10360_v35  ;;  %v109_v0 = vld [vmem:[%s14677_s0 + $0x200] sm:$0x1]  ;;  %v8706_v5 = vpack.c.bf16 %v107_v62, %v62_v61  ;;  %v106_v8 = vld [vmem:[%s14677_s0 + $0x1e8] sm:$0x1]  ;;  %v63_v9 = vld [vmem:[%s14677_s0 + $0x90] sm:$0xff] }
  0x12   :  { %390 = vmatprep.mubr.f32.mxu0 %v10183_v3  ;;  %479 = vmatprep.mubr.f32.mxu1 %v10183_v3  ;;  %v8712_v6 = vpack.c.bf16 %v109_v0, %v64_v63  ;;  %v61_v7 = vld [vmem:[%s14677_s0 + $0x80] sm:$0xff]  ;;  %v108_v10 = vld [vmem:[%s14677_s0 + $0x1f8] sm:$0x1]  ;;  %v66_v11 = vld [vmem:[%s14677_s0 + $0xa8] sm:$0xff] }
  0x13   :  { %146 = vperm.xlu0 %10096, %v136_v44   ;;  %v111_v12 = vld [vmem:[%s14677_s0 + $0x210] sm:$0x1]  ;;  %v68_v13 = vld [vmem:[%s14677_s0 + $0xb8] sm:$0xff]  ;;  %v113_v14 = vld [vmem:[%s14677_s0 + $0x220] sm:$0x1]  ;;  %v8709_v16 = vpack.c.bf16 %v106_v8, %v61_v7  ;;  %v8715_v17 = vpack.c.bf16 %v108_v10, %v63_v9 }
  0x14   :  { %156 = vperm.xlu1 %10097, %v138_v48   ;;  %v8718_v18 = vpack.c.bf16 %v111_v12, %v66_v11  ;;  %v8724_v19 = vpack.c.bf16 %v113_v14, %v68_v13  ;;  %v65_v20 = vld [vmem:[%s14677_s0 + $0xa0] sm:$0xff]  ;;  %v110_v21 = vld [vmem:[%s14677_s0 + $0x208] sm:$0x1]  ;;  %v67_v22 = vld [vmem:[%s14677_s0 + $0xb0] sm:$0xff] }
  0x15   :  { %8068 = vmatmul.mubr.msk.f32.gmra.mrb[6].mxu0 %vm159_vm3, %v10373_v36  ;;  %8074 = vmatmul.mubr.msk.f32.gmra.mrb[6].mxu1 %vm159_vm3, %v10373_v36  ;;  %v112_v23 = vld [vmem:[%s14677_s0 + $0x218] sm:$0x1]  ;;  %v70_v24 = vld [vmem:[%s14677_s0 + $0xc8] sm:$0xff]  ;;  %v115_v25 = vld [vmem:[%s14677_s0 + $0x230] sm:$0x1]  ;;  %v8721_v28 = vpack.c.bf16 %v110_v21, %v65_v20 }
  0x16   :  { %550 = vmatprep.mubr.f32.mxu0 %v10183_v3  ;;  %639 = vmatprep.mubr.f32.mxu1 %v10183_v3  ;;  %v72_v26 = vld [vmem:[%s14677_s0 + $0xd8] sm:$0xff]  ;;  %v117_v27 = vld [vmem:[%s14677_s0 + $0x240] sm:$0x1]  ;;  %v8727_v29 = vpack.c.bf16 %v112_v23, %v67_v22  ;;  %v8730_v30 = vpack.c.bf16 %v115_v25, %v70_v24  ;;  %v114_v34 = vld [vmem:[%s14677_s0 + $0x228] sm:$0x1] }
  0x17   :  { %5197 = vperm.xlu0 %10096, %v5191_v53   ;;  %v8736_v31 = vpack.c.bf16 %v117_v27, %v72_v26  ;;  %v69_v32 = vld [vmem:[%s14677_s0 + $0xc0] sm:$0xff]  ;;  %v71_v37 = vld [vmem:[%s14677_s0 + $0xd0] sm:$0xff]  ;;  %v116_v38 = vld [vmem:[%s14677_s0 + $0x238] sm:$0x1] }
  0x18   :  { %5202 = vperm.xlu1 %10097, %v5192_v54   ;;  %v74_v39 = vld [vmem:[%s14677_s0 + $0xe8] sm:$0xff]  ;;  %v119_v40 = vld [vmem:[%s14677_s0 + $0x250] sm:$0x1]  ;;  %v76_v41 = vld [vmem:[%s14677_s0 + $0xf8] sm:$0xff]  ;;  %v8733_v43 = vpack.c.bf16 %v114_v34, %v69_v32  ;;  %v8739_v44 = vpack.c.bf16 %v116_v38, %v71_v37 }
  0x19   :  { %8077 = vmatmul.mubr.msk.f32.vlgmr.msra.gmra.mrb[8].mxu0 %vm159_vm3, %v10286_v15  ;;  %8083 = vmatmul.mubr.msk.f32.vlgmr.msra.gmra.mrb[8].mxu1 %vm159_vm3, %v10286_v15  ;;  %v121_v42 = vld [vmem:[%s14677_s0 + $0x260] sm:$0x1]  ;;  %v8742_v45 = vpack.c.bf16 %v119_v40, %v74_v39  ;;  %v118_v48 = vld [vmem:[%s14677_s0 + $0x248] sm:$0x1]  ;;  %v80_v53 = vld [vmem:[%s14677_s0 + $0x118] sm:$0xff] }
  0x1a   :  { %556 = vmatprep.mubr.f32.mxu0 %v10183_v3  ;;  %645 = vmatprep.mubr.f32.mxu1 %v10183_v3  ;;  %v8748_v46 = vpack.c.bf16 %v121_v42, %v76_v41  ;;  %v73_v47 = vld [vmem:[%s14677_s0 + $0xe0] sm:$0xff]  ;;  %v122_v60 = vld [vmem:[%s14677_s0 + $0x268] sm:$0x1]  ;;  %v79_v61 = vld [vmem:[%s14677_s0 + $0x110] sm:$0xff] }
  0x1b   :  { %8687 = vmatpush1.bf16.msk.msra.mxu0 %vm10257_vm2, %v8685_v49  ;;  %8693 = vmatpush1.bf16.msk.msra.mxu1 %vm10257_vm2, %v8691_v50  ;;  %v75_v49 = vld [vmem:[%s14677_s0 + $0xf0] sm:$0xff]  ;;  %v120_v50 = vld [vmem:[%s14677_s0 + $0x258] sm:$0x1]  ;;  %v125_v54 = vld [vmem:[%s14677_s0 + $0x280] sm:$0x1] }
  0x1c   :  { %8696 = vmatprep.subr.msk.bf16.mxu0 %vm10257_vm2, %v8694_v51  ;;  %8702 = vmatprep.subr.msk.bf16.mxu1 %vm10257_vm2, %v8700_v52  ;;  %v78_v51 = vld [vmem:[%s14677_s0 + $0x108] sm:$0xff]  ;;  %v123_v52 = vld [vmem:[%s14677_s0 + $0x270] sm:$0x1]  ;;  %v8760_v58 = vpack.c.bf16 %v125_v54, %v80_v53  ;;  %v77_v59 = vld [vmem:[%s14677_s0 + $0x100] sm:$0xff] }
  0x1d   :  { %8078 = vmatmul.mubr.msk.f32.gmra.mrb[10].mxu0 %vm159_vm3, %v10341_v33  ;;  %8084 = vmatmul.mubr.msk.f32.gmra.mrb[10].mxu1 %vm159_vm3, %v10341_v33  ;;  %v8754_v57 = vpack.c.bf16 %v123_v52, %v78_v51  ;;  %v124_v62 = vld [vmem:[%s14677_s0 + $0x278] sm:$0x1]  ;;  %v82_v63 = vld [vmem:[%s14677_s0 + $0x128] sm:$0xff]  ;;  %v127_v0 = vld [vmem:[%s14677_s0 + $0x290] sm:$0x1] }
  0x1e   :  { %562 = vmatprep.mubr.f32.mxu0 %v10183_v3  ;;  %651 = vmatprep.mubr.f32.mxu1 %v10183_v3  ;;  %v8766_v7 = vpack.c.bf16 %v127_v0, %v82_v63  ;;  %v81_v9 = vld [vmem:[%s14677_s0 + $0x120] sm:$0xff]  ;;  %v126_v10 = vld [vmem:[%s14677_s0 + $0x288] sm:$0x1]  ;;  %v83_v11 = vld [vmem:[%s14677_s0 + $0x130] sm:$0xff] }
  0x1f   :  { %5207 = vperm.xlu0 %10096, %v5193_v55   ;;  %5212 = vperm.xlu1 %10097, %v5194_v56   ;;  %v8745_v55 = vpack.c.bf16 %v118_v48, %v73_v47  ;;  %v8751_v56 = vpack.c.bf16 %v120_v50, %v75_v49  ;;  %v128_v12 = vld [vmem:[%s14677_s0 + $0x298] sm:$0x1]  ;;  %v86_v13 = vld [vmem:[%s14677_s0 + $0x148] sm:$0xff]  ;;  %v131_v14 = vld [vmem:[%s14677_s0 + $0x2b0] sm:$0x1] }
  0x20   :  { %v8778_v20 = vpack.c.bf16 %v131_v14, %v86_v13  ;;  %v85_v22 = vld [vmem:[%s14677_s0 + $0x140] sm:$0xff]  ;;  %v130_v23 = vld [vmem:[%s14677_s0 + $0x2a8] sm:$0x1]  ;;  %v87_v24 = vld [vmem:[%s14677_s0 + $0x150] sm:$0xff] }
  0x21   :  { %8079 = vmatmul.mubr.msk.f32.gmra.mrb[12].mxu0 %vm159_vm3, %v10360_v35  ;;  %8085 = vmatmul.mubr.msk.f32.gmra.mrb[12].mxu1 %vm159_vm3, %v10360_v35  ;;  %v132_v25 = vld [vmem:[%s14677_s0 + $0x2b8] sm:$0x1]  ;;  %v89_v26 = vld [vmem:[%s14677_s0 + $0x160] sm:$0xff]  ;;  %v134_v27 = vld [vmem:[%s14677_s0 + $0x2c8] sm:$0x1] }
  0x22   :  { %568 = vmatprep.mubr.f32.mxu0 %v10183_v3  ;;  %657 = vmatprep.mubr.f32.mxu1 %v10183_v3 }
  0x25   :  { %8080 = vmatmul.mubr.msk.f32.gmra.mrb[14].mxu0 %vm159_vm3, %v10373_v36  ;;  %8086 = vmatmul.mubr.msk.f32.gmra.mrb[14].mxu1 %vm159_vm3, %v10373_v36 }
  0x26   :  { %728 = vmatprep.mubr.f32.mxu0 %v10183_v3  ;;  %817 = vmatprep.mubr.f32.mxu1 %v10183_v3 }
  0x29   :  { %8089 = vmatmul.mubr.msk.f32.vlgmr.msra.gmra.mrb[16].mxu0 %vm159_vm3, %v10286_v15  ;;  %8095 = vmatmul.mubr.msk.f32.vlgmr.msra.gmra.mrb[16].mxu1 %vm159_vm3, %v10286_v15 }
  0x2a   :  { %734 = vmatprep.mubr.f32.mxu0 %v10183_v3  ;;  %823 = vmatprep.mubr.f32.mxu1 %v10183_v3 }
  0x2b   :  { %8699 = vmatpush1.bf16.msk.msra.mxu0 %vm10257_vm2, %v8697_v1  ;;  %8705 = vmatpush1.bf16.msk.msra.mxu1 %vm10257_vm2, %v8703_v4  ;;  %v84_v1 = vld [vmem:[%s14677_s0 + $0x138] sm:$0xff]  ;;  %v129_v4 = vld [vmem:[%s14677_s0 + $0x2a0] sm:$0x1] }
  0x2c   :  { %8708 = vmatprep.subr.msk.bf16.mxu0 %vm10257_vm2, %v8706_v5  ;;  %8714 = vmatprep.subr.msk.bf16.mxu1 %vm10257_vm2, %v8712_v6  ;;  %v8757_v5 = vpack.c.bf16 %v122_v60, %v77_v59  ;;  %v8763_v6 = vpack.c.bf16 %v124_v62, %v79_v61  ;;  %v8772_v8 = vpack.c.bf16 %v129_v4, %v84_v1 }
  0x2d   :  { %8090 = vmatmul.mubr.msk.f32.gmra.mrb[18].mxu0 %vm159_vm3, %v10341_v33  ;;  %8096 = vmatmul.mubr.msk.f32.gmra.mrb[18].mxu1 %vm159_vm3, %v10341_v33 }
  0x2e   :  { %740 = vmatprep.mubr.f32.mxu0 %v10183_v3  ;;  %829 = vmatprep.mubr.f32.mxu1 %v10183_v3 }
  0x31   :  { %8091 = vmatmul.mubr.msk.f32.gmra.mrb[20].mxu0 %vm159_vm3, %v10360_v35  ;;  %8097 = vmatmul.mubr.msk.f32.gmra.mrb[20].mxu1 %vm159_vm3, %v10360_v35 }
  0x32   :  { %746 = vmatprep.mubr.f32.mxu0 %v10183_v3  ;;  %835 = vmatprep.mubr.f32.mxu1 %v10183_v3 }
  0x35   :  { %8092 = vmatmul.mubr.msk.f32.gmra.mrb[22].mxu0 %vm159_vm3, %v10373_v36  ;;  %8098 = vmatmul.mubr.msk.f32.gmra.mrb[22].mxu1 %vm159_vm3, %v10373_v36 }
  0x36   :  { %906 = vmatprep.mubr.f32.mxu0 %v10183_v3  ;;  %995 = vmatprep.mubr.f32.mxu1 %v10183_v3 }
  0x39   :  { %8101 = vmatmul.mubr.msk.f32.vlgmr.msra.gmra.mrb[24].mxu0 %vm159_vm3, %v10286_v15  ;;  %8107 = vmatmul.mubr.msk.f32.vlgmr.msra.gmra.mrb[24].mxu1 %vm159_vm3, %v10286_v15 }
  0x3a   :  { %912 = vmatprep.mubr.f32.mxu0 %v10183_v3  ;;  %1001 = vmatprep.mubr.f32.mxu1 %v10183_v3 }
  0x3b   :  { %8711 = vmatpush1.bf16.msk.msra.mxu0 %vm10257_vm2, %v8709_v16  ;;  %8717 = vmatpush1.bf16.msk.msra.mxu1 %vm10257_vm2, %v8715_v17  ;;  %v88_v16 = vld [vmem:[%s14677_s0 + $0x158] sm:$0xff]  ;;  %v133_v17 = vld [vmem:[%s14677_s0 + $0x2c0] sm:$0x1] }
  0x3c   :  { %8720 = vmatprep.subr.msk.bf16.mxu0 %vm10257_vm2, %v8718_v18  ;;  %8726 = vmatprep.subr.msk.bf16.mxu1 %vm10257_vm2, %v8724_v19  ;;  %v8769_v18 = vpack.c.bf16 %v126_v10, %v81_v9  ;;  %v8775_v19 = vpack.c.bf16 %v128_v12, %v83_v11  ;;  %v8784_v21 = vpack.c.bf16 %v133_v17, %v88_v16 }
  0x3d   :  { %8102 = vmatmul.mubr.msk.f32.gmra.mrb[26].mxu0 %vm159_vm3, %v10341_v33  ;;  %8108 = vmatmul.mubr.msk.f32.gmra.mrb[26].mxu1 %vm159_vm3, %v10341_v33 }
  0x3e   :  { %918 = vmatprep.mubr.f32.mxu0 %v10183_v3  ;;  %1007 = vmatprep.mubr.f32.mxu1 %v10183_v3 }
  0x41   :  { %8103 = vmatmul.mubr.msk.f32.gmra.mrb[28].mxu0 %vm159_vm3, %v10360_v35  ;;  %8109 = vmatmul.mubr.msk.f32.gmra.mrb[28].mxu1 %vm159_vm3, %v10360_v35 }
  0x42   :  { %924 = vmatprep.mubr.f32.mxu0 %v10183_v3  ;;  %1013 = vmatprep.mubr.f32.mxu1 %v10183_v3 }
  0x45   :  { %8104 = vmatmul.mubr.msk.f32.gmra.mrb[30].mxu0 %vm159_vm3, %v10373_v36  ;;  %8110 = vmatmul.mubr.msk.f32.gmra.mrb[30].mxu1 %vm159_vm3, %v10373_v36 }
  0x46   :  { %1084 = vmatprep.mubr.f32.mxu0 %v10183_v3  ;;  %1173 = vmatprep.mubr.f32.mxu1 %v10183_v3 }
  0x49   :  { %8113 = vmatmul.mubr.msk.f32.vlgmr.msra.gmra.mrb[32].mxu0 %vm159_vm3, %v10286_v15  ;;  %8119 = vmatmul.mubr.msk.f32.vlgmr.msra.gmra.mrb[32].mxu1 %vm159_vm3, %v10286_v15 }
  0x4a   :  { %1090 = vmatprep.mubr.f32.mxu0 %v10183_v3  ;;  %1179 = vmatprep.mubr.f32.mxu1 %v10183_v3 }
  0x4b   :  { %8723 = vmatpush1.bf16.msk.msra.mxu0 %vm10257_vm2, %v8721_v28  ;;  %8729 = vmatpush1.bf16.msk.msra.mxu1 %vm10257_vm2, %v8727_v29  ;;  %v8781_v28 = vpack.c.bf16 %v130_v23, %v85_v22  ;;  %v8787_v29 = vpack.c.bf16 %v132_v25, %v87_v24 }
  0x4c   :  { %8732 = vmatprep.subr.msk.bf16.mxu0 %vm10257_vm2, %v8730_v30  ;;  %8738 = vmatprep.subr.msk.bf16.mxu1 %vm10257_vm2, %v8736_v31  ;;  %v8790_v30 = vpack.c.bf16 %v134_v27, %v89_v26 }
  0x4d   :  { %8114 = vmatmul.mubr.msk.f32.gmra.mrb[34].mxu0 %vm159_vm3, %v10341_v33  ;;  %8120 = vmatmul.mubr.msk.f32.gmra.mrb[34].mxu1 %vm159_vm3, %v10341_v33 }
  0x4e   :  { %1096 = vmatprep.mubr.f32.mxu0 %v10183_v3  ;;  %1185 = vmatprep.mubr.f32.mxu1 %v10183_v3 }
  0x51   :  { %8115 = vmatmul.mubr.msk.f32.gmra.mrb[36].mxu0 %vm159_vm3, %v10360_v35  ;;  %8121 = vmatmul.mubr.msk.f32.gmra.mrb[36].mxu1 %vm159_vm3, %v10360_v35 }
  0x52   :  { %1102 = vmatprep.mubr.f32.mxu0 %v10183_v3  ;;  %1191 = vmatprep.mubr.f32.mxu1 %v10183_v3 }
  0x55   :  { %8116 = vmatmul.mubr.msk.f32.gmra.mrb[38].mxu0 %vm159_vm3, %v10373_v36  ;;  %8122 = vmatmul.mubr.msk.f32.gmra.mrb[38].mxu1 %vm159_vm3, %v10373_v36 }
  0x56   :  { %1262 = vmatprep.mubr.f32.mxu0 %v10183_v3  ;;  %1351 = vmatprep.mubr.f32.mxu1 %v10183_v3 }
  0x59   :  { %8125 = vmatmul.mubr.msk.f32.vlgmr.msra.gmra.mrb[40].mxu0 %vm159_vm3, %v10286_v15  ;;  %8131 = vmatmul.mubr.msk.f32.vlgmr.msra.gmra.mrb[40].mxu1 %vm159_vm3, %v10286_v15 }
  0x5a   :  { %1268 = vmatprep.mubr.f32.mxu0 %v10183_v3  ;;  %1357 = vmatprep.mubr.f32.mxu1 %v10183_v3 }
  0x5b   :  { %8735 = vmatpush1.bf16.msk.msra.mxu0 %vm10257_vm2, %v8733_v43  ;;  %8741 = vmatpush1.bf16.msk.msra.mxu1 %vm10257_vm2, %v8739_v44 }
  0x5c   :  { %8744 = vmatprep.subr.msk.bf16.mxu0 %vm10257_vm2, %v8742_v45  ;;  %8750 = vmatprep.subr.msk.bf16.mxu1 %vm10257_vm2, %v8748_v46 }
  0x5d   :  { %8126 = vmatmul.mubr.msk.f32.gmra.mrb[42].mxu0 %vm159_vm3, %v10341_v33  ;;  %8132 = vmatmul.mubr.msk.f32.gmra.mrb[42].mxu1 %vm159_vm3, %v10341_v33 }
  0x5e   :  { %1274 = vmatprep.mubr.f32.mxu0 %v10183_v3  ;;  %1363 = vmatprep.mubr.f32.mxu1 %v10183_v3 }
  0x61   :  { %8127 = vmatmul.mubr.msk.f32.gmra.mrb[44].mxu0 %vm159_vm3, %v10360_v35  ;;  %8133 = vmatmul.mubr.msk.f32.gmra.mrb[44].mxu1 %vm159_vm3, %v10360_v35 }
  0x62   :  { %1280 = vmatprep.mubr.f32.mxu0 %v10183_v3  ;;  %1369 = vmatprep.mubr.f32.mxu1 %v10183_v3 }
  0x65   :  { %8128 = vmatmul.mubr.msk.f32.gmra.mrb[46].mxu0 %vm159_vm3, %v10373_v36  ;;  %8134 = vmatmul.mubr.msk.f32.gmra.mrb[46].mxu1 %vm159_vm3, %v10373_v36 }
  0x66   :  { %1440 = vmatprep.mubr.f32.mxu0 %v10183_v3  ;;  %1529 = vmatprep.mubr.f32.mxu1 %v10183_v3 }
  0x69   :  { %8137 = vmatmul.mubr.msk.f32.vlgmr.msra.gmra.mrb[48].mxu0 %vm159_vm3, %v10286_v15  ;;  %8143 = vmatmul.mubr.msk.f32.vlgmr.msra.gmra.mrb[48].mxu1 %vm159_vm3, %v10286_v15 }
  0x6a   :  { %1446 = vmatprep.mubr.f32.mxu0 %v10183_v3  ;;  %1535 = vmatprep.mubr.f32.mxu1 %v10183_v3 }
  0x6b   :  { %8747 = vmatpush1.bf16.msk.msra.mxu0 %vm10257_vm2, %v8745_v55  ;;  %8753 = vmatpush1.bf16.msk.msra.mxu1 %vm10257_vm2, %v8751_v56 }
  0x6c   :  { %8756 = vmatprep.subr.msk.bf16.mxu0 %vm10257_vm2, %v8754_v57  ;;  %8762 = vmatprep.subr.msk.bf16.mxu1 %vm10257_vm2, %v8760_v58 }
  0x6d   :  { %8138 = vmatmul.mubr.msk.f32.gmra.mrb[50].mxu0 %vm159_vm3, %v10341_v33  ;;  %8144 = vmatmul.mubr.msk.f32.gmra.mrb[50].mxu1 %vm159_vm3, %v10341_v33 }
  0x6e   :  { %1452 = vmatprep.mubr.f32.mxu0 %v10183_v3  ;;  %1541 = vmatprep.mubr.f32.mxu1 %v10183_v3 }
  0x71   :  { %8139 = vmatmul.mubr.msk.f32.gmra.mrb[52].mxu0 %vm159_vm3, %v10360_v35  ;;  %8145 = vmatmul.mubr.msk.f32.gmra.mrb[52].mxu1 %vm159_vm3, %v10360_v35 }
  0x72   :  { %1458 = vmatprep.mubr.f32.mxu0 %v10183_v3  ;;  %1547 = vmatprep.mubr.f32.mxu1 %v10183_v3 }
  0x75   :  { %8140 = vmatmul.mubr.msk.f32.gmra.mrb[54].mxu0 %vm159_vm3, %v10373_v36  ;;  %8146 = vmatmul.mubr.msk.f32.gmra.mrb[54].mxu1 %vm159_vm3, %v10373_v36 }
  0x76   :  { %1618 = vmatprep.mubr.f32.mxu0 %v10183_v3  ;;  %1707 = vmatprep.mubr.f32.mxu1 %v10183_v3 }
  0x79   :  { %8149 = vmatmul.mubr.msk.f32.vlgmr.msra.gmra.mrb[56].mxu0 %vm159_vm3, %v10286_v15  ;;  %8155 = vmatmul.mubr.msk.f32.vlgmr.msra.gmra.mrb[56].mxu1 %vm159_vm3, %v10286_v15 }
  0x7a   :  { %1624 = vmatprep.mubr.f32.mxu0 %v10183_v3  ;;  %1713 = vmatprep.mubr.f32.mxu1 %v10183_v3 }
  0x7b   :  { %8759 = vmatpush1.bf16.msk.msra.mxu0 %vm10257_vm2, %v8757_v5  ;;  %8765 = vmatpush1.bf16.msk.msra.mxu1 %vm10257_vm2, %v8763_v6 }
  0x7c   :  { %8768 = vmatprep.subr.msk.bf16.mxu0 %vm10257_vm2, %v8766_v7  ;;  %8774 = vmatprep.subr.msk.bf16.mxu1 %vm10257_vm2, %v8772_v8 }
  0x7d   :  { %8150 = vmatmul.mubr.msk.f32.gmra.mrb[58].mxu0 %vm159_vm3, %v10341_v33  ;;  %8156 = vmatmul.mubr.msk.f32.gmra.mrb[58].mxu1 %vm159_vm3, %v10341_v33 }
  0x7e   :  { %1630 = vmatprep.mubr.f32.mxu0 %v10183_v3  ;;  %1719 = vmatprep.mubr.f32.mxu1 %v10183_v3 }
  0x81   :  { %8151 = vmatmul.mubr.msk.f32.gmra.mrb[60].mxu0 %vm159_vm3, %v10360_v35  ;;  %8157 = vmatmul.mubr.msk.f32.gmra.mrb[60].mxu1 %vm159_vm3, %v10360_v35 }
  0x82   :  { %1636 = vmatprep.mubr.f32.mxu0 %v10183_v3  ;;  %1725 = vmatprep.mubr.f32.mxu1 %v10183_v3 }
  0x85   :  { %8152 = vmatmul.mubr.msk.f32.gmra.mrb[62].mxu0 %vm159_vm3, %v10373_v36  ;;  %8158 = vmatmul.mubr.msk.f32.gmra.mrb[62].mxu1 %vm159_vm3, %v10373_v36 }
  0x86   :  { %1796 = vmatprep.mubr.f32.mxu0 %v10183_v3  ;;  %1885 = vmatprep.mubr.f32.mxu1 %v10183_v3 }
  0x89   :  { %8161 = vmatmul.mubr.msk.f32.vlgmr.msra.gmra.mrb[64].mxu0 %vm159_vm3, %v10286_v15  ;;  %8167 = vmatmul.mubr.msk.f32.vlgmr.msra.gmra.mrb[64].mxu1 %vm159_vm3, %v10286_v15 }
  0x8a   :  { %1802 = vmatprep.mubr.f32.mxu0 %v10183_v3  ;;  %1891 = vmatprep.mubr.f32.mxu1 %v10183_v3 }
  0x8b   :  { %8771 = vmatpush1.bf16.msk.msra.mxu0 %vm10257_vm2, %v8769_v18  ;;  %8777 = vmatpush1.bf16.msk.msra.mxu1 %vm10257_vm2, %v8775_v19 }
  0x8c   :  { %8780 = vmatprep.subr.msk.bf16.mxu0 %vm10257_vm2, %v8778_v20  ;;  %8786 = vmatprep.subr.msk.bf16.mxu1 %vm10257_vm2, %v8784_v21 }
  0x8d   :  { %8162 = vmatmul.mubr.msk.f32.gmra.mrb[66].mxu0 %vm159_vm3, %v10341_v33  ;;  %8168 = vmatmul.mubr.msk.f32.gmra.mrb[66].mxu1 %vm159_vm3, %v10341_v33 }
  0x8e   :  { %1808 = vmatprep.mubr.f32.mxu0 %v10183_v3  ;;  %1897 = vmatprep.mubr.f32.mxu1 %v10183_v3  ;;  %v10935_v2 = vpop.permute.xlu0 %141 }
  0x8f   :  { %v10941_v39 = vpop.permute.xlu1 %151 }
  0x91   :  { %8163 = vmatmul.mubr.msk.f32.gmra.mrb[68].mxu0 %vm159_vm3, %v10360_v35  ;;  %8169 = vmatmul.mubr.msk.f32.gmra.mrb[68].mxu1 %vm159_vm3, %v10360_v35 }
  0x92   :  { %1814 = vmatprep.mubr.f32.mxu0 %v10183_v3  ;;  %1903 = vmatprep.mubr.f32.mxu1 %v10183_v3 }
  0x93   :  { %v10957_v0 = vpop.permute.xlu1 %156 }
  0x95   :  { %8164 = vmatmul.mubr.msk.f32.gmra.mrb[70].mxu0 %vm159_vm3, %v10373_v36  ;;  %8170 = vmatmul.mubr.msk.f32.gmra.mrb[70].mxu1 %vm159_vm3, %v10373_v36 }
  0x96   :  { %1974 = vmatprep.mubr.f32.mxu0 %v10183_v3  ;;  %2063 = vmatprep.mubr.f32.mxu1 %v10183_v3 }
  0x99   :  { %8173 = vmatmul.mubr.msk.f32.vlgmr.msra.gmra.mrb[72].mxu0 %vm159_vm3, %v10286_v15  ;;  %8179 = vmatmul.mubr.msk.f32.vlgmr.msra.gmra.mrb[72].mxu1 %vm159_vm3, %v10286_v15 }
  0x9a   :  { %1980 = vmatprep.mubr.f32.mxu0 %v10183_v3  ;;  %2069 = vmatprep.mubr.f32.mxu1 %v10183_v3 }
  0x9b   :  { %8783 = vmatpush1.bf16.msk.msra.mxu0 %vm10257_vm2, %v8781_v28  ;;  %8789 = vmatpush1.bf16.msk.msra.mxu1 %vm10257_vm2, %v8787_v29 }
  0x9c   :  { %8792 = vmatprep.subr.msk.bf16.mxu0 %vm10257_vm2, %v8790_v30 }
  0x9d   :  { %8174 = vmatmul.mubr.msk.f32.gmra.mrb[74].mxu0 %vm159_vm3, %v10341_v33  ;;  %8180 = vmatmul.mubr.msk.f32.gmra.mrb[74].mxu1 %vm159_vm3, %v10341_v33 }
  0x9e   :  { %1986 = vmatprep.mubr.f32.mxu0 %v10183_v3  ;;  %2075 = vmatprep.mubr.f32.mxu1 %v10183_v3 }
  0xa1   :  { %8175 = vmatmul.mubr.msk.f32.gmra.mrb[76].mxu0 %vm159_vm3, %v10360_v35  ;;  %8181 = vmatmul.mubr.msk.f32.gmra.mrb[76].mxu1 %vm159_vm3, %v10360_v35 }
  0xa2   :  { %1992 = vmatprep.mubr.f32.mxu0 %v10183_v3  ;;  %2081 = vmatprep.mubr.f32.mxu1 %v10183_v3 }
  0xa5   :  { %8176 = vmatmul.mubr.msk.f32.gmra.mrb[78].mxu0 %vm159_vm3, %v10373_v36  ;;  %8182 = vmatmul.mubr.msk.f32.gmra.mrb[78].mxu1 %vm159_vm3, %v10373_v36 }
  0xa6   :  { %2152 = vmatprep.mubr.f32.mxu0 %v10183_v3  ;;  %2241 = vmatprep.mubr.f32.mxu1 %v10183_v3 }
  0xa9   :  { %8185 = vmatmul.mubr.msk.f32.vlgmr.msra.gmra.mrb[80].mxu0 %vm159_vm3, %v10286_v15  ;;  %8191 = vmatmul.mubr.msk.f32.vlgmr.msra.gmra.mrb[80].mxu1 %vm159_vm3, %v10286_v15 }
  0xaa   :  { %2158 = vmatprep.mubr.f32.mxu0 %v10183_v3  ;;  %2247 = vmatprep.mubr.f32.mxu1 %v10183_v3 }
  0xab   :  { %8795 = vmatpush3.bf16.msk.msra.mxu0 %vm10257_vm2, %v8790_v30 }
  0xad   :  { %8186 = vmatmul.mubr.msk.f32.gmra.mrb[82].mxu0 %vm159_vm3, %v10341_v33  ;;  %8192 = vmatmul.mubr.msk.f32.gmra.mrb[82].mxu1 %vm159_vm3, %v10341_v33 }
  0xae   :  { %2164 = vmatprep.mubr.f32.mxu0 %v10183_v3  ;;  %2253 = vmatprep.mubr.f32.mxu1 %v10183_v3 }
  0xb1   :  { %8187 = vmatmul.mubr.msk.f32.gmra.mrb[84].mxu0 %vm159_vm3, %v10360_v35  ;;  %8193 = vmatmul.mubr.msk.f32.gmra.mrb[84].mxu1 %vm159_vm3, %v10360_v35 }
  0xb2   :  { %2170 = vmatprep.mubr.f32.mxu0 %v10183_v3  ;;  %2259 = vmatprep.mubr.f32.mxu1 %v10183_v3 }
  0xb5   :  { %8188 = vmatmul.mubr.msk.f32.gmra.mrb[86].mxu0 %vm159_vm3, %v10373_v36  ;;  %8194 = vmatmul.mubr.msk.f32.gmra.mrb[86].mxu1 %vm159_vm3, %v10373_v36 }
  0xb6   :  { %8512 = vmatprep.mubr.msk.f32.mxu0 %vm159_vm3, %v10286_v15  ;;  %2617 = vmatprep.mubr.f32.mxu1 %v10183_v3  ;;  %v10937_v15 = vpop.permute.xlu0 %146 }
  0xb9   :  { %8513 = vmatmul.mubr.msk.f32.vlgmr.msra.gmra.mrb[88].mxu0 %vm159_vm3, %v10341_v33 }
  0xba   :  { %8515 = vmatprep.mubr.msk.f32.mxu0 %vm159_vm3, %v10360_v35 }
  0xbd   :  { %8516 = vmatmul.mubr.msk.f32.gmra.mrb[90].mxu0 %vm159_vm3, %v10373_v36 }
  0xbe   :  { %2706 = vmatprep.mubr.f32.mxu0 %v10183_v3 }
  0xdc   :  { %v374_v31 = vpop.f32.mrb[0].mxu0  ;;  %v463_v32 = vpop.f32.mrb[0].mxu1 }
  0xdd   :  { %v376_v34 = vpop.f32.mrb[1].mxu0  ;;  %v465_v37 = vpop.f32.mrb[1].mxu1  ;;  %v375_v38 = vadd.f32 %v374_v31, %v10935_v2  ;;  %v464_v33 = vadd.f32 %v463_v32, %v10935_v2 }
  0xde   :  { %v377_v35 = vadd.f32 %v376_v34, %v10935_v2  ;;  %v466_v36 = vadd.f32 %v465_v37, %v10935_v2 }
  0xdf   :  { %v2351_v48 = vmax.f32 %v375_v38, 0.0  ;;  %v2353_v49 = vmax.f32 %v464_v33, 0.0 }
  0xe0   :  { %v380_v40 = vpop.f32.mrb[2].mxu0  ;;  %v469_v41 = vpop.f32.mrb[2].mxu1  ;;  %v2352_v52 = vmax.f32 %v377_v35, 0.0  ;;  %v2354_v53 = vmax.f32 %v466_v36, 0.0 }
  0xe1   :  { %v381_v42 = vadd.f32 %v380_v40, %v10937_v15  ;;  %v470_v43 = vadd.f32 %v469_v41, %v10937_v15  ;;  %v382_v44 = vpop.f32.mrb[3].mxu0  ;;  %v471_v45 = vpop.f32.mrb[3].mxu1 }
  0xe2   :  { %v383_v46 = vadd.f32 %v382_v44, %v10937_v15  ;;  %v472_v47 = vadd.f32 %v471_v45, %v10937_v15 }
  0xe3   :  { %v2396_v50 = vmax.f32 %v381_v42, 0.0  ;;  %v2398_v51 = vmax.f32 %v470_v43, 0.0 }
  0xe4   :  { %v2397_v54 = vmax.f32 %v383_v46, 0.0  ;;  %v2399_v55 = vmax.f32 %v472_v47, 0.0  ;;  %v386_v56 = vpop.f32.mrb[4].mxu0  ;;  %v475_v57 = vpop.f32.mrb[4].mxu1 }
  0xe5   :  { %v10949_v58 = vpack.c.bf16 %v2396_v50, %v2351_v48  ;;  %v10951_v59 = vpack.c.bf16 %v2398_v51, %v2353_v49  ;;  %v388_v60 = vpop.f32.mrb[5].mxu0  ;;  %v477_v61 = vpop.f32.mrb[5].mxu1  ;;  %v387_v1 = vadd.f32 %v386_v56, %v10941_v39  ;;  %v476_v4 = vadd.f32 %v475_v57, %v10941_v39 }
  0xe6   :  { %v10953_v62 = vpack.c.bf16 %v2397_v54, %v2352_v52  ;;  %v10955_v63 = vpack.c.bf16 %v2399_v55, %v2354_v53  ;;  %v389_v5 = vadd.f32 %v388_v60, %v10941_v39  ;;  %v478_v6 = vadd.f32 %v477_v61, %v10941_v39 }
  0xe7   :  { %v2441_v16 = vmax.f32 %v387_v1, 0.0  ;;  %v2443_v17 = vmax.f32 %v476_v4, 0.0 }
  0xe8   :  { %v392_v7 = vpop.f32.mrb[6].mxu0  ;;  %v481_v8 = vpop.f32.mrb[6].mxu1  ;;  %v2442_v20 = vmax.f32 %v389_v5, 0.0  ;;  %v2444_v21 = vmax.f32 %v478_v6, 0.0 }
  0xe9   :  { %v393_v9 = vadd.f32 %v392_v7, %v10957_v0  ;;  %v482_v10 = vadd.f32 %v481_v8, %v10957_v0  ;;  %v394_v11 = vpop.f32.mrb[7].mxu0  ;;  %v483_v12 = vpop.f32.mrb[7].mxu1 }
  0xea   :  { %v395_v13 = vadd.f32 %v394_v11, %v10957_v0  ;;  %v484_v14 = vadd.f32 %v483_v12, %v10957_v0 }
  0xeb   :  { %v2486_v18 = vmax.f32 %v393_v9, 0.0  ;;  %v2488_v19 = vmax.f32 %v482_v10, 0.0 }
  0xec   :  { %v2487_v22 = vmax.f32 %v395_v13, 0.0  ;;  %v2489_v23 = vmax.f32 %v484_v14, 0.0  ;;  %v552_v24 = vpop.f32.mrb[8].mxu0  ;;  %v641_v25 = vpop.f32.mrb[8].mxu1 }
  0xed   :  { %v10967_v26 = vpack.c.bf16 %v2486_v18, %v2441_v16  ;;  %v10969_v27 = vpack.c.bf16 %v2488_v19, %v2443_v17  ;;  %v554_v28 = vpop.f32.mrb[9].mxu0  ;;  %v643_v29 = vpop.f32.mrb[9].mxu1  ;;  %v553_v32 = vadd.f32 %v552_v24, %v10935_v2  ;;  %v642_v34 = vadd.f32 %v641_v25, %v10935_v2 }
  0xee   :  { %v10971_v30 = vpack.c.bf16 %v2487_v22, %v2442_v20  ;;  %v10973_v31 = vpack.c.bf16 %v2489_v23, %v2444_v21  ;;  %v555_v37 = vadd.f32 %v554_v28, %v10935_v2  ;;  %v644_v38 = vadd.f32 %v643_v29, %v10935_v2 }
  0xef   :  { %v2355_v45 = vmax.f32 %v553_v32, 0.0  ;;  %v2357_v46 = vmax.f32 %v642_v34, 0.0 }
  0xf0   :  { %v558_v33 = vpop.f32.mrb[10].mxu0  ;;  %v647_v35 = vpop.f32.mrb[10].mxu1  ;;  %v2356_v49 = vmax.f32 %v555_v37, 0.0  ;;  %v2358_v50 = vmax.f32 %v644_v38, 0.0 }
  0xf1   :  { %v559_v36 = vadd.f32 %v558_v33, %v10937_v15  ;;  %v648_v40 = vadd.f32 %v647_v35, %v10937_v15  ;;  %v560_v41 = vpop.f32.mrb[11].mxu0  ;;  %v649_v42 = vpop.f32.mrb[11].mxu1 }
  0xf2   :  { %v561_v43 = vadd.f32 %v560_v41, %v10937_v15  ;;  %v650_v44 = vadd.f32 %v649_v42, %v10937_v15 }
  0xf3   :  { %v2400_v47 = vmax.f32 %v559_v36, 0.0  ;;  %v2402_v48 = vmax.f32 %v648_v40, 0.0 }
  0xf4   :  { %v2401_v51 = vmax.f32 %v561_v43, 0.0  ;;  %v2403_v52 = vmax.f32 %v650_v44, 0.0  ;;  %v564_v53 = vpop.f32.mrb[12].mxu0  ;;  %v653_v54 = vpop.f32.mrb[12].mxu1  ;;  %v11006_v44 = vld [vmem:[%s14681_s3 + $0x20] sm:$0xff] }
  0xf5   :  { %v10983_v55 = vpack.c.bf16 %v2400_v47, %v2355_v45  ;;  %v8796_v56 = vpack.c.bf16 %v2402_v48, %v2357_v46  ;;  %v566_v57 = vpop.f32.mrb[13].mxu0  ;;  %v655_v60 = vpop.f32.mrb[13].mxu1  ;;  %v565_v4 = vadd.f32 %v564_v53, %v10941_v39  ;;  %v654_v5 = vadd.f32 %v653_v54, %v10941_v39 }
  0xf6   :  { %v8798_v61 = vpack.c.bf16 %v2401_v51, %v2356_v49  ;;  %v10985_v1 = vpack.c.bf16 %v2403_v52, %v2358_v50  ;;  %v567_v6 = vadd.f32 %v566_v57, %v10941_v39  ;;  %v656_v7 = vadd.f32 %v655_v60, %v10941_v39 }
  0xf7   :  { %8797 = vmatprep.subr.bf16.mxu1 %v8796_v56  ;;  %v2445_v17 = vmax.f32 %v565_v4, 0.0  ;;  %v2447_v18 = vmax.f32 %v654_v5, 0.0  ;;  %v11017_v56 = vld [vmem:[%s14681_s3 + $0x28] sm:$0xff] }
  0xf8   :  { %v570_v8 = vpop.f32.mrb[14].mxu0  ;;  %v659_v9 = vpop.f32.mrb[14].mxu1  ;;  %8799 = vmatpush1.bf16.msra.mxu1 %v8798_v61  ;;  %v2446_v21 = vmax.f32 %v567_v6, 0.0  ;;  %v2448_v22 = vmax.f32 %v656_v7, 0.0 }
  0xf9   :  { %v571_v10 = vadd.f32 %v570_v8, %v10957_v0  ;;  %v660_v11 = vadd.f32 %v659_v9, %v10957_v0  ;;  %v572_v12 = vpop.f32.mrb[15].mxu0  ;;  %v661_v13 = vpop.f32.mrb[15].mxu1 }
  0xfa   :  { %v573_v14 = vadd.f32 %v572_v12, %v10957_v0  ;;  %v662_v16 = vadd.f32 %v661_v13, %v10957_v0 }
  0xfb   :  { %v2490_v19 = vmax.f32 %v571_v10, 0.0  ;;  %v2492_v20 = vmax.f32 %v660_v11, 0.0 }
  0xfc   :  { %v2491_v23 = vmax.f32 %v573_v14, 0.0  ;;  %v2493_v24 = vmax.f32 %v662_v16, 0.0  ;;  %v730_v25 = vpop.f32.mrb[16].mxu0  ;;  %v819_v28 = vpop.f32.mrb[16].mxu1 }
  0xfd   :  { %v10995_v29 = vpack.c.bf16 %v2490_v19, %v2445_v17  ;;  %v8800_v32 = vpack.c.bf16 %v2492_v20, %v2447_v18  ;;  %v732_v34 = vpop.f32.mrb[17].mxu0  ;;  %v821_v37 = vpop.f32.mrb[17].mxu1  ;;  %v731_v35 = vadd.f32 %v730_v25, %v10935_v2  ;;  %v820_v36 = vadd.f32 %v819_v28, %v10935_v2  ;;  %v11034_v20 = vld [vmem:[%s14681_s3 + $0x30] sm:$0xff] }
  0xfe   :  { %v8802_v38 = vpack.c.bf16 %v2491_v23, %v2446_v21  ;;  %v10997_v33 = vpack.c.bf16 %v2493_v24, %v2448_v22  ;;  %v733_v40 = vadd.f32 %v732_v34, %v10935_v2  ;;  %v822_v41 = vadd.f32 %v821_v37, %v10935_v2 }
  0xff   :  { %8801 = vmatprep.subr.bf16.mxu1 %v8800_v32  ;;  %v2359_v51 = vmax.f32 %v731_v35, 0.0  ;;  %v2361_v52 = vmax.f32 %v820_v36, 0.0 }
 0x100   :  { %v736_v42 = vpop.f32.mrb[18].mxu0  ;;  %v825_v43 = vpop.f32.mrb[18].mxu1  ;;  %8803 = vmatpush1.bf16.msra.mxu1 %v8802_v38  ;;  %v2360_v57 = vmax.f32 %v733_v40, 0.0  ;;  %v2362_v60 = vmax.f32 %v822_v41, 0.0  ;;  %v11046_v38 = vld [vmem:[%s14681_s3 + $0x38] sm:$0xff] }
 0x101   :  { %v737_v45 = vadd.f32 %v736_v42, %v10937_v15  ;;  %v826_v46 = vadd.f32 %v825_v43, %v10937_v15  ;;  %v738_v47 = vpop.f32.mrb[19].mxu0  ;;  %v827_v48 = vpop.f32.mrb[19].mxu1 }
 0x102   :  { %v739_v49 = vadd.f32 %v738_v47, %v10937_v15  ;;  %v828_v50 = vadd.f32 %v827_v48, %v10937_v15 }
 0x103   :  { %v2404_v53 = vmax.f32 %v737_v45, 0.0  ;;  %v2406_v54 = vmax.f32 %v826_v46, 0.0  ;;  %8204 = vmatmul.mubr.msk.f32.vlgmr.msra.gmra.mrb[88].mxu1 %vm2540_vm4, %v11006_v44 }
 0x104   :  { %v2405_v61 = vmax.f32 %v739_v49, 0.0  ;;  %v2407_v4 = vmax.f32 %v828_v50, 0.0  ;;  %v742_v5 = vpop.f32.mrb[20].mxu0  ;;  %v831_v6 = vpop.f32.mrb[20].mxu1  ;;  %2623 = vmatprep.mubr.f32.mxu1 %v10183_v3 }
 0x105   :  { %v8804_v7 = vpack.c.bf16 %v2404_v53, %v2359_v51  ;;  %v11020_v8 = vpack.c.bf16 %v2406_v54, %v2361_v52  ;;  %v744_v9 = vpop.f32.mrb[21].mxu0  ;;  %v833_v10 = vpop.f32.mrb[21].mxu1  ;;  %v743_v13 = vadd.f32 %v742_v5, %v10941_v39  ;;  %v832_v14 = vadd.f32 %v831_v6, %v10941_v39 }
 0x106   :  { %v8812_v11 = vpack.c.bf16 %v2405_v61, %v2360_v57  ;;  %v11022_v12 = vpack.c.bf16 %v2407_v4, %v2362_v60  ;;  %v745_v16 = vadd.f32 %v744_v9, %v10941_v39  ;;  %v834_v17 = vadd.f32 %v833_v10, %v10941_v39 }
 0x107   :  { %8805 = vmatprep.subr.bf16.mxu0 %v8804_v7  ;;  %8205 = vmatmul.mubr.msk.f32.gmra.mrb[90].mxu1 %vm2540_vm4, %v11017_v56  ;;  %v2451_v32 = vmax.f32 %v832_v14, 0.0 }
 0x108   :  { %v748_v18 = vpop.f32.mrb[22].mxu0  ;;  %v837_v19 = vpop.f32.mrb[22].mxu1  ;;  %8807 = vmatpush1.bf16.msra.mxu0 %v10985_v1  ;;  %8813 = vmatprep.subr.bf16.mxu1 %v8812_v11  ;;  %v2449_v1 = vmax.f32 %v743_v13, 0.0  ;;  %v2450_v35 = vmax.f32 %v745_v16, 0.0  ;;  %v2452_v36 = vmax.f32 %v834_v17, 0.0 }
 0x109   :  { %v749_v21 = vadd.f32 %v748_v18, %v10957_v0  ;;  %v838_v22 = vadd.f32 %v837_v19, %v10957_v0  ;;  %v750_v23 = vpop.f32.mrb[23].mxu0  ;;  %v839_v24 = vpop.f32.mrb[23].mxu1  ;;  %8815 = vmatpush3.bf16.msra.mxu1 %v8812_v11  ;;  %2629 = vmatprep.mubr.f32.mxu1 %v10183_v3 }
 0x10a   :  { %v751_v25 = vadd.f32 %v750_v23, %v10957_v0  ;;  %v840_v28 = vadd.f32 %v839_v24, %v10957_v0 }
 0x10b   :  { %v2494_v34 = vmax.f32 %v749_v21, 0.0  ;;  %v2496_v37 = vmax.f32 %v838_v22, 0.0  ;;  %8206 = vmatmul.mubr.msk.f32.gmra.mrb[92].mxu1 %vm2540_vm4, %v11034_v20 }
 0x10c   :  { %v2495_v40 = vmax.f32 %v751_v25, 0.0  ;;  %v2497_v41 = vmax.f32 %v840_v28, 0.0  ;;  %v908_v42 = vpop.f32.mrb[24].mxu0  ;;  %v997_v43 = vpop.f32.mrb[24].mxu1  ;;  %2635 = vmatprep.mubr.f32.mxu1 %v10183_v3 }
 0x10d   :  { %v8808_v45 = vpack.c.bf16 %v2494_v34, %v2449_v1  ;;  %v11049_v46 = vpack.c.bf16 %v2496_v37, %v2451_v32  ;;  %v910_v47 = vpop.f32.mrb[25].mxu0  ;;  %v999_v48 = vpop.f32.mrb[25].mxu1  ;;  %v909_v51 = vadd.f32 %v908_v42, %v10935_v2  ;;  %v998_v52 = vadd.f32 %v997_v43, %v10935_v2 }
 0x10e   :  { %v8816_v49 = vpack.c.bf16 %v2495_v40, %v2450_v35  ;;  %v11051_v50 = vpack.c.bf16 %v2497_v41, %v2452_v36  ;;  %v911_v53 = vadd.f32 %v910_v47, %v10935_v2  ;;  %v1000_v54 = vadd.f32 %v999_v48, %v10935_v2  ;;  %v11102_v36 = vld [vmem:[%s14681_s3] sm:$0xff] }
 0x10f   :  { %8809 = vmatprep.subr.bf16.mxu0 %v8808_v45  ;;  %8207 = vmatmul.mubr.msk.f32.gmra.mrb[94].mxu1 %vm2540_vm4, %v11046_v38  ;;  %v2365_v10 = vmax.f32 %v998_v52, 0.0 }
 0x110   :  { %v914_v57 = vpop.f32.mrb[26].mxu0  ;;  %v1003_v60 = vpop.f32.mrb[26].mxu1  ;;  %8811 = vmatpush1.bf16.msra.mxu0 %v10997_v33  ;;  %8817 = vmatprep.subr.bf16.mxu1 %v8816_v49  ;;  %v2363_v33 = vmax.f32 %v909_v51, 0.0  ;;  %v2364_v14 = vmax.f32 %v911_v53, 0.0  ;;  %v2366_v16 = vmax.f32 %v1000_v54, 0.0 }
 0x111   :  { %v915_v61 = vadd.f32 %v914_v57, %v10937_v15  ;;  %v1004_v4 = vadd.f32 %v1003_v60, %v10937_v15  ;;  %v916_v5 = vpop.f32.mrb[27].mxu0  ;;  %v1005_v6 = vpop.f32.mrb[27].mxu1  ;;  %8819 = vmatpush3.bf16.msra.mxu1 %v8816_v49  ;;  %8829 = vmatprep.subr.bf16.mxu0 %v10955_v63 }
 0x112   :  { %v917_v7 = vadd.f32 %v916_v5, %v10937_v15  ;;  %v1006_v9 = vadd.f32 %v1005_v6, %v10937_v15  ;;  %8821 = vmatprep.subr.bf16.mxu1 %v10953_v62  ;;  %8526 = vmatprep.mubr.msk.f32.mxu1 %vm2540_vm4, %v11006_v44 }
 0x113   :  { %v2408_v11 = vmax.f32 %v915_v61, 0.0  ;;  %v2410_v13 = vmax.f32 %v1004_v4, 0.0  ;;  %8208 = vmatmul.mubr.msk.f32.vlgmr.msra.gmra.mrb[92].mxu0 %vm2540_vm4, %v11006_v44 }
 0x114   :  { %v2409_v17 = vmax.f32 %v917_v7, 0.0  ;;  %v2411_v63 = vmax.f32 %v1006_v9, 0.0  ;;  %v920_v18 = vpop.f32.mrb[28].mxu0  ;;  %v1009_v19 = vpop.f32.mrb[28].mxu1  ;;  %8527 = vmatmul.mubr.msk.f32.vlgmr.msra.gmra.mrb[96].mxu1 %vm2540_vm4, %v11017_v56  ;;  %8831 = vmatpush1.bf16.msra.mxu0 %v10951_v59 }
 0x115   :  { %v11073_v62 = vpack.c.bf16 %v2408_v11, %v2363_v33  ;;  %v11075_v21 = vpack.c.bf16 %v2410_v13, %v2365_v10  ;;  %v922_v22 = vpop.f32.mrb[29].mxu0  ;;  %v1011_v23 = vpop.f32.mrb[29].mxu1  ;;  %8823 = vmatpush1.bf16.msra.mxu1 %v10949_v58  ;;  %8833 = vmatprep.subr.bf16.mxu0 %v10973_v31  ;;  %v921_v25 = vadd.f32 %v920_v18, %v10941_v39  ;;  %v2533_v18 = vld [vmem:[%s14681_s3 + $0x10] sm:$0xff] }
 0x116   :  { %v8852_v44 = vpack.c.bf16 %v2409_v17, %v2364_v14  ;;  %v11078_v24 = vpack.c.bf16 %v2411_v63, %v2366_v16  ;;  %v1010_v28 = vadd.f32 %v1009_v19, %v10941_v39  ;;  %2712 = vmatprep.mubr.f32.mxu0 %v10183_v3  ;;  %8825 = vmatprep.subr.bf16.mxu1 %v10971_v30 }
 0x117   :  { %v923_v59 = vadd.f32 %v922_v22, %v10941_v39  ;;  %v1012_v1 = vadd.f32 %v1011_v23, %v10941_v39  ;;  %8209 = vmatmul.mubr.msk.f32.gmra.mrb[94].mxu0 %vm2540_vm4, %v11017_v56  ;;  %8529 = vmatprep.mubr.msk.f32.mxu1 %vm2540_vm4, %v11034_v20  ;;  %v2453_v40 = vmax.f32 %v921_v25, 0.0 }
 0x118   :  { %v926_v58 = vpop.f32.mrb[30].mxu0  ;;  %v1015_v31 = vpop.f32.mrb[30].mxu1  ;;  %8530 = vmatmul.mubr.msk.f32.gmra.mrb[98].mxu1 %vm2540_vm4, %v11046_v38  ;;  %8835 = vmatpush1.bf16.msra.mxu0 %v10969_v27  ;;  %v2455_v41 = vmax.f32 %v1010_v28, 0.0 }
 0x119   :  { %v927_v32 = vadd.f32 %v926_v58, %v10957_v0  ;;  %v1016_v34 = vadd.f32 %v1015_v31, %v10957_v0  ;;  %v928_v30 = vpop.f32.mrb[31].mxu0  ;;  %v1017_v37 = vpop.f32.mrb[31].mxu1  ;;  %8827 = vmatpush1.bf16.msra.mxu1 %v10967_v26  ;;  %8853 = vmatprep.subr.bf16.mxu0 %v8852_v44  ;;  %v2454_v27 = vmax.f32 %v923_v59, 0.0  ;;  %v2456_v45 = vmax.f32 %v1012_v1, 0.0 }
 0x11a   :  { %v929_v35 = vadd.f32 %v928_v30, %v10957_v0  ;;  %v1018_v56 = vadd.f32 %v1017_v37, %v10957_v0  ;;  %2718 = vmatprep.mubr.f32.mxu0 %v10183_v3  ;;  %8837 = vmatprep.subr.bf16.mxu1 %v10983_v55 }
 0x11b   :  { %v2498_v42 = vmax.f32 %v927_v32, 0.0  ;;  %v2500_v43 = vmax.f32 %v1016_v34, 0.0  ;;  %8210 = vmatmul.mubr.msk.f32.gmra.mrb[96].mxu0 %vm2540_vm4, %v11034_v20  ;;  %2892 = vmatprep.mubr.f32.mxu1 %v10183_v3  ;;  %v11119_v20 = vld [vmem:[%s14681_s3 + $0x8] sm:$0xff] }
 0x11c   :  { %v2499_v47 = vmax.f32 %v929_v35, 0.0  ;;  %v2501_v48 = vmax.f32 %v1018_v56, 0.0  ;;  %v1086_v26 = vpop.f32.mrb[32].mxu0  ;;  %v1175_v49 = vpop.f32.mrb[32].mxu1  ;;  %8216 = vmatmul.mubr.msk.f32.vlgmr.msra.gmra.mrb[88].mxu1 %vm2540_vm4, %v11102_v36  ;;  %2724 = vmatprep.mubr.f32.mxu0 %v10183_v3 }
 0x11d   :  { %v8858_v51 = vpack.c.bf16 %v2498_v42, %v2453_v40  ;;  %v11109_v52 = vpack.c.bf16 %v2500_v43, %v2455_v41  ;;  %v1088_v53 = vpop.f32.mrb[33].mxu0  ;;  %v1177_v54 = vpop.f32.mrb[33].mxu1  ;;  %8839 = vmatpush3.bf16.msra.mxu1 %v10983_v55  ;;  %v1087_v61 = vadd.f32 %v1086_v26, %v10935_v2  ;;  %v1176_v4 = vadd.f32 %v1175_v49, %v10935_v2 }
 0x11e   :  { %v8856_v57 = vpack.c.bf16 %v2499_v47, %v2454_v27  ;;  %v11113_v60 = vpack.c.bf16 %v2501_v48, %v2456_v45  ;;  %8841 = vmatprep.subr.bf16.mxu1 %v10995_v29  ;;  %v1089_v5 = vadd.f32 %v1088_v53, %v10935_v2  ;;  %v1178_v6 = vadd.f32 %v1177_v54, %v10935_v2 }
 0x11f   :  { %8211 = vmatmul.mubr.msk.f32.gmra.mrb[98].mxu0 %vm2540_vm4, %v11046_v38  ;;  %2898 = vmatprep.mubr.f32.mxu1 %v10183_v3  ;;  %v2367_v38 = vmax.f32 %v1087_v61, 0.0  ;;  %v2369_v16 = vmax.f32 %v1176_v4, 0.0 }
 0x120   :  { %v1092_v55 = vpop.f32.mrb[34].mxu0  ;;  %v1181_v7 = vpop.f32.mrb[34].mxu1  ;;  %8217 = vmatmul.mubr.msk.f32.gmra.mrb[90].mxu1 %vm2540_vm4, %v11119_v20  ;;  %2981 = vmatprep.mubr.f32.mxu0 %v10183_v3  ;;  %v2368_v19 = vmax.f32 %v1089_v5, 0.0  ;;  %v2370_v22 = vmax.f32 %v1178_v6, 0.0 }
 0x121   :  { %v1093_v9 = vadd.f32 %v1092_v55, %v10937_v15  ;;  %v1182_v33 = vadd.f32 %v1181_v7, %v10937_v15  ;;  %v1094_v10 = vpop.f32.mrb[35].mxu0  ;;  %v1183_v11 = vpop.f32.mrb[35].mxu1  ;;  %8843 = vmatpush3.bf16.msra.mxu1 %v10995_v29  ;;  %2904 = vmatprep.mubr.f32.mxu1 %v10183_v3 }
 0x122   :  { %v1095_v13 = vadd.f32 %v1094_v10, %v10937_v15  ;;  %v1184_v14 = vadd.f32 %v1183_v11, %v10937_v15  ;;  %8845 = vmatprep.subr.bf16.mxu1 %v11022_v12 }
 0x123   :  { %v2412_v17 = vmax.f32 %v1093_v9, 0.0  ;;  %v2414_v63 = vmax.f32 %v1182_v33, 0.0  ;;  %8220 = vmatmul.mubr.msk.f32.vlgmr.msra.gmra.mrb[92].mxu0 %vm2540_vm4, %v11102_v36 }
 0x124   :  { %v2413_v23 = vmax.f32 %v1095_v13, 0.0  ;;  %v2415_v44 = vmax.f32 %v1184_v14, 0.0  ;;  %v1098_v29 = vpop.f32.mrb[36].mxu0  ;;  %v1187_v25 = vpop.f32.mrb[36].mxu1  ;;  %8855 = vmatpush1.bf16.msra.mxu0 %v11073_v62  ;;  %8218 = vmatmul.mubr.msk.f32.gmra.mrb[92].mxu1 %vm2540_vm4, %v2533_v18  ;;  %v2534_v62 = vld [vmem:[%s14681_s3 + $0x18] sm:$0xff] }
 0x125   :  { %v11145_v28 = vpack.c.bf16 %v2412_v17, %v2367_v38  ;;  %v8876_v59 = vpack.c.bf16 %v2414_v63, %v2369_v16  ;;  %v1100_v1 = vpop.f32.mrb[37].mxu0  ;;  %v1189_v12 = vpop.f32.mrb[37].mxu1  ;;  %8857 = vmatprep.subr.bf16.mxu0 %v8856_v57  ;;  %v1099_v32 = vadd.f32 %v1098_v29, %v10941_v39  ;;  %v1188_v34 = vadd.f32 %v1187_v25, %v10941_v39 }
 0x126   :  { %v11148_v58 = vpack.c.bf16 %v2413_v23, %v2368_v19  ;;  %v11150_v31 = vpack.c.bf16 %v2415_v44, %v2370_v22  ;;  %2987 = vmatprep.mubr.f32.mxu0 %v10183_v3  ;;  %2910 = vmatprep.mubr.f32.mxu1 %v10183_v3  ;;  %v1101_v30 = vadd.f32 %v1100_v1, %v10941_v39 }
 0x127   :  { %v1190_v37 = vadd.f32 %v1189_v12, %v10941_v39  ;;  %8221 = vmatmul.mubr.msk.f32.gmra.mrb[94].mxu0 %vm2540_vm4, %v11119_v20  ;;  %v2457_v47 = vmax.f32 %v1099_v32, 0.0  ;;  %v2459_v48 = vmax.f32 %v1188_v34, 0.0 }
 0x128   :  { %v1104_v35 = vpop.f32.mrb[38].mxu0  ;;  %v1193_v56 = vpop.f32.mrb[38].mxu1  ;;  %8859 = vmatpush1.bf16.msra.mxu0 %v8858_v51  ;;  %2993 = vmatprep.mubr.f32.mxu0 %v10183_v3  ;;  %v2458_v51 = vmax.f32 %v1101_v30, 0.0 }
 0x129   :  { %v1105_v40 = vadd.f32 %v1104_v35, %v10957_v0  ;;  %v1194_v41 = vadd.f32 %v1193_v56, %v10957_v0  ;;  %v1106_v42 = vpop.f32.mrb[39].mxu0  ;;  %v1195_v43 = vpop.f32.mrb[39].mxu1  ;;  %8219 = vmatmul.mubr.msk.f32.gmra.mrb[94].mxu1 %vm2540_vm4, %v2534_v62  ;;  %8877 = vmatprep.subr.bf16.mxu0 %v8876_v59  ;;  %v2460_v53 = vmax.f32 %v1190_v37, 0.0  ;;  %v11216_v56 = vld [vmem:[%s14681_s3 + $0x48] sm:$0xff] }
 0x12a   :  { %v1107_v27 = vadd.f32 %v1106_v42, %v10957_v0  ;;  %v1196_v45 = vadd.f32 %v1195_v43, %v10957_v0  ;;  %8540 = vmatprep.mubr.msk.f32.mxu1 %vm2540_vm4, %v11102_v36 }
 0x12b   :  { %v2502_v26 = vmax.f32 %v1105_v40, 0.0  ;;  %v2504_v49 = vmax.f32 %v1194_v41, 0.0  ;;  %8222 = vmatmul.mubr.msk.f32.gmra.mrb[96].mxu0 %vm2540_vm4, %v2533_v18 }
 0x12c   :  { %v2503_v54 = vmax.f32 %v1107_v27, 0.0  ;;  %v2505_v57 = vmax.f32 %v1196_v45, 0.0  ;;  %v1264_v61 = vpop.f32.mrb[40].mxu0  ;;  %v1353_v4 = vpop.f32.mrb[40].mxu1  ;;  %2999 = vmatprep.mubr.f32.mxu0 %v10183_v3 }
 0x12d   :  { %v11173_v5 = vpack.c.bf16 %v2502_v26, %v2457_v47  ;;  %v8880_v6 = vpack.c.bf16 %v2504_v49, %v2459_v48  ;;  %v1266_v55 = vpop.f32.mrb[41].mxu0  ;;  %v1355_v7 = vpop.f32.mrb[41].mxu1  ;;  %8541 = vmatmul.mubr.msk.f32.vlgmr.msra.gmra.mrb[96].mxu1 %vm2540_vm4, %v11119_v20  ;;  %v1265_v36 = vadd.f32 %v1264_v61, %v10935_v2  ;;  %v1354_v10 = vadd.f32 %v1353_v4, %v10935_v2 }
 0x12e   :  { %v8882_v9 = vpack.c.bf16 %v2503_v54, %v2458_v51  ;;  %v11176_v33 = vpack.c.bf16 %v2505_v57, %v2460_v53  ;;  %8847 = vmatpush1.bf16.msra.mxu1 %v11020_v8  ;;  %8543 = vmatprep.mubr.msk.f32.mxu1 %vm2540_vm4, %v2533_v18  ;;  %v1267_v11 = vadd.f32 %v1266_v55, %v10935_v2  ;;  %v11194_v8 = vld [vmem:[%s14681_s3 + $0x40] sm:$0xff]  ;;  %v11237_v51 = vld [vmem:[%s14681_s3 + $0x50] sm:$0xff] }
 0x12f   :  { %v1356_v13 = vadd.f32 %v1355_v7, %v10935_v2  ;;  %8849 = vmatprep.subr.bf16.mxu1 %v11051_v50  ;;  %8223 = vmatmul.mubr.msk.f32.gmra.mrb[98].mxu0 %vm2540_vm4, %v2534_v62  ;;  %v2371_v19 = vmax.f32 %v1265_v36, 0.0  ;;  %v2373_v22 = vmax.f32 %v1354_v10, 0.0 }
 0x130   :  { %v1270_v14 = vpop.f32.mrb[42].mxu0  ;;  %v1359_v38 = vpop.f32.mrb[42].mxu1  ;;  %3261 = vmatprep.mubr.f32.mxu0 %v10183_v3  ;;  %v2372_v29 = vmax.f32 %v1267_v11, 0.0 }
 0x131   :  { %v1271_v20 = vadd.f32 %v1270_v14, %v10937_v15  ;;  %v1360_v16 = vadd.f32 %v1359_v38, %v10937_v15  ;;  %v1272_v17 = vpop.f32.mrb[43].mxu0  ;;  %v1361_v63 = vpop.f32.mrb[43].mxu1  ;;  %8544 = vmatmul.mubr.msk.f32.gmra.mrb[98].mxu1 %vm2540_vm4, %v2534_v62  ;;  %v2374_v25 = vmax.f32 %v1356_v13, 0.0 }
 0x132   :  { %v1273_v50 = vadd.f32 %v1272_v17, %v10937_v15  ;;  %v1362_v18 = vadd.f32 %v1361_v63, %v10937_v15  ;;  %8851 = vmatpush1.bf16.msra.mxu1 %v11049_v46  ;;  %3172 = vmatprep.mubr.f32.mxu1 %v10183_v3 }
 0x133   :  { %v2416_v23 = vmax.f32 %v1271_v20, 0.0  ;;  %v2418_v44 = vmax.f32 %v1360_v16, 0.0  ;;  %8861 = vmatprep.subr.bf16.mxu1 %v11075_v21  ;;  %8236 = vmatmul.mubr.msk.f32.vlgmr.msra.gmra.mrb[92].mxu0 %vm2540_vm4, %v11194_v8 }
 0x134   :  { %v2417_v59 = vmax.f32 %v1273_v50, 0.0  ;;  %v2419_v1 = vmax.f32 %v1362_v18, 0.0  ;;  %v1276_v12 = vpop.f32.mrb[44].mxu0  ;;  %v1365_v32 = vpop.f32.mrb[44].mxu1  ;;  %8879 = vmatpush1.bf16.msra.mxu0 %v11148_v58  ;;  %3267 = vmatprep.mubr.f32.mxu0 %v10183_v3 }
 0x135   :  { %v11204_v34 = vpack.c.bf16 %v2416_v23, %v2371_v19  ;;  %v11206_v62 = vpack.c.bf16 %v2418_v44, %v2373_v22  ;;  %v1278_v46 = vpop.f32.mrb[45].mxu0  ;;  %v1367_v30 = vpop.f32.mrb[45].mxu1  ;;  %8232 = vmatmul.mubr.msk.f32.vlgmr.msra.gmra.mrb[88].mxu1 %vm2540_vm4, %v11194_v8  ;;  %8881 = vmatprep.subr.bf16.mxu0 %v8880_v6  ;;  %v1277_v40 = vadd.f32 %v1276_v12, %v10941_v39 }
 0x136   :  { %v11209_v37 = vpack.c.bf16 %v2417_v59, %v2372_v29  ;;  %v8900_v35 = vpack.c.bf16 %v2419_v1, %v2374_v25  ;;  %v1366_v41 = vadd.f32 %v1365_v32, %v10941_v39  ;;  %8863 = vmatpush3.bf16.msra.mxu1 %v11075_v21  ;;  %v1279_v58 = vadd.f32 %v1278_v46, %v10941_v39  ;;  %v11270_v59 = vld [vmem:[%s14681_s3 + $0x60] sm:$0xff] }
 0x137   :  { %v1368_v42 = vadd.f32 %v1367_v30, %v10941_v39  ;;  %8865 = vmatprep.subr.bf16.mxu1 %v11109_v52  ;;  %3178 = vmatprep.mubr.f32.mxu1 %v10183_v3  ;;  %v2461_v53 = vmax.f32 %v1277_v40, 0.0 }
 0x138   :  { %v1282_v43 = vpop.f32.mrb[46].mxu0  ;;  %v1371_v27 = vpop.f32.mrb[46].mxu1  ;;  %8237 = vmatmul.mubr.msk.f32.gmra.mrb[94].mxu0 %vm2540_vm4, %v11216_v56  ;;  %v2463_v54 = vmax.f32 %v1366_v41, 0.0  ;;  %v2462_v4 = vmax.f32 %v1279_v58, 0.0 }
 0x139   :  { %v1283_v45 = vadd.f32 %v1282_v43, %v10957_v0  ;;  %v1372_v47 = vadd.f32 %v1371_v27, %v10957_v0  ;;  %v1284_v21 = vpop.f32.mrb[47].mxu0  ;;  %v1373_v48 = vpop.f32.mrb[47].mxu1  ;;  %8883 = vmatpush1.bf16.msra.mxu0 %v8882_v9  ;;  %8233 = vmatmul.mubr.msk.f32.gmra.mrb[90].mxu1 %vm2540_vm4, %v11216_v56  ;;  %v2464_v6 = vmax.f32 %v1368_v42, 0.0 }
 0x13a   :  { %v1285_v26 = vadd.f32 %v1284_v21, %v10957_v0  ;;  %v1374_v49 = vadd.f32 %v1373_v48, %v10957_v0  ;;  %8867 = vmatpush3.bf16.msra.mxu1 %v11109_v52  ;;  %8901 = vmatprep.subr.bf16.mxu0 %v8900_v35 }
 0x13b   :  { %v2506_v57 = vmax.f32 %v1283_v45, 0.0  ;;  %v2508_v61 = vmax.f32 %v1372_v47, 0.0  ;;  %8869 = vmatprep.subr.bf16.mxu1 %v11145_v28  ;;  %3273 = vmatprep.mubr.f32.mxu0 %v10183_v3  ;;  %v8231_v28 = vld [vmem:[%s14681_s3 + $0x58] sm:$0xff] }
 0x13c   :  { %v2507_v55 = vmax.f32 %v1285_v26, 0.0  ;;  %v2509_v7 = vmax.f32 %v1374_v49, 0.0  ;;  %v1442_v9 = vpop.f32.mrb[48].mxu0  ;;  %v1531_v36 = vpop.f32.mrb[48].mxu1  ;;  %3184 = vmatprep.mubr.f32.mxu1 %v10183_v3  ;;  %8238 = vmatmul.mubr.msk.f32.gmra.mrb[96].mxu0 %vm2540_vm4, %v11237_v51 }
 0x13d   :  { %v11242_v10 = vpack.c.bf16 %v2506_v57, %v2461_v53  ;;  %v8906_v11 = vpack.c.bf16 %v2508_v61, %v2463_v54  ;;  %v1444_v52 = vpop.f32.mrb[49].mxu0  ;;  %v1533_v13 = vpop.f32.mrb[49].mxu1  ;;  %8234 = vmatmul.mubr.msk.f32.gmra.mrb[92].mxu1 %vm2540_vm4, %v11237_v51  ;;  %v1443_v20 = vadd.f32 %v1442_v9, %v10935_v2  ;;  %v1532_v16 = vadd.f32 %v1531_v36, %v10935_v2  ;;  %v11312_v36 = vld [vmem:[%s14681_s3 + $0x70] sm:$0xff] }
 0x13e   :  { %v11247_v14 = vpack.c.bf16 %v2507_v55, %v2462_v4  ;;  %v8904_v38 = vpack.c.bf16 %v2509_v7, %v2464_v6  ;;  %3279 = vmatprep.mubr.f32.mxu0 %v10183_v3  ;;  %3190 = vmatprep.mubr.f32.mxu1 %v10183_v3  ;;  %v1445_v17 = vadd.f32 %v1444_v52, %v10935_v2 }
 0x13f   :  { %v1534_v63 = vadd.f32 %v1533_v13, %v10935_v2  ;;  %v2375_v1 = vmax.f32 %v1443_v20, 0.0  ;;  %v2377_v12 = vmax.f32 %v1532_v16, 0.0 }
 0x140   :  { %v1448_v50 = vpop.f32.mrb[50].mxu0  ;;  %v1537_v18 = vpop.f32.mrb[50].mxu1  ;;  %8239 = vmatmul.mubr.msk.f32.gmra.mrb[98].mxu0 %vm2540_vm4, %v8231_v28  ;;  %v2376_v30 = vmax.f32 %v1445_v17, 0.0 }
 0x141   :  { %v1449_v19 = vadd.f32 %v1448_v50, %v10937_v15  ;;  %v1538_v22 = vadd.f32 %v1537_v18, %v10937_v15  ;;  %v1450_v23 = vpop.f32.mrb[51].mxu0  ;;  %v1539_v44 = vpop.f32.mrb[51].mxu1  ;;  %8235 = vmatmul.mubr.msk.f32.gmra.mrb[94].mxu1 %vm2540_vm4, %v8231_v28  ;;  %3561 = vmatprep.mubr.f32.mxu0 %v10183_v3  ;;  %v2378_v35 = vmax.f32 %v1534_v63, 0.0 }
 0x142   :  { %v1451_v29 = vadd.f32 %v1450_v23, %v10937_v15  ;;  %v1540_v25 = vadd.f32 %v1539_v44, %v10937_v15  ;;  %8554 = vmatprep.mubr.msk.f32.mxu1 %vm2540_vm4, %v11194_v8 }
 0x143   :  { %v2420_v32 = vmax.f32 %v1449_v19, 0.0  ;;  %v2422_v46 = vmax.f32 %v1538_v22, 0.0 }
 0x144   :  { %v2421_v40 = vmax.f32 %v1451_v29, 0.0  ;;  %v2423_v41 = vmax.f32 %v1540_v25, 0.0  ;;  %v1454_v58 = vpop.f32.mrb[52].mxu0  ;;  %v1543_v42 = vpop.f32.mrb[52].mxu1  ;;  %8252 = vmatmul.mubr.msk.f32.vlgmr.msra.gmra.mrb[92].mxu0 %vm2540_vm4, %v11270_v59 }
 0x145   :  { %v11274_v43 = vpack.c.bf16 %v2420_v32, %v2375_v1  ;;  %v11276_v27 = vpack.c.bf16 %v2422_v46, %v2377_v12  ;;  %v1456_v45 = vpop.f32.mrb[53].mxu0  ;;  %v1545_v47 = vpop.f32.mrb[53].mxu1  ;;  %8903 = vmatpush1.bf16.msra.mxu0 %v11206_v62  ;;  %8555 = vmatmul.mubr.msk.f32.vlgmr.msra.gmra.mrb[96].mxu1 %vm2540_vm4, %v11216_v56  ;;  %v1455_v8 = vadd.f32 %v1454_v58, %v10941_v39  ;;  %v11298_v56 = vld [vmem:[%s14681_s3 + $0x68] sm:$0xff]  ;;  %v11339_v1 = vld [vmem:[%s14681_s3 + $0x78] sm:$0xff] }
 0x146   :  { %v11280_v21 = vpack.c.bf16 %v2421_v40, %v2376_v30  ;;  %v11282_v48 = vpack.c.bf16 %v2423_v41, %v2378_v35  ;;  %v1544_v26 = vadd.f32 %v1543_v42, %v10941_v39  ;;  %8871 = vmatpush1.bf16.msra.mxu1 %v11078_v24  ;;  %8905 = vmatprep.subr.bf16.mxu0 %v8904_v38 }
 0x147   :  { %v1457_v49 = vadd.f32 %v1456_v45, %v10941_v39  ;;  %v1546_v53 = vadd.f32 %v1545_v47, %v10941_v39  ;;  %8873 = vmatprep.subr.bf16.mxu1 %v11173_v5  ;;  %8557 = vmatprep.mubr.msk.f32.mxu1 %vm2540_vm4, %v11237_v51  ;;  %v2465_v6 = vmax.f32 %v1455_v8, 0.0  ;;  %v11354_v45 = vld [vmem:[%s14681_s3 + $0x80] sm:$0xff] }
 0x148   :  { %v1460_v62 = vpop.f32.mrb[54].mxu0  ;;  %v1549_v54 = vpop.f32.mrb[54].mxu1  ;;  %3567 = vmatprep.mubr.f32.mxu0 %v10183_v3  ;;  %v2467_v55 = vmax.f32 %v1544_v26, 0.0 }
 0x149   :  { %v1461_v24 = vadd.f32 %v1460_v62, %v10957_v0  ;;  %v1550_v57 = vadd.f32 %v1549_v54, %v10957_v0  ;;  %v1462_v61 = vpop.f32.mrb[55].mxu0  ;;  %v1551_v4 = vpop.f32.mrb[55].mxu1  ;;  %8907 = vmatpush1.bf16.msra.mxu0 %v8906_v11  ;;  %8558 = vmatmul.mubr.msk.f32.gmra.mrb[98].mxu1 %vm2540_vm4, %v8231_v28  ;;  %v2466_v11 = vmax.f32 %v1457_v49, 0.0  ;;  %v2468_v52 = vmax.f32 %v1546_v53, 0.0 }
 0x14a   :  { %v1463_v5 = vadd.f32 %v1462_v61, %v10957_v0  ;;  %v1552_v51 = vadd.f32 %v1551_v4, %v10957_v0  ;;  %8875 = vmatpush1.bf16.msra.mxu1 %v11113_v60  ;;  %8253 = vmatmul.mubr.msk.f32.gmra.mrb[94].mxu0 %vm2540_vm4, %v11298_v56 }
 0x14b   :  { %v2510_v7 = vmax.f32 %v1461_v24, 0.0  ;;  %v2512_v9 = vmax.f32 %v1550_v57, 0.0  ;;  %8885 = vmatprep.subr.bf16.mxu1 %v11150_v31  ;;  %3472 = vmatprep.mubr.f32.mxu1 %v10183_v3 }
 0x14c   :  { %v2511_v13 = vmax.f32 %v1463_v5, 0.0  ;;  %v2513_v38 = vmax.f32 %v1552_v51, 0.0  ;;  %v1620_v28 = vpop.f32.mrb[56].mxu0  ;;  %v1709_v20 = vpop.f32.mrb[56].mxu1  ;;  %3573 = vmatprep.mubr.f32.mxu0 %v10183_v3 }
 0x14d   :  { %v11316_v16 = vpack.c.bf16 %v2510_v7, %v2465_v6  ;;  %v11318_v60 = vpack.c.bf16 %v2512_v9, %v2467_v55  ;;  %v1622_v17 = vpop.f32.mrb[57].mxu0  ;;  %v1711_v63 = vpop.f32.mrb[57].mxu1  ;;  %8248 = vmatmul.mubr.msk.f32.vlgmr.msra.gmra.mrb[88].mxu1 %vm2540_vm4, %v11270_v59  ;;  %v1621_v19 = vadd.f32 %v1620_v28, %v10935_v2  ;;  %v1710_v22 = vadd.f32 %v1709_v20, %v10935_v2  ;;  %v11378_v9 = vld [vmem:[%s14681_s3 + $0x88] sm:$0xff] }
 0x14e   :  { %v11321_v50 = vpack.c.bf16 %v2511_v13, %v2466_v11  ;;  %v11323_v18 = vpack.c.bf16 %v2513_v38, %v2468_v52  ;;  %8254 = vmatmul.mubr.msk.f32.gmra.mrb[96].mxu0 %vm2540_vm4, %v11312_v36  ;;  %8887 = vmatpush3.bf16.msra.mxu1 %v11150_v31  ;;  %v1623_v23 = vadd.f32 %v1622_v17, %v10935_v2 }
 0x14f   :  { %v1712_v44 = vadd.f32 %v1711_v63, %v10935_v2  ;;  %8889 = vmatprep.subr.bf16.mxu1 %v11176_v33  ;;  %3478 = vmatprep.mubr.f32.mxu1 %v10183_v3  ;;  %v2379_v40 = vmax.f32 %v1621_v19, 0.0  ;;  %v2381_v41 = vmax.f32 %v1710_v22, 0.0 }
 0x150   :  { %v1626_v29 = vpop.f32.mrb[58].mxu0  ;;  %v1715_v25 = vpop.f32.mrb[58].mxu1  ;;  %3579 = vmatprep.mubr.f32.mxu0 %v10183_v3  ;;  %v2380_v47 = vmax.f32 %v1623_v23, 0.0 }
 0x151   :  { %v1627_v12 = vadd.f32 %v1626_v29, %v10937_v15  ;;  %v1716_v31 = vadd.f32 %v1715_v25, %v10937_v15  ;;  %v1628_v32 = vpop.f32.mrb[59].mxu0  ;;  %v1717_v46 = vpop.f32.mrb[59].mxu1  ;;  %8249 = vmatmul.mubr.msk.f32.gmra.mrb[90].mxu1 %vm2540_vm4, %v11298_v56  ;;  %v2382_v8 = vmax.f32 %v1712_v44, 0.0 }
 0x152   :  { %v1629_v30 = vadd.f32 %v1628_v32, %v10937_v15  ;;  %v1718_v35 = vadd.f32 %v1717_v46, %v10937_v15  ;;  %8255 = vmatmul.mubr.msk.f32.gmra.mrb[98].mxu0 %vm2540_vm4, %v11339_v1  ;;  %8891 = vmatpush3.bf16.msra.mxu1 %v11176_v33 }
 0x153   :  { %v2424_v58 = vmax.f32 %v1627_v12, 0.0  ;;  %v2426_v42 = vmax.f32 %v1716_v31, 0.0  ;;  %8893 = vmatprep.subr.bf16.mxu1 %v11209_v37  ;;  %3484 = vmatprep.mubr.f32.mxu1 %v10183_v3 }
 0x154   :  { %v2425_v26 = vmax.f32 %v1629_v30, 0.0  ;;  %v2427_v49 = vmax.f32 %v1718_v35, 0.0  ;;  %v1632_v53 = vpop.f32.mrb[60].mxu0  ;;  %v1721_v62 = vpop.f32.mrb[60].mxu1  ;;  %3861 = vmatprep.mubr.f32.mxu0 %v10183_v3 }
 0x155   :  { %v8924_v54 = vpack.c.bf16 %v2424_v58, %v2379_v40  ;;  %v11358_v24 = vpack.c.bf16 %v2426_v42, %v2381_v41  ;;  %v1634_v33 = vpop.f32.mrb[61].mxu0  ;;  %v1723_v57 = vpop.f32.mrb[61].mxu1  ;;  %8250 = vmatmul.mubr.msk.f32.gmra.mrb[92].mxu1 %vm2540_vm4, %v11312_v36  ;;  %v1633_v37 = vadd.f32 %v1632_v53, %v10941_v39  ;;  %v1722_v5 = vadd.f32 %v1721_v62, %v10941_v39 }
 0x156   :  { %v11361_v61 = vpack.c.bf16 %v2425_v26, %v2380_v47  ;;  %v11363_v4 = vpack.c.bf16 %v2427_v49, %v2382_v8  ;;  %8268 = vmatmul.mubr.msk.f32.vlgmr.msra.gmra.mrb[92].mxu0 %vm2540_vm4, %v11354_v45  ;;  %3490 = vmatprep.mubr.f32.mxu1 %v10183_v3  ;;  %v1635_v51 = vadd.f32 %v1634_v33, %v10941_v39  ;;  %v11418_v26 = vld [vmem:[%s14681_s3 + $0x98] sm:$0xff] }
 0x157   :  { %v1724_v6 = vadd.f32 %v1723_v57, %v10941_v39  ;;  %3867 = vmatprep.mubr.f32.mxu0 %v10183_v3  ;;  %8925 = vmatprep.subr.bf16.mxu0 %v8924_v54  ;;  %v2469_v17 = vmax.f32 %v1633_v37, 0.0  ;;  %v2471_v63 = vmax.f32 %v1722_v5, 0.0  ;;  %v11434_v5 = vld [vmem:[%s14681_s3 + $0xa0] sm:$0xff] }
 0x158   :  { %v1638_v55 = vpop.f32.mrb[62].mxu0  ;;  %v1727_v7 = vpop.f32.mrb[62].mxu1  ;;  %8927 = vmatpush1.bf16.msra.mxu0 %v11282_v48  ;;  %v11394_v48 = vld [vmem:[%s14681_s3 + $0x90] sm:$0xff]  ;;  %v2470_v23 = vmax.f32 %v1635_v51, 0.0 }
 0x159   :  { %v1639_v11 = vadd.f32 %v1638_v55, %v10957_v0  ;;  %v1728_v52 = vadd.f32 %v1727_v7, %v10957_v0  ;;  %v1640_v13 = vpop.f32.mrb[63].mxu0  ;;  %v1729_v38 = vpop.f32.mrb[63].mxu1  ;;  %8251 = vmatmul.mubr.msk.f32.gmra.mrb[94].mxu1 %vm2540_vm4, %v11339_v1  ;;  %v2472_v44 = vmax.f32 %v1724_v6, 0.0 }
 0x15a   :  { %v1641_v28 = vadd.f32 %v1640_v13, %v10957_v0  ;;  %v1730_v20 = vadd.f32 %v1729_v38, %v10957_v0  ;;  %8269 = vmatmul.mubr.msk.f32.gmra.mrb[94].mxu0 %vm2540_vm4, %v11378_v9  ;;  %8568 = vmatprep.mubr.msk.f32.mxu1 %vm2540_vm4, %v11270_v59 }
 0x15b   :  { %v2514_v19 = vmax.f32 %v1639_v11, 0.0  ;;  %v2516_v22 = vmax.f32 %v1728_v52, 0.0  ;;  %3873 = vmatprep.mubr.f32.mxu0 %v10183_v3 }
 0x15c   :  { %v2515_v29 = vmax.f32 %v1641_v28, 0.0  ;;  %v2517_v25 = vmax.f32 %v1730_v20, 0.0  ;;  %v1798_v12 = vpop.f32.mrb[64].mxu0  ;;  %v1887_v31 = vpop.f32.mrb[64].mxu1 }
 0x15d   :  { %v8928_v32 = vpack.c.bf16 %v2514_v19, %v2469_v17  ;;  %v11397_v46 = vpack.c.bf16 %v2516_v22, %v2471_v63  ;;  %v1800_v30 = vpop.f32.mrb[65].mxu0  ;;  %v1889_v35 = vpop.f32.mrb[65].mxu1  ;;  %8569 = vmatmul.mubr.msk.f32.vlgmr.msra.gmra.mrb[96].mxu1 %vm2540_vm4, %v11298_v56  ;;  %v1799_v41 = vadd.f32 %v1798_v12, %v10935_v2  ;;  %v1888_v58 = vadd.f32 %v1887_v31, %v10935_v2 }
 0x15e   :  { %v11399_v40 = vpack.c.bf16 %v2515_v29, %v2470_v23  ;;  %v11401_v59 = vpack.c.bf16 %v2517_v25, %v2472_v44  ;;  %8895 = vmatpush1.bf16.msra.mxu1 %v11204_v34  ;;  %8270 = vmatmul.mubr.msk.f32.gmra.mrb[96].mxu0 %vm2540_vm4, %v11394_v48  ;;  %v1801_v42 = vadd.f32 %v1800_v30, %v10935_v2  ;;  %v11457_v44 = vld [vmem:[%s14681_s3 + $0xa8] sm:$0xff] }
 0x15f   :  { %v1890_v47 = vadd.f32 %v1889_v35, %v10935_v2  ;;  %8897 = vmatprep.subr.bf16.mxu1 %v11247_v14  ;;  %8571 = vmatprep.mubr.msk.f32.mxu1 %vm2540_vm4, %v11312_v36  ;;  %v2383_v54 = vmax.f32 %v1799_v41, 0.0  ;;  %v2385_v33 = vmax.f32 %v1888_v58, 0.0 }
 0x160   :  { %v1804_v8 = vpop.f32.mrb[66].mxu0  ;;  %v1893_v56 = vpop.f32.mrb[66].mxu1  ;;  %3879 = vmatprep.mubr.f32.mxu0 %v10183_v3  ;;  %8929 = vmatprep.subr.bf16.mxu0 %v8928_v32 }
 0x161   :  { %v1805_v34 = vadd.f32 %v1804_v8, %v10937_v15  ;;  %v1894_v49 = vadd.f32 %v1893_v56, %v10937_v15  ;;  %v1806_v53 = vpop.f32.mrb[67].mxu0  ;;  %v1895_v62 = vpop.f32.mrb[67].mxu1  ;;  %8572 = vmatmul.mubr.msk.f32.gmra.mrb[98].mxu1 %vm2540_vm4, %v11339_v1  ;;  %8931 = vmatpush1.bf16.msra.mxu0 %v11323_v18  ;;  %v2384_v1 = vmax.f32 %v1801_v42, 0.0  ;;  %v2386_v18 = vmax.f32 %v1890_v47, 0.0  ;;  %v11472_v42 = vld [vmem:[%s14681_s3 + $0xb0] sm:$0xff] }
 0x162   :  { %v1807_v14 = vadd.f32 %v1806_v53, %v10937_v15  ;;  %v1896_v36 = vadd.f32 %v1895_v62, %v10937_v15  ;;  %8899 = vmatpush1.bf16.msra.mxu1 %v11242_v10  ;;  %8271 = vmatmul.mubr.msk.f32.gmra.mrb[98].mxu0 %vm2540_vm4, %v11418_v26 }
 0x163   :  { %v2428_v57 = vmax.f32 %v1805_v34, 0.0  ;;  %v2430_v37 = vmax.f32 %v1894_v49, 0.0  ;;  %8909 = vmatprep.subr.bf16.mxu1 %v11274_v43  ;;  %3772 = vmatprep.mubr.f32.mxu1 %v10183_v3 }
 0x164   :  { %v2429_v51 = vmax.f32 %v1807_v14, 0.0  ;;  %v2431_v6 = vmax.f32 %v1896_v36, 0.0  ;;  %v1810_v55 = vpop.f32.mrb[68].mxu0  ;;  %v1899_v7 = vpop.f32.mrb[68].mxu1  ;;  %4161 = vmatprep.mubr.f32.mxu0 %v10183_v3 }
 0x165   :  { %v8950_v11 = vpack.c.bf16 %v2428_v57, %v2383_v54  ;;  %v11438_v10 = vpack.c.bf16 %v2430_v37, %v2385_v33  ;;  %v1812_v52 = vpop.f32.mrb[69].mxu0  ;;  %v1901_v13 = vpop.f32.mrb[69].mxu1  ;;  %8264 = vmatmul.mubr.msk.f32.vlgmr.msra.gmra.mrb[88].mxu1 %vm2540_vm4, %v11354_v45  ;;  %v1811_v20 = vadd.f32 %v1810_v55, %v10941_v39  ;;  %v1900_v17 = vadd.f32 %v1899_v7, %v10941_v39 }
 0x166   :  { %v8948_v38 = vpack.c.bf16 %v2429_v51, %v2384_v1  ;;  %v11441_v28 = vpack.c.bf16 %v2431_v6, %v2386_v18  ;;  %8911 = vmatpush3.bf16.msra.mxu1 %v11274_v43  ;;  %8284 = vmatmul.mubr.msk.f32.vlgmr.msra.gmra.mrb[92].mxu0 %vm2540_vm4, %v11434_v5  ;;  %v1813_v63 = vadd.f32 %v1812_v52, %v10941_v39  ;;  %v11494_v6 = vld [vmem:[%s14681_s3 + $0xb8] sm:$0xff] }
 0x167   :  { %v1902_v19 = vadd.f32 %v1901_v13, %v10941_v39  ;;  %8913 = vmatprep.subr.bf16.mxu1 %v11316_v16  ;;  %3778 = vmatprep.mubr.f32.mxu1 %v10183_v3  ;;  %v2473_v30 = vmax.f32 %v1811_v20, 0.0  ;;  %v2475_v35 = vmax.f32 %v1900_v17, 0.0 }
 0x168   :  { %v1816_v22 = vpop.f32.mrb[70].mxu0  ;;  %v1905_v23 = vpop.f32.mrb[70].mxu1  ;;  %4167 = vmatprep.mubr.f32.mxu0 %v10183_v3  ;;  %8949 = vmatprep.subr.bf16.mxu0 %v8948_v38  ;;  %v2474_v47 = vmax.f32 %v1813_v63, 0.0 }
 0x169   :  { %v1817_v43 = vadd.f32 %v1816_v22, %v10957_v0  ;;  %v1906_v29 = vadd.f32 %v1905_v23, %v10957_v0  ;;  %v1818_v25 = vpop.f32.mrb[71].mxu0  ;;  %v1907_v12 = vpop.f32.mrb[71].mxu1  ;;  %8265 = vmatmul.mubr.msk.f32.gmra.mrb[90].mxu1 %vm2540_vm4, %v11378_v9  ;;  %8951 = vmatpush1.bf16.msra.mxu0 %v8950_v11  ;;  %v2476_v8 = vmax.f32 %v1902_v19, 0.0  ;;  %v11509_v22 = vld [vmem:[%s14681_s3 + $0xc0] sm:$0xff] }
 0x16a   :  { %v1819_v31 = vadd.f32 %v1818_v25, %v10957_v0  ;;  %v1908_v32 = vadd.f32 %v1907_v12, %v10957_v0  ;;  %8915 = vmatpush3.bf16.msra.mxu1 %v11316_v16  ;;  %8285 = vmatmul.mubr.msk.f32.gmra.mrb[94].mxu0 %vm2540_vm4, %v11457_v44 }
 0x16b   :  { %v2518_v41 = vmax.f32 %v1817_v43, 0.0  ;;  %v2520_v58 = vmax.f32 %v1906_v29, 0.0  ;;  %8917 = vmatprep.subr.bf16.mxu1 %v11276_v27  ;;  %3784 = vmatprep.mubr.f32.mxu1 %v10183_v3 }
 0x16c   :  { %v2519_v56 = vmax.f32 %v1819_v31, 0.0  ;;  %v2521_v34 = vmax.f32 %v1908_v32, 0.0  ;;  %v1976_v49 = vpop.f32.mrb[72].mxu0  ;;  %v2065_v53 = vpop.f32.mrb[72].mxu1  ;;  %4173 = vmatprep.mubr.f32.mxu0 %v10183_v3 }
 0x16d   :  { %v8954_v62 = vpack.c.bf16 %v2518_v41, %v2473_v30  ;;  %v11476_v16 = vpack.c.bf16 %v2520_v58, %v2475_v35  ;;  %v1978_v14 = vpop.f32.mrb[73].mxu0  ;;  %v2067_v36 = vpop.f32.mrb[73].mxu1  ;;  %8266 = vmatmul.mubr.msk.f32.gmra.mrb[92].mxu1 %vm2540_vm4, %v11394_v48  ;;  %v1977_v57 = vadd.f32 %v1976_v49, %v10935_v2  ;;  %v2066_v27 = vadd.f32 %v2065_v53, %v10935_v2  ;;  %v11531_v53 = vld [vmem:[%s14681_s3 + $0xc8] sm:$0xff] }
 0x16e   :  { %v8952_v54 = vpack.c.bf16 %v2519_v56, %v2474_v47  ;;  %v11479_v33 = vpack.c.bf16 %v2521_v34, %v2476_v8  ;;  %8286 = vmatmul.mubr.msk.f32.gmra.mrb[96].mxu0 %vm2540_vm4, %v11472_v42  ;;  %3790 = vmatprep.mubr.f32.mxu1 %v10183_v3  ;;  %v1979_v37 = vadd.f32 %v1978_v14, %v10935_v2 }
 0x16f   :  { %v2068_v1 = vadd.f32 %v2067_v36, %v10935_v2  ;;  %4179 = vmatprep.mubr.f32.mxu0 %v10183_v3  ;;  %v2387_v20 = vmax.f32 %v1977_v57, 0.0  ;;  %v2389_v17 = vmax.f32 %v2066_v27, 0.0 }
 0x170   :  { %v1982_v18 = vpop.f32.mrb[74].mxu0  ;;  %v2071_v51 = vpop.f32.mrb[74].mxu1  ;;  %8953 = vmatprep.subr.bf16.mxu0 %v8952_v54  ;;  %v2388_v23 = vmax.f32 %v1979_v37, 0.0 }
 0x171   :  { %v1983_v55 = vadd.f32 %v1982_v18, %v10937_v15  ;;  %v2072_v7 = vadd.f32 %v2071_v51, %v10937_v15  ;;  %v1984_v11 = vpop.f32.mrb[75].mxu0  ;;  %v2073_v52 = vpop.f32.mrb[75].mxu1  ;;  %8955 = vmatpush1.bf16.msra.mxu0 %v8954_v62  ;;  %8267 = vmatmul.mubr.msk.f32.gmra.mrb[94].mxu1 %vm2540_vm4, %v11418_v26  ;;  %v2390_v43 = vmax.f32 %v2068_v1, 0.0  ;;  %v11546_v1 = vld [vmem:[%s14681_s3 + $0xd0] sm:$0xff] }
 0x172   :  { %v1985_v13 = vadd.f32 %v1984_v11, %v10937_v15  ;;  %v2074_v38 = vadd.f32 %v2073_v52, %v10937_v15  ;;  %8287 = vmatmul.mubr.msk.f32.gmra.mrb[98].mxu0 %vm2540_vm4, %v11494_v6  ;;  %8582 = vmatprep.mubr.msk.f32.mxu1 %vm2540_vm4, %v11354_v45 }
 0x173   :  { %v2432_v63 = vmax.f32 %v1983_v55, 0.0  ;;  %v2434_v19 = vmax.f32 %v2072_v7, 0.0  ;;  %4461 = vmatprep.mubr.f32.mxu0 %v10183_v3 }
 0x174   :  { %v2433_v29 = vmax.f32 %v1985_v13, 0.0  ;;  %v2435_v25 = vmax.f32 %v2074_v38, 0.0  ;;  %v1988_v12 = vpop.f32.mrb[76].mxu0  ;;  %v2077_v31 = vpop.f32.mrb[76].mxu1 }
 0x175   :  { %v11512_v32 = vpack.c.bf16 %v2432_v63, %v2387_v20  ;;  %v8972_v30 = vpack.c.bf16 %v2434_v19, %v2389_v17  ;;  %v1990_v35 = vpop.f32.mrb[77].mxu0  ;;  %v2079_v41 = vpop.f32.mrb[77].mxu1  ;;  %8583 = vmatmul.mubr.msk.f32.vlgmr.msra.gmra.mrb[96].mxu1 %vm2540_vm4, %v11378_v9  ;;  %v1989_v47 = vadd.f32 %v1988_v12, %v10941_v39  ;;  %v2078_v8 = vadd.f32 %v2077_v31, %v10941_v39  ;;  %v11569_v12 = vld [vmem:[%s14681_s3 + $0xd8] sm:$0xff] }
 0x176   :  { %v8974_v58 = vpack.c.bf16 %v2433_v29, %v2388_v23  ;;  %v11514_v45 = vpack.c.bf16 %v2435_v25, %v2390_v43  ;;  %8919 = vmatpush1.bf16.msra.mxu1 %v11280_v21  ;;  %8300 = vmatmul.mubr.msk.f32.vlgmr.msra.gmra.mrb[92].mxu0 %vm2540_vm4, %v11509_v22  ;;  %v1991_v56 = vadd.f32 %v1990_v35, %v10941_v39 }
 0x177   :  { %v2080_v34 = vadd.f32 %v2079_v41, %v10941_v39  ;;  %8921 = vmatprep.subr.bf16.mxu1 %v11318_v60  ;;  %8585 = vmatprep.mubr.msk.f32.mxu1 %vm2540_vm4, %v11394_v48  ;;  %v2477_v54 = vmax.f32 %v1989_v47, 0.0  ;;  %v2479_v57 = vmax.f32 %v2078_v8, 0.0 }
 0x178   :  { %v1994_v49 = vpop.f32.mrb[78].mxu0  ;;  %v2083_v9 = vpop.f32.mrb[78].mxu1  ;;  %4467 = vmatprep.mubr.f32.mxu0 %v10183_v3  ;;  %8973 = vmatprep.subr.bf16.mxu0 %v8972_v30 }
 0x179   :  { %v1995_v21 = vadd.f32 %v1994_v49, %v10957_v0  ;;  %v2084_v62 = vadd.f32 %v2083_v9, %v10957_v0  ;;  %v1996_v14 = vpop.f32.mrb[79].mxu0  ;;  %v2085_v36 = vpop.f32.mrb[79].mxu1  ;;  %8586 = vmatmul.mubr.msk.f32.gmra.mrb[98].mxu1 %vm2540_vm4, %v11418_v26  ;;  %8975 = vmatpush1.bf16.msra.mxu0 %v8974_v58  ;;  %v2478_v26 = vmax.f32 %v1991_v56, 0.0  ;;  %v2480_v18 = vmax.f32 %v2080_v34, 0.0  ;;  %v11584_v49 = vld [vmem:[%s14681_s3 + $0xe0] sm:$0xff] }
 0x17a   :  { %v1997_v60 = vadd.f32 %v1996_v14, %v10957_v0  ;;  %v2086_v48 = vadd.f32 %v2085_v36, %v10957_v0  ;;  %8923 = vmatpush1.bf16.msra.mxu1 %v11321_v50  ;;  %8301 = vmatmul.mubr.msk.f32.gmra.mrb[94].mxu0 %vm2540_vm4, %v11531_v53 }
 0x17b   :  { %v2522_v27 = vmax.f32 %v1995_v21, 0.0  ;;  %v2524_v37 = vmax.f32 %v2084_v62, 0.0  ;;  %8933 = vmatprep.subr.bf16.mxu1 %v11361_v61  ;;  %4072 = vmatprep.mubr.f32.mxu1 %v10183_v3 }
 0x17c   :  { %v2523_v51 = vmax.f32 %v1997_v60, 0.0  ;;  %v2525_v55 = vmax.f32 %v2086_v48, 0.0  ;;  %v2154_v7 = vpop.f32.mrb[80].mxu0  ;;  %v2243_v11 = vpop.f32.mrb[80].mxu1  ;;  %4473 = vmatprep.mubr.f32.mxu0 %v10183_v3 }
 0x17d   :  { %v11550_v52 = vpack.c.bf16 %v2522_v27, %v2477_v54  ;;  %v8976_v50 = vpack.c.bf16 %v2524_v37, %v2479_v57  ;;  %v2156_v13 = vpop.f32.mrb[81].mxu0  ;;  %v2245_v38 = vpop.f32.mrb[81].mxu1  ;;  %8280 = vmatmul.mubr.msk.f32.vlgmr.msra.gmra.mrb[88].mxu1 %vm2540_vm4, %v11434_v5  ;;  %v2155_v63 = vadd.f32 %v2154_v7, %v10935_v2  ;;  %v2244_v19 = vadd.f32 %v2243_v11, %v10935_v2  ;;  %v11606_v11 = vld [vmem:[%s14681_s3 + $0xe8] sm:$0xff] }
 0x17e   :  { %v8978_v20 = vpack.c.bf16 %v2523_v51, %v2478_v26  ;;  %v11553_v17 = vpack.c.bf16 %v2525_v55, %v2480_v18  ;;  %8935 = vmatpush3.bf16.msra.mxu1 %v11361_v61  ;;  %8302 = vmatmul.mubr.msk.f32.gmra.mrb[96].mxu0 %vm2540_vm4, %v11546_v1  ;;  %v2157_v23 = vadd.f32 %v2156_v13, %v10935_v2 }
 0x17f   :  { %v2246_v43 = vadd.f32 %v2245_v38, %v10935_v2  ;;  %8937 = vmatprep.subr.bf16.mxu1 %v11399_v40  ;;  %4078 = vmatprep.mubr.f32.mxu1 %v10183_v3  ;;  %v2391_v47 = vmax.f32 %v2155_v63, 0.0  ;;  %v2393_v8 = vmax.f32 %v2244_v19, 0.0 }
 0x180   :  { %v2160_v29 = vpop.f32.mrb[82].mxu0  ;;  %v2249_v25 = vpop.f32.mrb[82].mxu1  ;;  %4479 = vmatprep.mubr.f32.mxu0 %v10183_v3  ;;  %8977 = vmatprep.subr.bf16.mxu0 %v8976_v50  ;;  %v2392_v9 = vmax.f32 %v2157_v23, 0.0 }
 0x181   :  { %v2161_v61 = vadd.f32 %v2160_v29, %v10937_v15  ;;  %v2250_v31 = vadd.f32 %v2249_v25, %v10937_v15  ;;  %v2162_v30 = vpop.f32.mrb[83].mxu0  ;;  %v2251_v35 = vpop.f32.mrb[83].mxu1  ;;  %8281 = vmatmul.mubr.msk.f32.gmra.mrb[90].mxu1 %vm2540_vm4, %v11457_v44  ;;  %8979 = vmatpush1.bf16.msra.mxu0 %v8978_v20  ;;  %v2394_v21 = vmax.f32 %v2246_v43, 0.0 }
 0x182   :  { %v2163_v41 = vadd.f32 %v2162_v30, %v10937_v15  ;;  %v2252_v58 = vadd.f32 %v2251_v35, %v10937_v15  ;;  %8939 = vmatpush3.bf16.msra.mxu1 %v11399_v40  ;;  %8303 = vmatmul.mubr.msk.f32.gmra.mrb[98].mxu0 %vm2540_vm4, %v11569_v12 }
 0x183   :  { %v2436_v56 = vmax.f32 %v2161_v61, 0.0  ;;  %v2438_v34 = vmax.f32 %v2250_v31, 0.0  ;;  %8941 = vmatprep.subr.bf16.mxu1 %v11363_v4  ;;  %4084 = vmatprep.mubr.f32.mxu1 %v10183_v3 }
 0x184   :  { %v2437_v62 = vmax.f32 %v2163_v41, 0.0  ;;  %v2439_v14 = vmax.f32 %v2252_v58, 0.0  ;;  %v2166_v36 = vpop.f32.mrb[84].mxu0  ;;  %v2255_v60 = vpop.f32.mrb[84].mxu1  ;;  %4761 = vmatprep.mubr.f32.mxu0 %v10183_v3  ;;  %v11622_v58 = vld [vmem:[%s14681_s3 + $0xf0] sm:$0xff] }
 0x185   :  { %v11588_v48 = vpack.c.bf16 %v2436_v56, %v2391_v47  ;;  %v8998_v40 = vpack.c.bf16 %v2438_v34, %v2393_v8  ;;  %v2168_v54 = vpop.f32.mrb[85].mxu0  ;;  %v2257_v57 = vpop.f32.mrb[85].mxu1  ;;  %8282 = vmatmul.mubr.msk.f32.gmra.mrb[92].mxu1 %vm2540_vm4, %v11472_v42  ;;  %v2167_v26 = vadd.f32 %v2166_v36, %v10941_v39  ;;  %v2256_v4 = vadd.f32 %v2255_v60, %v10941_v39  ;;  %v11641_v36 = vld [vmem:[%s14681_s3 + $0xf8] sm:$0xff] }
 0x186   :  { %v11591_v27 = vpack.c.bf16 %v2437_v62, %v2392_v9  ;;  %v8996_v37 = vpack.c.bf16 %v2439_v14, %v2394_v21  ;;  %8316 = vmatmul.mubr.msk.f32.vlgmr.msra.gmra.mrb[92].mxu0 %vm2540_vm4, %v11584_v49  ;;  %4090 = vmatprep.mubr.f32.mxu1 %v10183_v3  ;;  %v2169_v18 = vadd.f32 %v2168_v54, %v10941_v39 }
 0x187   :  { %v2258_v51 = vadd.f32 %v2257_v57, %v10941_v39  ;;  %4767 = vmatprep.mubr.f32.mxu0 %v10183_v3  ;;  %v2481_v23 = vmax.f32 %v2167_v26, 0.0  ;;  %v2483_v43 = vmax.f32 %v2256_v4, 0.0  ;;  %v5672_v57 = vld [vmem:[%s14682_s6 + $0x90] sm:$0xff]  ;;  %v5685_v4 = vld [vmem:[%s14682_s6 + $0xf8] sm:$0xff] }
 0x188   :  { %v2172_v55 = vpop.f32.mrb[86].mxu0  ;;  %v2261_v7 = vpop.f32.mrb[86].mxu1  ;;  %8997 = vmatprep.subr.bf16.mxu0 %v8996_v37  ;;  %v2482_v61 = vmax.f32 %v2169_v18, 0.0  ;;  %v5681_v37 = vld [vmem:[%s14682_s6 + $0xd8] sm:$0xff] }
 0x189   :  { %v2173_v50 = vadd.f32 %v2172_v55, %v10957_v0  ;;  %v2262_v13 = vadd.f32 %v2261_v7, %v10957_v0  ;;  %v2174_v38 = vpop.f32.mrb[87].mxu0  ;;  %v2263_v20 = vpop.f32.mrb[87].mxu1  ;;  %8999 = vmatpush1.bf16.msra.mxu0 %v8998_v40  ;;  %8283 = vmatmul.mubr.msk.f32.gmra.mrb[94].mxu1 %vm2540_vm4, %v11494_v6  ;;  %v2484_v31 = vmax.f32 %v2258_v51, 0.0  ;;  %v5677_v40 = vld [vmem:[%s14682_s6 + $0xb8] sm:$0xff]  ;;  %v9208_v18 = vpack.c.bf16 %v5685_v4, %v5681_v37  ;;  %v5680_v51 = vld [vmem:[%s14682_s6 + $0xd0] sm:$0xff] }
 0x18a   :  { %v2175_v63 = vadd.f32 %v2174_v38, %v10957_v0  ;;  %v2264_v19 = vadd.f32 %v2263_v20, %v10957_v0  ;;  %8317 = vmatmul.mubr.msk.f32.gmra.mrb[94].mxu0 %vm2540_vm4, %v11606_v11  ;;  %8596 = vmatprep.mubr.msk.f32.mxu1 %vm2540_vm4, %v11434_v5  ;;  %v5684_v55 = vld [vmem:[%s14682_s6 + $0xf0] sm:$0xff]  ;;  %v5689_v7 = vld [vmem:[%s14682_s6 + $0x118] sm:$0xff] }
 0x18b   :  { %v2526_v29 = vmax.f32 %v2173_v50, 0.0  ;;  %v2528_v25 = vmax.f32 %v2262_v13, 0.0  ;;  %4773 = vmatprep.mubr.f32.mxu0 %v10183_v3  ;;  %v9210_v50 = vpack.c.bf16 %v5684_v55, %v5680_v51  ;;  %v5688_v38 = vld [vmem:[%s14682_s6 + $0x110] sm:$0xff] }
 0x18c   :  { %v2527_v30 = vmax.f32 %v2175_v63, 0.0  ;;  %v2529_v35 = vmax.f32 %v2264_v19, 0.0  ;;  %v8514_v41 = vpop.f32.mrb[88].mxu0  ;;  %v5692_v20 = vld [vmem:[%s14682_s6 + $0x130] sm:$0xff]  ;;  %v5697_v63 = vld [vmem:[%s14682_s6 + $0x158] sm:$0xff] }
 0x18d   :  { %v11624_v47 = vpack.c.bf16 %v2526_v29, %v2481_v23  ;;  %v9002_v8 = vpack.c.bf16 %v2528_v25, %v2483_v43  ;;  %v2338_v56 = vadd.f32 %v8514_v41, %v10937_v15  ;;  %v2332_v34 = vpop.f32.mrb[89].mxu0  ;;  %8597 = vmatmul.mubr.msk.f32.vlgmr.msra.gmra.mrb[96].mxu1 %vm2540_vm4, %v11457_v44  ;;  %v5701_v19 = vld [vmem:[%s14682_s6 + $0x178] sm:$0xff]  ;;  %v9214_v23 = vpack.c.bf16 %v5692_v20, %v5688_v38  ;;  %v5696_v29 = vld [vmem:[%s14682_s6 + $0x150] sm:$0xff] }
 0x18e   :  { %v11627_v9 = vpack.c.bf16 %v2527_v30, %v2482_v61  ;;  %v9000_v5 = vpack.c.bf16 %v2529_v35, %v2484_v31  ;;  %v2333_v21 = vadd.f32 %v2332_v34, %v10935_v2  ;;  %8943 = vmatpush1.bf16.msra.mxu1 %v11358_v24  ;;  %8318 = vmatmul.mubr.msk.f32.gmra.mrb[96].mxu0 %vm2540_vm4, %v11622_v58  ;;  %v5700_v25 = vld [vmem:[%s14682_s6 + $0x170] sm:$0xff]  ;;  %v5705_v61 = vld [vmem:[%s14682_s6 + $0x198] sm:$0xff] }
 0x18f   :  { %v2440_v62 = vmax.f32 %v2338_v56, 0.0  ;;  %8945 = vmatprep.subr.bf16.mxu1 %v11401_v59  ;;  %8599 = vmatprep.mubr.msk.f32.mxu1 %vm2540_vm4, %v11472_v42  ;;  %v9216_v43 = vpack.c.bf16 %v5701_v19, %v5697_v63  ;;  %v5709_v31 = vld [vmem:[%s14682_s6 + $0x1b8] sm:$0xff]  ;;  %v9218_v41 = vpack.c.bf16 %v5700_v25, %v5696_v29 }
 0x190   :  { %v2395_v14 = vmax.f32 %v2333_v21, 0.0  ;;  %v8517_v15 = vpop.f32.mrb[90].mxu0  ;;  %4779 = vmatprep.mubr.f32.mxu0 %v10183_v3  ;;  %9001 = vmatprep.subr.bf16.mxu0 %v9000_v5  ;;  %v5713_v56 = vld [vmem:[%s14682_s6 + $0x1d8] sm:$0xff] }
 0x191   :  { %v2348_v2 = vadd.f32 %v8517_v15, %v10957_v0  ;;  %v2342_v24 = vpop.f32.mrb[91].mxu0  ;;  %8600 = vmatmul.mubr.msk.f32.gmra.mrb[98].mxu1 %vm2540_vm4, %v11494_v6  ;;  %9003 = vmatpush1.bf16.msra.mxu0 %v9002_v8  ;;  %v8324_v0 = vld [vmem:[%s14681_s3 + $0x100] sm:$0xff]  ;;  %v5708_v8 = vld [vmem:[%s14682_s6 + $0x1b0] sm:$0xff]  ;;  %v5717_v34 = vld [vmem:[%s14682_s6 + $0x1f8] sm:$0xff] }
 0x192   :  { %v9004_v44 = vpack.c.bf16 %v2440_v62, %v2395_v14  ;;  %v2343_v59 = vadd.f32 %v2342_v24, %v10941_v39  ;;  %8947 = vmatpush1.bf16.msra.mxu1 %v11397_v46  ;;  %8319 = vmatmul.mubr.msk.f32.gmra.mrb[98].mxu0 %vm2540_vm4, %v11641_v36  ;;  %v8325_v46 = vld [vmem:[%s14681_s3 + $0x108] sm:$0xff]  ;;  %v9224_v62 = vpack.c.bf16 %v5717_v34, %v5713_v56  ;;  %v5712_v14 = vld [vmem:[%s14682_s6 + $0x1d0] sm:$0xff] }
 0x193   :  { %v2530_v42 = vmax.f32 %v2348_v2, 0.0  ;;  %8957 = vmatprep.subr.bf16.mxu1 %v11438_v10  ;;  %4372 = vmatprep.mubr.f32.mxu1 %v10183_v3  ;;  %v5716_v15 = vld [vmem:[%s14682_s6 + $0x1f0] sm:$0xff] }
 0x194   :  { %v2485_v60 = vmax.f32 %v2343_v59, 0.0  ;;  %5061 = vmatprep.mubr.f32.mxu0 %v10183_v3  ;;  %9005 = vmatprep.subr.bf16.mxu0 %v9004_v44  ;;  %v9226_v24 = vpack.c.bf16 %v5716_v15, %v5712_v14 }
 0x195   :  { %8296 = vmatmul.mubr.msk.f32.vlgmr.msra.gmra.mrb[88].mxu1 %vm2540_vm4, %v11509_v22 }
 0x196   :  { %v9008_v39 = vpack.c.bf16 %v2530_v42, %v2485_v60  ;;  %8959 = vmatpush3.bf16.msra.mxu1 %v11438_v10  ;;  %8332 = vmatmul.mubr.msk.f32.vlgmr.msra.gmra.mrb[92].mxu0 %vm2540_vm4, %v8324_v0  ;;  %v8326_v10 = vld [vmem:[%s14681_s3 + $0x110] sm:$0xff] }
 0x197   :  { %8961 = vmatprep.subr.bf16.mxu1 %v11476_v16  ;;  %9007 = vmatpush3.bf16.msra.mxu0 %v9004_v44 }
 0x198   :  { %4378 = vmatprep.mubr.f32.mxu1 %v10183_v3  ;;  %5067 = vmatprep.mubr.f32.mxu0 %v10183_v3 }
 0x199   :  { %8297 = vmatmul.mubr.msk.f32.gmra.mrb[90].mxu1 %vm2540_vm4, %v11531_v53  ;;  %9009 = vmatprep.subr.bf16.mxu0 %v9008_v39 }
 0x19a   :  { %8963 = vmatpush3.bf16.msra.mxu1 %v11476_v16  ;;  %8333 = vmatmul.mubr.msk.f32.gmra.mrb[94].mxu0 %vm2540_vm4, %v8325_v46  ;;  %v8327_v16 = vld [vmem:[%s14681_s3 + $0x118] sm:$0xff] }
 0x19b   :  { %8965 = vmatprep.subr.bf16.mxu1 %v11512_v32  ;;  %9011 = vmatpush3.bf16.msra.mxu0 %v9008_v39  ;;  %v5660_v32 = vld [vmem:[%s14682_s6 + $0x30] sm:$0xff] }
 0x19c   :  { %4384 = vmatprep.mubr.f32.mxu1 %v10183_v3  ;;  %5073 = vmatprep.mubr.f32.mxu0 %v10183_v3 }
 0x19d   :  { %8298 = vmatmul.mubr.msk.f32.gmra.mrb[92].mxu1 %vm2540_vm4, %v11546_v1 }
 0x19e   :  { %8334 = vmatmul.mubr.msk.f32.gmra.mrb[96].mxu0 %vm2540_vm4, %v8326_v10  ;;  %4390 = vmatprep.mubr.f32.mxu1 %v10183_v3 }
 0x19f   :  { %5079 = vmatprep.mubr.f32.mxu0 %v10183_v3 }
 0x1a1   :  { %8299 = vmatmul.mubr.msk.f32.gmra.mrb[94].mxu1 %vm2540_vm4, %v11569_v12 }
 0x1a2   :  { %8335 = vmatmul.mubr.msk.f32.gmra.mrb[98].mxu0 %vm2540_vm4, %v8327_v16  ;;  %8610 = vmatprep.mubr.msk.f32.mxu1 %vm2540_vm4, %v11509_v22  ;;  %v5656_v22 = vld [vmem:[%s14682_s6 + $0x10] sm:$0xff] }
 0x1a3   :  { %8638 = vmatprep.mubr.msk.f32.mxu0 %vm2540_vm4, %v8324_v0 }
 0x1a5   :  { %8611 = vmatmul.mubr.msk.f32.vlgmr.msra.gmra.mrb[96].mxu1 %vm2540_vm4, %v11531_v53  ;;  %v5665_v53 = vld [vmem:[%s14682_s6 + $0x58] sm:$0xff] }
 0x1a6   :  { %8967 = vmatpush1.bf16.msra.mxu1 %v11441_v28  ;;  %8613 = vmatprep.mubr.msk.f32.mxu1 %vm2540_vm4, %v11546_v1  ;;  %v5657_v28 = vld [vmem:[%s14682_s6 + $0x18] sm:$0xff] }
 0x1a7   :  { %8969 = vmatprep.subr.bf16.mxu1 %v11550_v52  ;;  %8639 = vmatmul.mubr.msk.f32.vlgmr.msra.gmra.mrb[100].mxu0 %vm2540_vm4, %v8325_v46  ;;  %v5669_v1 = vld [vmem:[%s14682_s6 + $0x78] sm:$0xff] }
 0x1a8   :  { %8641 = vmatprep.mubr.msk.f32.mxu0 %vm2540_vm4, %v8326_v10  ;;  %v9200_v52 = vpack.c.bf16 %v5669_v1, %v5665_v53  ;;  %v5198_v1 = vpop.permute.xlu0 %5197 }
 0x1a9   :  { %8614 = vmatmul.mubr.msk.f32.gmra.mrb[98].mxu1 %vm2540_vm4, %v11569_v12  ;;  %v5668_v12 = vld [vmem:[%s14682_s6 + $0x70] sm:$0xff] }
 0x1aa   :  { %8971 = vmatpush1.bf16.msra.mxu1 %v11479_v33  ;;  %4672 = vmatprep.mubr.f32.mxu1 %v10183_v3  ;;  %v5661_v33 = vld [vmem:[%s14682_s6 + $0x38] sm:$0xff] }
 0x1ab   :  { %8981 = vmatprep.subr.bf16.mxu1 %v11514_v45  ;;  %8642 = vmatmul.mubr.msk.f32.gmra.mrb[102].mxu0 %vm2540_vm4, %v8327_v16  ;;  %v9196_v6 = vpack.c.bf16 %v5661_v33, %v5657_v28 }
 0x1ac   :  { %5335 = vmatprep.mubr.f32.mxu0 %v10183_v3  ;;  %v5208_v55 = vpop.permute.xlu0 %5207 }
 0x1ad   :  { %8312 = vmatmul.mubr.msk.f32.vlgmr.msra.gmra.mrb[88].mxu1 %vm2540_vm4, %v11584_v49 }
 0x1ae   :  { %8983 = vmatpush3.bf16.msra.mxu1 %v11514_v45  ;;  %4678 = vmatprep.mubr.f32.mxu1 %v10183_v3  ;;  %v9198_v45 = vpack.c.bf16 %v5660_v32, %v5656_v22 }
 0x1af   :  { %8985 = vmatprep.subr.bf16.mxu1 %v11553_v17 }
 0x1b1   :  { %8313 = vmatmul.mubr.msk.f32.gmra.mrb[90].mxu1 %vm2540_vm4, %v11606_v11 }
 0x1b2   :  { %8987 = vmatpush3.bf16.msra.mxu1 %v11553_v17  ;;  %4684 = vmatprep.mubr.f32.mxu1 %v10183_v3  ;;  %v5664_v17 = vld [vmem:[%s14682_s6 + $0x50] sm:$0xff] }
 0x1b3   :  { %8989 = vmatprep.subr.bf16.mxu1 %v11591_v27  ;;  %v5676_v27 = vld [vmem:[%s14682_s6 + $0xb0] sm:$0xff] }
 0x1b4   :  { %v9206_v26 = vpack.c.bf16 %v5676_v27, %v5672_v57 }
 0x1b5   :  { %8314 = vmatmul.mubr.msk.f32.gmra.mrb[92].mxu1 %vm2540_vm4, %v11622_v58 }
 0x1b6   :  { %4690 = vmatprep.mubr.f32.mxu1 %v10183_v3 }
 0x1b9   :  { %8315 = vmatmul.mubr.msk.f32.gmra.mrb[94].mxu1 %vm2540_vm4, %v11641_v36 }
 0x1ba   :  { %8624 = vmatprep.mubr.msk.f32.mxu1 %vm2540_vm4, %v11584_v49  ;;  %v9202_v49 = vpack.c.bf16 %v5668_v12, %v5664_v17 }
 0x1bd   :  { %8625 = vmatmul.mubr.msk.f32.vlgmr.msra.gmra.mrb[96].mxu1 %vm2540_vm4, %v11606_v11  ;;  %v5693_v11 = vld [vmem:[%s14682_s6 + $0x138] sm:$0xff] }
 0x1be   :  { %8991 = vmatpush1.bf16.msra.mxu1 %v11588_v48  ;;  %8627 = vmatprep.mubr.msk.f32.mxu1 %vm2540_vm4, %v11622_v58  ;;  %v5673_v48 = vld [vmem:[%s14682_s6 + $0x98] sm:$0xff]  ;;  %v9212_v13 = vpack.c.bf16 %v5693_v11, %v5689_v7  ;;  %v9220_v58 = vpack.c.bf16 %v5709_v31, %v5705_v61 }
 0x1bf   :  { %8993 = vmatprep.subr.bf16.mxu1 %v11627_v9  ;;  %v9204_v54 = vpack.c.bf16 %v5677_v40, %v5673_v48 }
 0x1c1   :  { %8628 = vmatmul.mubr.msk.f32.gmra.mrb[98].mxu1 %vm2540_vm4, %v11641_v36 }
 0x1c2   :  { %8995 = vmatpush1.bf16.msra.mxu1 %v11624_v47  ;;  %4972 = vmatprep.mubr.f32.mxu1 %v10183_v3  ;;  %v5704_v47 = vld [vmem:[%s14682_s6 + $0x190] sm:$0xff] }
 0x1c3   :  { %9197 = vmatprep.subr.bf16.mxu1 %v9196_v6  ;;  %v9222_v21 = vpack.c.bf16 %v5708_v8, %v5704_v47 }
 0x1c5   :  { %8328 = vmatmul.mubr.msk.f32.vlgmr.msra.gmra.mrb[88].mxu1 %vm2540_vm4, %v8324_v0 }
 0x1c6   :  { %4978 = vmatprep.mubr.f32.mxu1 %v10183_v3  ;;  %9199 = vmatpush1.bf16.msra.mxu1 %v9198_v45 }
 0x1c7   :  { %9201 = vmatprep.subr.bf16.mxu1 %v9200_v52  ;;  %v5203_v52 = vpop.permute.xlu1 %5202 }
 0x1c9   :  { %8329 = vmatmul.mubr.msk.f32.gmra.mrb[90].mxu1 %vm2540_vm4, %v8325_v46 }
 0x1ca   :  { %4984 = vmatprep.mubr.f32.mxu1 %v10183_v3  ;;  %9203 = vmatpush1.bf16.msra.mxu1 %v9202_v49 }
 0x1cb   :  { %9205 = vmatprep.subr.bf16.mxu1 %v9204_v54  ;;  %v5213_v11 = vpop.permute.xlu1 %5212 }
 0x1cd   :  { %8330 = vmatmul.mubr.msk.f32.gmra.mrb[92].mxu1 %vm2540_vm4, %v8326_v10 }
 0x1ce   :  { %4990 = vmatprep.mubr.f32.mxu1 %v10183_v3  ;;  %9207 = vmatpush1.bf16.msra.mxu1 %v9206_v26 }
 0x1cf   :  { %9209 = vmatprep.subr.bf16.mxu1 %v9208_v18 }
 0x1d1   :  { %8331 = vmatmul.mubr.msk.f32.gmra.mrb[94].mxu1 %vm2540_vm4, %v8327_v16 }
 0x1d2   :  { %9211 = vmatpush1.bf16.msra.mxu1 %v9210_v50 }
 0x1d3   :  { %9213 = vmatprep.subr.bf16.mxu1 %v9212_v13 }
 0x1d6   :  { %9215 = vmatpush1.bf16.msra.mxu1 %v9214_v23 }
 0x1d7   :  { %9217 = vmatprep.subr.bf16.mxu1 %v9216_v43 }
 0x1da   :  { %9219 = vmatpush1.bf16.msra.mxu1 %v9218_v41 }
 0x1db   :  { %9221 = vmatprep.subr.bf16.mxu1 %v9220_v58 }
 0x1de   :  { %9223 = vmatpush1.bf16.msra.mxu1 %v9222_v21 }
 0x1df   :  { %9225 = vmatprep.subr.bf16.mxu1 %v9224_v62 }
 0x1e2   :  { %9227 = vmatpush1.bf16.msra.mxu1 %v9226_v24 }
 0x269   :  { %v11818_v30 = vpop.f32.mrb[92].mxu0 }
 0x26a   :  { %v11820_v35 = vpop.f32.mrb[93].mxu0 }
 0x26b   :  { %v11871_v23 = vadd.f32 %v5198_v1, %v11820_v35  ;;  %v11888_v35 = vadd.f32 %v5198_v1, %v11818_v30 }
 0x26d   :  { %v5069_v9 = vpop.f32.mrb[94].mxu0  ;;  %v5242_v8 = vmul.f32 %v11871_v23, %v11871_v23 }
 0x26e   :  { %v5071_v5 = vpop.f32.mrb[95].mxu0  ;;  %v11875_v29 = vadd.f32 %v5203_v52, %v5069_v9 }
 0x26f   :  { %v11862_v50 = vadd.f32 %v5203_v52, %v5071_v5 }
 0x270   :  { %v5246_v9 = vmul.f32 %v11875_v29, %v11875_v29 }
 0x271   :  { %v11840_v36 = vpop.f32.mrb[96].mxu0  ;;  %v5247_v61 = vmul.f32 %v11862_v50, %v11862_v50 }
 0x272   :  { %v5077_v2 = vpop.f32.mrb[97].mxu0  ;;  %v11909_v24 = vadd.f32 %v5208_v55, %v11840_v36 }
 0x273   :  { %v11894_v56 = vadd.f32 %v5208_v55, %v5077_v2  ;;  %v9020_v15 = vpack.c.bf16 %v5247_v61, %v5242_v8  ;;  %v5241_v2 = vmul.f32 %v11888_v35, %v11888_v35  ;;  %v5674_v61 = vld [vmem:[%s14682_s6 + $0xa0] sm:$0xff] }
 0x275   :  { %v5081_v44 = vpop.f32.mrb[98].mxu0 }
 0x276   :  { %v5083_v59 = vpop.f32.mrb[99].mxu0  ;;  %v11898_v5 = vadd.f32 %v5213_v11, %v5081_v44  ;;  %v5235_v44 = vld [vmem:[%s14683_s5] sm:$0xff] }
 0x277   :  { %v11881_v31 = vadd.f32 %v5213_v11, %v5083_v59  ;;  %v5252_v59 = vmul.f32 %v11894_v56, %v11894_v56 }
 0x279   :  { %v5257_v62 = vmul.f32 %v11881_v31, %v11881_v31 }
 0x27a   :  { %v8640_v42 = vpop.f32.mrb[100].mxu0 }
 0x27b   :  { %v5152_v60 = vpop.f32.mrb[101].mxu0 }
 0x27e   :  { %v8643_v0 = vpop.f32.mrb[102].mxu0 }
 0x27f   :  { %v5162_v39 = vpop.f32.mrb[103].mxu0 }
 0x290   :  { %v8626_v46 = vpop.f32.mrb[96].mxu1 }
 0x291   :  { %v9868_v10 = vadd.f32 %v8640_v42, %v8626_v46  ;;  %v4852_v16 = vpop.f32.mrb[97].mxu1  ;;  %v9022_v42 = vpack.c.bf16 %v5246_v9, %v5241_v2  ;;  %v5251_v46 = vmul.f32 %v11909_v24, %v11909_v24  ;;  %v5682_v9 = vld [vmem:[%s14682_s6 + $0xe0] sm:$0xff] }
 0x292   :  { %v9869_v28 = vadd.f32 %v5152_v60, %v4852_v16  ;;  %v5256_v60 = vmul.f32 %v11898_v5, %v11898_v5 }
 0x293   :  { %v11902_v30 = vadd.f32 %v9868_v10, %v5203_v52  ;;  %v5236_v10 = vld [vmem:[%s14683_s5 + $0x8] sm:$0xff] }
 0x294   :  { %v8629_v33 = vpop.f32.mrb[98].mxu1  ;;  %v11904_v14 = vadd.f32 %v9869_v28, %v5198_v1  ;;  %v9026_v16 = vpack.c.bf16 %v5256_v60, %v5251_v46  ;;  %v5699_v60 = vld [vmem:[%s14682_s6 + $0x168] sm:$0xff]  ;;  %v5698_v46 = vld [vmem:[%s14682_s6 + $0x160] sm:$0xff] }
 0x295   :  { %v11842_v6 = vadd.f32 %v8643_v0, %v8629_v33  ;;  %v4862_v22 = vpop.f32.mrb[99].mxu1  ;;  %v5248_v0 = vmul.f32 %v11902_v30, %v11902_v30  ;;  %v5237_v33 = vld [vmem:[%s14683_s5 + $0x10] sm:$0xff] }
 0x296   :  { %v11844_v32 = vadd.f32 %v5162_v39, %v4862_v22  ;;  %v5243_v36 = vmul.f32 %v11904_v14, %v11904_v14  ;;  %v9024_v39 = vpack.c.bf16 %v5257_v62, %v5252_v59  ;;  %v5691_v62 = vld [vmem:[%s14682_s6 + $0x128] sm:$0xff]  ;;  %v5690_v59 = vld [vmem:[%s14682_s6 + $0x120] sm:$0xff] }
 0x297   :  { %v11935_v22 = vadd.f32 %v11842_v6, %v5213_v11  ;;  %v5655_v6 = vld [vmem:[%s14682_s6 + $0x8] sm:$0xff] }
 0x298   :  { %v4974_v45 = vpop.f32.mrb[88].mxu1  ;;  %v9028_v28 = vpack.c.bf16 %v5248_v0, %v5243_v36 }
 0x299   :  { %v4976_v53 = vpop.f32.mrb[89].mxu1  ;;  %v11848_v49 = vadd.f32 %v5198_v1, %v4974_v45  ;;  %v11938_v45 = vadd.f32 %v11844_v32, %v5208_v55  ;;  %v5659_v32 = vld [vmem:[%s14682_s6 + $0x28] sm:$0xff] }
 0x29a   :  { %v11846_v17 = vadd.f32 %v5198_v1, %v4976_v53  ;;  %v5238_v53 = vld [vmem:[%s14683_s5 + $0x18] sm:$0xff]  ;;  %v5258_v1 = vmul.f32 %v11935_v22, %v11935_v22 }
 0x29b   :  { %v5239_v4 = vmul.f32 %v11848_v49, %v11848_v49 }
 0x29c   :  { %v4980_v12 = vpop.f32.mrb[90].mxu1  ;;  %v5240_v27 = vmul.f32 %v11846_v17, %v11846_v17 }
 0x29d   :  { %v11850_v48 = vadd.f32 %v5203_v52, %v4980_v12  ;;  %v4982_v40 = vpop.f32.mrb[91].mxu1 }
 0x29e   :  { %v11852_v54 = vadd.f32 %v5203_v52, %v4982_v40  ;;  %v5253_v52 = vmul.f32 %v11938_v45, %v11938_v45  ;;  %v9036_v40 = vpack.c.bf16 %v5659_v32, %v5655_v6  ;;  %v5715_v6 = vld [vmem:[%s14682_s6 + $0x1e8] sm:$0xff] }
 0x29f   :  { %v5244_v57 = vmul.f32 %v11850_v48, %v11850_v48 }
 0x2a0   :  { %v5245_v37 = vmul.f32 %v11852_v54, %v11852_v54  ;;  %v4986_v26 = vpop.f32.mrb[92].mxu1  ;;  %v9032_v12 = vpack.c.bf16 %v5258_v1, %v5253_v52  ;;  %v5706_v1 = vld [vmem:[%s14682_s6 + $0x1a0] sm:$0xff]  ;;  %v5711_v52 = vld [vmem:[%s14682_s6 + $0x1c8] sm:$0xff] }
 0x2a1   :  { %v4988_v18 = vpop.f32.mrb[93].mxu1  ;;  %v9014_v7 = vpack.c.bf16 %v5244_v57, %v5239_v4  ;;  %v11866_v20 = vadd.f32 %v5208_v55, %v4986_v26  ;;  %v5654_v57 = vld [vmem:[%s14682_s6] sm:$0xff]  ;;  %v5667_v26 = vld [vmem:[%s14682_s6 + $0x68] sm:$0xff] }
 0x2a2   :  { %v9012_v51 = vpack.c.bf16 %v5245_v37, %v5240_v27  ;;  %v11864_v13 = vadd.f32 %v5208_v55, %v4988_v18  ;;  %v5658_v27 = vld [vmem:[%s14682_s6 + $0x20] sm:$0xff]  ;;  %v5663_v37 = vld [vmem:[%s14682_s6 + $0x48] sm:$0xff] }
 0x2a3   :  { %v5249_v47 = vmul.f32 %v11866_v20, %v11866_v20  ;;  %v9038_v4 = vpack.c.bf16 %v5658_v27, %v5654_v57  ;;  %v9040_v18 = vpack.c.bf16 %v5667_v26, %v5663_v37  ;;  %v5666_v55 = vld [vmem:[%s14682_s6 + $0x60] sm:$0xff]  ;;  %v5719_v37 = vld [vmem:[%s14682_s6 + $0x208] sm:$0xff] }
 0x2a4   :  { %v4992_v38 = vpop.f32.mrb[94].mxu1  ;;  %9013 = vmatprep.subr.bf16.mxu0 %v9012_v51  ;;  %v5250_v41 = vmul.f32 %v11864_v13, %v11864_v13  ;;  %v5662_v51 = vld [vmem:[%s14682_s6 + $0x40] sm:$0xff]  ;;  %v5723_v26 = vld [vmem:[%s14682_s6 + $0x228] sm:$0xff] }
 0x2a5   :  { %v11868_v63 = vadd.f32 %v5213_v11, %v4992_v38  ;;  %v4994_v19 = vpop.f32.mrb[95].mxu1  ;;  %9015 = vmatpush1.bf16.msra.mxu0 %v9014_v7  ;;  %v5671_v7 = vld [vmem:[%s14682_s6 + $0x88] sm:$0xff]  ;;  %v9042_v38 = vpack.c.bf16 %v5666_v55, %v5662_v51  ;;  %v5714_v57 = vld [vmem:[%s14682_s6 + $0x1e0] sm:$0xff]  ;;  %v5725_v51 = vld [vmem:[%s14682_s6 + $0x238] sm:$0xff] }
 0x2a6   :  { %v11873_v43 = vadd.f32 %v5213_v11, %v4994_v19  ;;  %v5675_v11 = vld [vmem:[%s14682_s6 + $0xa8] sm:$0xff]  ;;  %v5718_v55 = vld [vmem:[%s14682_s6 + $0x200] sm:$0xff] }
 0x2a7   :  { %v5254_v25 = vmul.f32 %v11868_v63, %v11868_v63  ;;  %v9044_v19 = vpack.c.bf16 %v5675_v11, %v5671_v7  ;;  %v5722_v7 = vld [vmem:[%s14682_s6 + $0x220] sm:$0xff] }
 0x2a8   :  { %v5255_v58 = vmul.f32 %v11873_v43, %v11873_v43 }
 0x2a9   :  { %v9018_v21 = vpack.c.bf16 %v5254_v25, %v5249_v47  ;;  %v5670_v25 = vld [vmem:[%s14682_s6 + $0x80] sm:$0xff] }
 0x2aa   :  { %v9016_v34 = vpack.c.bf16 %v5255_v58, %v5250_v41  ;;  %v5679_v41 = vld [vmem:[%s14682_s6 + $0xc8] sm:$0xff]  ;;  %v9046_v47 = vpack.c.bf16 %v5674_v61, %v5670_v25  ;;  %v5724_v25 = vld [vmem:[%s14682_s6 + $0x230] sm:$0xff] }
 0x2ab   :  { %v5683_v58 = vld [vmem:[%s14682_s6 + $0xe8] sm:$0xff] }
 0x2ac   :  { %9017 = vmatprep.subr.bf16.mxu0 %v9016_v34  ;;  %v9048_v8 = vpack.c.bf16 %v5683_v58, %v5679_v41  ;;  %v5678_v34 = vld [vmem:[%s14682_s6 + $0xc0] sm:$0xff]  ;;  %v5727_v41 = vld [vmem:[%s14682_s6 + $0x248] sm:$0xff] }
 0x2ad   :  { %9019 = vmatpush1.bf16.msra.mxu0 %v9018_v21  ;;  %v5687_v21 = vld [vmem:[%s14682_s6 + $0x108] sm:$0xff] }
 0x2ae   :  { %9021 = vmatprep.subr.bf16.mxu0 %v9020_v15  ;;  %v9050_v15 = vpack.c.bf16 %v5682_v9, %v5678_v34  ;;  %v9052_v2 = vpack.c.bf16 %v5691_v62, %v5687_v21  ;;  %v5731_v58 = vld [vmem:[%s14682_s6 + $0x268] sm:$0xff]  ;;  %v5733_v34 = vld [vmem:[%s14682_s6 + $0x278] sm:$0xff]  ;;  %v5726_v9 = vld [vmem:[%s14682_s6 + $0x240] sm:$0xff] }
 0x2af   :  { %v5730_v21 = vld [vmem:[%s14682_s6 + $0x260] sm:$0xff] }
 0x2b0   :  { %8340 = vmatmul.mubr.msk.f32.vlgmr.msra.gmra.mrb[104].mxu0 %vm2540_vm4, %v5235_v44 }
 0x2b1   :  { %9023 = vmatpush1.bf16.msra.mxu0 %v9022_v42  ;;  %5341 = vmatprep.mubr.f32.mxu0 %v10183_v3  ;;  %v5695_v42 = vld [vmem:[%s14682_s6 + $0x148] sm:$0xff] }
 0x2b2   :  { %9025 = vmatprep.subr.bf16.mxu0 %v9024_v39  ;;  %v9056_v36 = vpack.c.bf16 %v5699_v60, %v5695_v42  ;;  %v5694_v39 = vld [vmem:[%s14682_s6 + $0x140] sm:$0xff]  ;;  %v5735_v42 = vld [vmem:[%s14682_s6 + $0x288] sm:$0xff] }
 0x2b3   :  { %v5739_v60 = vld [vmem:[%s14682_s6 + $0x2a8] sm:$0xff] }
 0x2b4   :  { %8341 = vmatmul.mubr.msk.f32.gmra.mrb[106].mxu0 %vm2540_vm4, %v5236_v10 }
 0x2b5   :  { %9027 = vmatpush1.bf16.msra.mxu0 %v9026_v16  ;;  %5347 = vmatprep.mubr.f32.mxu0 %v10183_v3  ;;  %v5707_v16 = vld [vmem:[%s14682_s6 + $0x1a8] sm:$0xff] }
 0x2b6   :  { %9029 = vmatprep.subr.bf16.mxu0 %v9028_v28 }
 0x2b8   :  { %8342 = vmatmul.mubr.msk.f32.gmra.mrb[108].mxu0 %vm2540_vm4, %v5237_v33 }
 0x2b9   :  { %5353 = vmatprep.mubr.f32.mxu0 %v10183_v3 }
 0x2bc   :  { %8343 = vmatmul.mubr.msk.f32.gmra.mrb[110].mxu0 %vm2540_vm4, %v5238_v53 }
 0x2bd   :  { %5424 = vmatprep.mubr.f32.mxu0 %v10183_v3 }
 0x2c0   :  { %8344 = vmatmul.mubr.msk.f32.vlgmr.msra.gmra.mrb[112].mxu0 %vm2540_vm4, %v5235_v44 }
 0x2c1   :  { %9031 = vmatpush3.bf16.msra.mxu0 %v9028_v28  ;;  %5430 = vmatprep.mubr.f32.mxu0 %v10183_v3  ;;  %v9058_v28 = vpack.c.bf16 %v5698_v46, %v5694_v39  ;;  %v5741_v39 = vld [vmem:[%s14682_s6 + $0x2b8] sm:$0xff]  ;;  %v5734_v46 = vld [vmem:[%s14682_s6 + $0x280] sm:$0xff] }
 0x2c2   :  { %9033 = vmatprep.subr.bf16.mxu0 %v9032_v12 }
 0x2c4   :  { %8345 = vmatmul.mubr.msk.f32.gmra.mrb[114].mxu0 %vm2540_vm4, %v5236_v10 }
 0x2c5   :  { %9035 = vmatpush3.bf16.msra.mxu0 %v9032_v12  ;;  %5436 = vmatprep.mubr.f32.mxu0 %v10183_v3  ;;  %v9064_v12 = vpack.c.bf16 %v5715_v6, %v5711_v52  ;;  %v5743_v52 = vld [vmem:[%s14682_s6 + $0x2c8] sm:$0xff] }
 0x2c6   :  { %9037 = vmatprep.subr.bf16.mxu0 %v9036_v40  ;;  %v5710_v40 = vld [vmem:[%s14682_s6 + $0x1c0] sm:$0xff]  ;;  %v5747_v6 = vld [vmem:[%s14682_s6 + $0x2e8] sm:$0xff] }
 0x2c7   :  { %v9066_v27 = vpack.c.bf16 %v5714_v57, %v5710_v40  ;;  %v5749_v40 = vld [vmem:[%s14682_s6 + $0x2f8] sm:$0xff]  ;;  %v5742_v57 = vld [vmem:[%s14682_s6 + $0x2c0] sm:$0xff] }
 0x2c8   :  { %8346 = vmatmul.mubr.msk.f32.gmra.mrb[116].mxu0 %vm2540_vm4, %v5237_v33 }
 0x2c9   :  { %5442 = vmatprep.mubr.f32.mxu0 %v10183_v3 }
 0x2cc   :  { %8347 = vmatmul.mubr.msk.f32.gmra.mrb[118].mxu0 %vm2540_vm4, %v5238_v53 }
 0x2cd   :  { %8652 = vmatprep.mubr.msk.f32.mxu0 %vm2540_vm4, %v5235_v44  ;;  %v5686_v44 = vld [vmem:[%s14682_s6 + $0x100] sm:$0xff] }
 0x2ce   :  { %v9054_v0 = vpack.c.bf16 %v5690_v59, %v5686_v44  ;;  %v5732_v44 = vld [vmem:[%s14682_s6 + $0x270] sm:$0xff] }
 0x2d0   :  { %8653 = vmatmul.mubr.msk.f32.vlgmr.msra.gmra.mrb[120].mxu0 %vm2540_vm4, %v5236_v10  ;;  %v5703_v10 = vld [vmem:[%s14682_s6 + $0x188] sm:$0xff] }
 0x2d1   :  { %8655 = vmatprep.mubr.msk.f32.mxu0 %vm2540_vm4, %v5237_v33  ;;  %9039 = vmatpush1.bf16.msra.mxu0 %v9038_v4  ;;  %v9060_v33 = vpack.c.bf16 %v5707_v16, %v5703_v10  ;;  %v5721_v4 = vld [vmem:[%s14682_s6 + $0x218] sm:$0xff]  ;;  %v5738_v10 = vld [vmem:[%s14682_s6 + $0x2a0] sm:$0xff] }
 0x2d2   :  { %9041 = vmatprep.subr.bf16.mxu0 %v9040_v18  ;;  %v9068_v18 = vpack.c.bf16 %v5723_v26, %v5719_v37  ;;  %v9228_v11 = vpack.c.bf16 %v5725_v51, %v5721_v4  ;;  %v5744_v4 = vld [vmem:[%s14682_s6 + $0x2d0] sm:$0xff] }
 0x2d4   :  { %8656 = vmatmul.mubr.msk.f32.gmra.mrb[122].mxu0 %vm2540_vm4, %v5238_v53  ;;  %v5702_v53 = vld [vmem:[%s14682_s6 + $0x180] sm:$0xff]  ;;  %9229 = vmatprep.subr.bf16.mxu1 %v9228_v11  ;;  %v5753_v11 = vld [vmem:[%s14682_s6 + $0x318] sm:$0xff] }
 0x2d5   :  { %9043 = vmatpush1.bf16.msra.mxu0 %v9042_v38  ;;  %v9062_v32 = vpack.c.bf16 %v5706_v1, %v5702_v53  ;;  %v9070_v38 = vpack.c.bf16 %v5722_v7, %v5718_v55  ;;  %v5740_v53 = vld [vmem:[%s14682_s6 + $0x2b0] sm:$0xff]  ;;  %v5751_v55 = vld [vmem:[%s14682_s6 + $0x308] sm:$0xff] }
 0x2d6   :  { %9045 = vmatprep.subr.bf16.mxu0 %v9044_v19  ;;  %v5720_v19 = vld [vmem:[%s14682_s6 + $0x210] sm:$0xff]  ;;  %v5755_v7 = vld [vmem:[%s14682_s6 + $0x328] sm:$0xff] }
 0x2d7   :  { %v9230_v61 = vpack.c.bf16 %v5724_v25, %v5720_v19  ;;  %v5757_v19 = vld [vmem:[%s14682_s6 + $0x338] sm:$0xff]  ;;  %v5750_v25 = vld [vmem:[%s14682_s6 + $0x300] sm:$0xff] }
 0x2d9   :  { %9047 = vmatpush1.bf16.msra.mxu0 %v9046_v47  ;;  %v5729_v47 = vld [vmem:[%s14682_s6 + $0x258] sm:$0xff]  ;;  %9231 = vmatpush1.bf16.msra.mxu1 %v9230_v61  ;;  %v5754_v61 = vld [vmem:[%s14682_s6 + $0x320] sm:$0xff] }
 0x2da   :  { %9049 = vmatprep.subr.bf16.mxu0 %v9048_v8  ;;  %v9072_v8 = vpack.c.bf16 %v5731_v58, %v5727_v41  ;;  %v9232_v62 = vpack.c.bf16 %v5733_v34, %v5729_v47  ;;  %v9244_v41 = vpack.c.bf16 %v5757_v19, %v5753_v11  ;;  %v9086_v58 = vpack.c.bf16 %v5754_v61, %v5750_v25  ;;  %v5752_v47 = vld [vmem:[%s14682_s6 + $0x310] sm:$0xff]  ;;  %v5783_v25 = vld [vmem:[%s14682_s6 + $0x408] sm:$0xff] }
 0x2db   :  { %v5776_v11 = vld [vmem:[%s14682_s6 + $0x3d0] sm:$0xff]  ;;  %v5787_v61 = vld [vmem:[%s14682_s6 + $0x428] sm:$0xff] }
 0x2dc   :  { %9233 = vmatprep.subr.bf16.mxu1 %v9232_v62  ;;  %v5761_v62 = vld [vmem:[%s14682_s6 + $0x358] sm:$0xff] }
 0x2dd   :  { %9051 = vmatpush1.bf16.msra.mxu0 %v9050_v15  ;;  %v9074_v15 = vpack.c.bf16 %v5730_v21, %v5726_v9  ;;  %v5759_v9 = vld [vmem:[%s14682_s6 + $0x348] sm:$0xff] }
 0x2de   :  { %9053 = vmatprep.subr.bf16.mxu0 %v9052_v2  ;;  %v5728_v2 = vld [vmem:[%s14682_s6 + $0x250] sm:$0xff]  ;;  %v5763_v21 = vld [vmem:[%s14682_s6 + $0x368] sm:$0xff] }
 0x2df   :  { %v9234_v59 = vpack.c.bf16 %v5732_v44, %v5728_v2  ;;  %v5765_v2 = vld [vmem:[%s14682_s6 + $0x378] sm:$0xff]  ;;  %v5758_v44 = vld [vmem:[%s14682_s6 + $0x340] sm:$0xff] }
 0x2e1   :  { %9055 = vmatpush1.bf16.msra.mxu0 %v9054_v0  ;;  %v5737_v0 = vld [vmem:[%s14682_s6 + $0x298] sm:$0xff]  ;;  %9235 = vmatpush1.bf16.msra.mxu1 %v9234_v59  ;;  %v5762_v59 = vld [vmem:[%s14682_s6 + $0x360] sm:$0xff] }
 0x2e2   :  { %9057 = vmatprep.subr.bf16.mxu0 %v9056_v36  ;;  %v9076_v36 = vpack.c.bf16 %v5739_v60, %v5735_v42  ;;  %v9236_v16 = vpack.c.bf16 %v5741_v39, %v5737_v0  ;;  %v9248_v42 = vpack.c.bf16 %v5765_v2, %v5761_v62  ;;  %v9090_v60 = vpack.c.bf16 %v5762_v59, %v5758_v44  ;;  %v5760_v0 = vld [vmem:[%s14682_s6 + $0x350] sm:$0xff] }
 0x2e4   :  { %9237 = vmatprep.subr.bf16.mxu1 %v9236_v16  ;;  %v5769_v16 = vld [vmem:[%s14682_s6 + $0x398] sm:$0xff] }
 0x2e5   :  { %9059 = vmatpush1.bf16.msra.mxu0 %v9058_v28  ;;  %v9078_v28 = vpack.c.bf16 %v5738_v10, %v5734_v46  ;;  %v5767_v46 = vld [vmem:[%s14682_s6 + $0x388] sm:$0xff] }
 0x2e6   :  { %9061 = vmatprep.subr.bf16.mxu0 %v9060_v33  ;;  %v5736_v33 = vld [vmem:[%s14682_s6 + $0x290] sm:$0xff]  ;;  %v5771_v10 = vld [vmem:[%s14682_s6 + $0x3a8] sm:$0xff] }
 0x2e7   :  { %v9238_v1 = vpack.c.bf16 %v5740_v53, %v5736_v33  ;;  %v5773_v33 = vld [vmem:[%s14682_s6 + $0x3b8] sm:$0xff]  ;;  %v5766_v53 = vld [vmem:[%s14682_s6 + $0x380] sm:$0xff] }
 0x2e9   :  { %9063 = vmatpush1.bf16.msra.mxu0 %v9062_v32  ;;  %v5745_v32 = vld [vmem:[%s14682_s6 + $0x2d8] sm:$0xff]  ;;  %9239 = vmatpush1.bf16.msra.mxu1 %v9238_v1  ;;  %v5770_v1 = vld [vmem:[%s14682_s6 + $0x3a0] sm:$0xff] }
 0x2ea   :  { %9065 = vmatprep.subr.bf16.mxu0 %v9064_v12  ;;  %v9080_v12 = vpack.c.bf16 %v5747_v6, %v5743_v52  ;;  %v9240_v37 = vpack.c.bf16 %v5749_v40, %v5745_v32  ;;  %v9252_v52 = vpack.c.bf16 %v5773_v33, %v5769_v16  ;;  %v9094_v6 = vpack.c.bf16 %v5770_v1, %v5766_v53  ;;  %v5768_v32 = vld [vmem:[%s14682_s6 + $0x390] sm:$0xff] }
 0x2ec   :  { %9241 = vmatprep.subr.bf16.mxu1 %v9240_v37  ;;  %v5777_v37 = vld [vmem:[%s14682_s6 + $0x3d8] sm:$0xff] }
 0x2ed   :  { %9067 = vmatpush1.bf16.msra.mxu0 %v9066_v27  ;;  %v5746_v27 = vld [vmem:[%s14682_s6 + $0x2e0] sm:$0xff] }
 0x2ee   :  { %9069 = vmatprep.subr.bf16.mxu0 %v9068_v18  ;;  %v9082_v26 = vpack.c.bf16 %v5746_v27, %v5742_v57  ;;  %v5748_v18 = vld [vmem:[%s14682_s6 + $0x2f0] sm:$0xff]  ;;  %v5775_v57 = vld [vmem:[%s14682_s6 + $0x3c8] sm:$0xff] }
 0x2ef   :  { %v9242_v51 = vpack.c.bf16 %v5748_v18, %v5744_v4  ;;  %v5779_v27 = vld [vmem:[%s14682_s6 + $0x3e8] sm:$0xff]  ;;  %v5781_v4 = vld [vmem:[%s14682_s6 + $0x3f8] sm:$0xff]  ;;  %v5774_v18 = vld [vmem:[%s14682_s6 + $0x3c0] sm:$0xff] }
 0x2f1   :  { %9071 = vmatpush1.bf16.msra.mxu0 %v9070_v38  ;;  %9243 = vmatpush1.bf16.msra.mxu1 %v9242_v51  ;;  %v9084_v38 = vpack.c.bf16 %v5755_v7, %v5751_v55  ;;  %v5778_v51 = vld [vmem:[%s14682_s6 + $0x3e0] sm:$0xff]  ;;  %v9256_v55 = vpack.c.bf16 %v5781_v4, %v5777_v37 }
 0x2f2   :  { %9073 = vmatprep.subr.bf16.mxu0 %v9072_v8  ;;  %v5756_v8 = vld [vmem:[%s14682_s6 + $0x330] sm:$0xff]  ;;  %9245 = vmatprep.subr.bf16.mxu1 %v9244_v41  ;;  %v9098_v7 = vpack.c.bf16 %v5778_v51, %v5774_v18  ;;  %v5785_v41 = vld [vmem:[%s14682_s6 + $0x418] sm:$0xff] }
 0x2f3   :  { %v9246_v34 = vpack.c.bf16 %v5756_v8, %v5752_v47  ;;  %v5789_v47 = vld [vmem:[%s14682_s6 + $0x438] sm:$0xff] }
 0x2f4   :  { %v9260_v8 = vpack.c.bf16 %v5789_v47, %v5785_v41 }
 0x2f5   :  { %9075 = vmatpush1.bf16.msra.mxu0 %v9074_v15  ;;  %9247 = vmatpush1.bf16.msra.mxu1 %v9246_v34  ;;  %v9088_v15 = vpack.c.bf16 %v5763_v21, %v5759_v9 }
 0x2f6   :  { %9077 = vmatprep.subr.bf16.mxu0 %v9076_v36  ;;  %v5764_v36 = vld [vmem:[%s14682_s6 + $0x370] sm:$0xff]  ;;  %9249 = vmatprep.subr.bf16.mxu1 %v9248_v42 }
 0x2f7   :  { %v9250_v39 = vpack.c.bf16 %v5764_v36, %v5760_v0 }
 0x2f9   :  { %9079 = vmatpush1.bf16.msra.mxu0 %v9078_v28  ;;  %9251 = vmatpush1.bf16.msra.mxu1 %v9250_v39  ;;  %v9092_v28 = vpack.c.bf16 %v5771_v10, %v5767_v46 }
 0x2fa   :  { %9081 = vmatprep.subr.bf16.mxu0 %v9080_v12  ;;  %v5772_v12 = vld [vmem:[%s14682_s6 + $0x3b0] sm:$0xff]  ;;  %9253 = vmatprep.subr.bf16.mxu1 %v9252_v52 }
 0x2fb   :  { %v9254_v40 = vpack.c.bf16 %v5772_v12, %v5768_v32 }
 0x2fd   :  { %9083 = vmatpush1.bf16.msra.mxu0 %v9082_v26  ;;  %9255 = vmatpush1.bf16.msra.mxu1 %v9254_v40  ;;  %v9096_v26 = vpack.c.bf16 %v5779_v27, %v5775_v57 }
 0x2fe   :  { %9085 = vmatprep.subr.bf16.mxu0 %v9084_v38  ;;  %v5780_v38 = vld [vmem:[%s14682_s6 + $0x3f0] sm:$0xff]  ;;  %9257 = vmatprep.subr.bf16.mxu1 %v9256_v55 }
 0x2ff   :  { %v9258_v19 = vpack.c.bf16 %v5780_v38, %v5776_v11 }
 0x301   :  { %9087 = vmatpush1.bf16.msra.mxu0 %v9086_v58  ;;  %9259 = vmatpush1.bf16.msra.mxu1 %v9258_v19  ;;  %v9100_v58 = vpack.c.bf16 %v5787_v61, %v5783_v25 }
 0x302   :  { %9089 = vmatprep.subr.bf16.mxu0 %v9088_v15  ;;  %9261 = vmatprep.subr.bf16.mxu1 %v9260_v8 }
 0x305   :  { %9091 = vmatpush1.bf16.msra.mxu0 %v9090_v60 }
 0x306   :  { %9093 = vmatprep.subr.bf16.mxu0 %v9092_v28 }
 0x309   :  { %9095 = vmatpush1.bf16.msra.mxu0 %v9094_v6 }
 0x30a   :  { %9097 = vmatprep.subr.bf16.mxu0 %v9096_v26 }
 0x30d   :  { %9099 = vmatpush1.bf16.msra.mxu0 %v9098_v7 }
 0x30e   :  { %9101 = vmatprep.subr.bf16.mxu0 %v9100_v58 }
 0x383   :  { %v5337_v34 = vpop.f32.mrb[104].mxu0 }
 0x384   :  { %v5338_v9 = vadd.f32 1.0, %v5337_v34  ;;  %v5339_v21 = vpop.f32.mrb[105].mxu0 }
 0x385   :  { %v5340_v62 = vadd.f32 1.0, %v5339_v21 }
 0x386   :  { %10098 = vlog2.f32 %v5338_v9 }
 0x387   :  { %10100 = vlog2.f32 %v5340_v62  ;;  %v5343_v15 = vpop.f32.mrb[106].mxu0 }
 0x388   :  { %v5344_v2 = vadd.f32 1.0, %v5343_v15  ;;  %v5345_v44 = vpop.f32.mrb[107].mxu0 }
 0x389   :  { %v5346_v59 = vadd.f32 1.0, %v5345_v44 }
 0x38a   :  { %10102 = vlog2.f32 %v5344_v2 }
 0x38b   :  { %10104 = vlog2.f32 %v5346_v59  ;;  %v5349_v42 = vpop.f32.mrb[108].mxu0 }
 0x38c   :  { %v5350_v60 = vadd.f32 1.0, %v5349_v42  ;;  %v5351_v0 = vpop.f32.mrb[109].mxu0 }
 0x38d   :  { %v5352_v36 = vadd.f32 1.0, %v5351_v0  ;;  %v5782_v0 = vld [vmem:[%s14682_s6 + $0x400] sm:$0xff] }
 0x38e   :  { %10106 = vlog2.f32 %v5350_v60 }
 0x38f   :  { %10108 = vlog2.f32 %v5352_v36  ;;  %v5355_v39 = vpop.f32.mrb[110].mxu0  ;;  %v5786_v36 = vld [vmem:[%s14682_s6 + $0x420] sm:$0xff] }
 0x390   :  { %v10099_v46 = vpop.eup %10098  ;;  %v5356_v10 = vadd.f32 1.0, %v5355_v39  ;;  %v5357_v16 = vpop.f32.mrb[111].mxu0  ;;  %v5784_v39 = vld [vmem:[%s14682_s6 + $0x410] sm:$0xff] }
 0x391   :  { %v10101_v28 = vpop.eup %10100  ;;  %v5535_v33 = vmul.f32 0.6931472, %v10099_v46  ;;  %v5358_v53 = vadd.f32 1.0, %v5357_v16  ;;  %v5788_v16 = vld [vmem:[%s14682_s6 + $0x430] sm:$0xff] }
 0x392   :  { %v5537_v1 = vmul.f32 0.6931472, %v10101_v28  ;;  %10110 = vlog2.f32 %v5356_v10  ;;  %v5791_v28 = vld [vmem:[%s14682_s6 + $0x448] sm:$0xff] }
 0x393   :  { %v5574_v52 = vmul.f32 -0.75, %v5535_v33  ;;  %10112 = vlog2.f32 %v5358_v53  ;;  %v12262_v6 = vpop.f32.mrb[112].mxu0  ;;  %v5795_v33 = vld [vmem:[%s14682_s6 + $0x468] sm:$0xff] }
 0x394   :  { %v10103_v32 = vpop.eup %10102  ;;  %v5575_v12 = vmul.f32 -0.75, %v5537_v1  ;;  %v5428_v40 = vpop.f32.mrb[113].mxu0 }
 0x395   :  { %v10105_v57 = vpop.eup %10104  ;;  %v5594_v27 = vmul.f32 1.442695, %v5574_v52  ;;  %v5545_v37 = vmul.f32 0.6931472, %v10103_v32  ;;  %v5429_v26 = vadd.f32 1.0, %v5428_v40  ;;  %v5793_v52 = vld [vmem:[%s14682_s6 + $0x458] sm:$0xff] }
 0x396   :  { %v5596_v4 = vmul.f32 1.442695, %v5575_v12  ;;  %v5547_v18 = vmul.f32 0.6931472, %v10105_v57  ;;  %v5797_v32 = vld [vmem:[%s14682_s6 + $0x478] sm:$0xff]  ;;  %v9102_v57 = vpack.c.bf16 %v5786_v36, %v5782_v0  ;;  %v5798_v0 = vld [vmem:[%s14682_s6 + $0x480] sm:$0xff] }
 0x397   :  { %10114 = vpow2.f32 %v5594_v27  ;;  %v5579_v51 = vmul.f32 -0.75, %v5545_v37  ;;  %v12264_v55 = vpop.f32.mrb[114].mxu0  ;;  %v5802_v36 = vld [vmem:[%s14682_s6 + $0x4a0] sm:$0xff] }
 0x398   :  { %v10107_v7 = vpop.eup %10106  ;;  %10116 = vpow2.f32 %v5596_v4  ;;  %v5580_v11 = vmul.f32 -0.75, %v5547_v18  ;;  %v12266_v38 = vpop.f32.mrb[115].mxu0  ;;  %v9262_v4 = vpack.c.bf16 %v5788_v16, %v5784_v39  ;;  %v9104_v18 = vpack.c.bf16 %v5795_v33, %v5791_v28  ;;  %v5800_v33 = vld [vmem:[%s14682_s6 + $0x490] sm:$0xff] }
 0x399   :  { %v10109_v19 = vpop.eup %10108  ;;  %v5604_v25 = vmul.f32 1.442695, %v5579_v51  ;;  %v5555_v61 = vmul.f32 0.6931472, %v10107_v7  ;;  %10118 = vlog2.f32 %v5429_v26  ;;  %v5790_v51 = vld [vmem:[%s14682_s6 + $0x440] sm:$0xff] }
 0x39a   :  { %v5606_v41 = vmul.f32 1.442695, %v5580_v11  ;;  %v5557_v58 = vmul.f32 0.6931472, %v10109_v19  ;;  %v5794_v7 = vld [vmem:[%s14682_s6 + $0x460] sm:$0xff] }
 0x39b   :  { %10120 = vpow2.f32 %v5604_v25  ;;  %v5584_v47 = vmul.f32 -0.75, %v5555_v61  ;;  %v12268_v8 = vpop.f32.mrb[116].mxu0  ;;  %v9264_v61 = vpack.c.bf16 %v5797_v32, %v5793_v52  ;;  %v5809_v32 = vld [vmem:[%s14682_s6 + $0x4d8] sm:$0xff] }
 0x39c   :  { %v10111_v34 = vpop.eup %10110  ;;  %10122 = vpow2.f32 %v5606_v41  ;;  %v5585_v9 = vmul.f32 -0.75, %v5557_v58  ;;  %v12270_v21 = vpop.f32.mrb[117].mxu0  ;;  %v5796_v41 = vld [vmem:[%s14682_s6 + $0x470] sm:$0xff]  ;;  %v5799_v58 = vld [vmem:[%s14682_s6 + $0x488] sm:$0xff] }
 0x39d   :  { %v10113_v62 = vpop.eup %10112  ;;  %v5614_v15 = vmul.f32 1.442695, %v5584_v47  ;;  %v5565_v2 = vmul.f32 0.6931472, %v10111_v34  ;;  %v5801_v34 = vld [vmem:[%s14682_s6 + $0x498] sm:$0xff] }
 0x39e   :  { %v5616_v44 = vmul.f32 1.442695, %v5585_v9  ;;  %v5567_v59 = vmul.f32 0.6931472, %v10113_v62  ;;  %v5805_v9 = vld [vmem:[%s14682_s6 + $0x4b8] sm:$0xff] }
 0x39f   :  { %10124 = vpow2.f32 %v5614_v15  ;;  %v5589_v42 = vmul.f32 -0.75, %v5565_v2  ;;  %v12272_v60 = vpop.f32.mrb[118].mxu0  ;;  %v9268_v28 = vpack.c.bf16 %v5805_v9, %v5801_v34 }
 0x3a0   :  { %10126 = vpow2.f32 %v5616_v44  ;;  %v5590_v46 = vmul.f32 -0.75, %v5567_v59  ;;  %v12283_v10 = vpop.f32.mrb[119].mxu0  ;;  %v9106_v59 = vpack.c.bf16 %v5794_v7, %v5790_v51  ;;  %v5810_v51 = vld [vmem:[%s14682_s6 + $0x4e0] sm:$0xff] }
 0x3a1   :  { %v10115_v53 = vpop.eup %10114  ;;  %v5624_v1 = vmul.f32 1.442695, %v5589_v42 }
 0x3a2   :  { %v10117_v12 = vpop.eup %10116  ;;  %v5626_v40 = vmul.f32 1.442695, %v5590_v46  ;;  %v12314_v25 = vmul.f32 %v10115_v53, %v11848_v49  ;;  %v5803_v49 = vld [vmem:[%s14682_s6 + $0x4a8] sm:$0xff]  ;;  %v5804_v53 = vld [vmem:[%s14682_s6 + $0x4b0] sm:$0xff] }
 0x3a3   :  { %v10119_v27 = vpop.eup %10118  ;;  %10128 = vpow2.f32 %v5624_v1  ;;  %v12300_v37 = vpop.f32.mrb[120].mxu0  ;;  %v12303_v26 = vmul.f32 %v10117_v12, %v11846_v17  ;;  %v5792_v17 = vld [vmem:[%s14682_s6 + $0x450] sm:$0xff]  ;;  %v5807_v1 = vld [vmem:[%s14682_s6 + $0x4c8] sm:$0xff]  ;;  %v5813_v12 = vld [vmem:[%s14682_s6 + $0x4f8] sm:$0xff] }
 0x3a4   :  { %10130 = vpow2.f32 %v5626_v40  ;;  %v5541_v11 = vmul.f32 0.6931472, %v10119_v27  ;;  %v12311_v19 = vpop.f32.mrb[121].mxu0  ;;  %v9266_v42 = vpack.c.bf16 %v5796_v41, %v5792_v17  ;;  %v9110_v27 = vpack.c.bf16 %v5802_v36, %v5798_v0  ;;  %v5812_v17 = vld [vmem:[%s14682_s6 + $0x4f0] sm:$0xff]  ;;  %v5815_v41 = vld [vmem:[%s14682_s6 + $0x508] sm:$0xff]  ;;  %v5814_v36 = vld [vmem:[%s14682_s6 + $0x500] sm:$0xff] }
 0x3a5   :  { %v10121_v47 = vpop.eup %10120  ;;  %6038 = vmatprep.mubr.f32.mxu0 %v12303_v26  ;;  %6305 = vmatprep.mubr.f32.mxu1 %v12303_v26 }
 0x3a6   :  { %v10123_v62 = vpop.eup %10122  ;;  %v5577_v15 = vmul.f32 -0.75, %v5541_v11  ;;  %6039 = vmatmul.mubr.f32.vlgmr.msra.gmra.mrb[124].mxu0 %v12314_v25  ;;  %6306 = vmatmul.mubr.f32.vlgmr.msra.gmra.mrb[100].mxu1 %v12314_v25  ;;  %v12352_v16 = vmul.f32 %v10121_v47, %v11850_v48  ;;  %v5811_v48 = vld [vmem:[%s14682_s6 + $0x4e8] sm:$0xff]  ;;  %v5817_v47 = vld [vmem:[%s14682_s6 + $0x518] sm:$0xff] }
 0x3a7   :  { %9103 = vmatpush1.bf16.msra.mxu0 %v9102_v57  ;;  %9263 = vmatpush1.bf16.msra.mxu1 %v9262_v4  ;;  %v12338_v2 = vpop.f32.mrb[122].mxu0  ;;  %v12341_v44 = vmul.f32 %v10123_v62, %v11852_v54  ;;  %v9108_v54 = vpack.c.bf16 %v5803_v49, %v5799_v58  ;;  %v9270_v4 = vpack.c.bf16 %v5804_v53, %v5800_v33  ;;  %v5821_v49 = vld [vmem:[%s14682_s6 + $0x538] sm:$0xff] }
 0x3a8   :  { %v5600_v39 = vmul.f32 1.442695, %v5577_v15  ;;  %v12349_v46 = vpop.f32.mrb[123].mxu0  ;;  %9105 = vmatprep.subr.bf16.mxu0 %v9104_v18  ;;  %9265 = vmatprep.subr.bf16.mxu1 %v9264_v61  ;;  %v5806_v18 = vld [vmem:[%s14682_s6 + $0x4c0] sm:$0xff]  ;;  %v9112_v11 = vpack.c.bf16 %v5811_v48, %v5807_v1  ;;  %v9272_v61 = vpack.c.bf16 %v5813_v12, %v5809_v32  ;;  %v9276_v0 = vpack.c.bf16 %v5821_v49, %v5817_v47  ;;  %v5825_v33 = vld [vmem:[%s14682_s6 + $0x558] sm:$0xff] }
 0x3a9   :  { %v10125_v52 = vpop.eup %10124  ;;  %6044 = vmatprep.mubr.f32.mxu0 %v12341_v44  ;;  %6311 = vmatprep.mubr.f32.mxu1 %v12341_v44  ;;  %v9114_v62 = vpack.c.bf16 %v5810_v51, %v5806_v18  ;;  %v5829_v53 = vld [vmem:[%s14682_s6 + $0x578] sm:$0xff]  ;;  %v5822_v32 = vld [vmem:[%s14682_s6 + $0x540] sm:$0xff]  ;;  %v5824_v18 = vld [vmem:[%s14682_s6 + $0x550] sm:$0xff] }
 0x3aa   :  { %v10127_v40 = vpop.eup %10126  ;;  %10132 = vpow2.f32 %v5600_v39  ;;  %6045 = vmatmul.mubr.f32.gmra.mrb[126].mxu0 %v12352_v16  ;;  %6312 = vmatmul.mubr.f32.gmra.mrb[102].mxu1 %v12352_v16  ;;  %v12386_v7 = vmul.f32 %v10125_v52, %v11866_v20  ;;  %v5819_v20 = vld [vmem:[%s14682_s6 + $0x528] sm:$0xff]  ;;  %v5818_v39 = vld [vmem:[%s14682_s6 + $0x520] sm:$0xff]  ;;  %v5828_v51 = vld [vmem:[%s14682_s6 + $0x570] sm:$0xff] }
 0x3ab   :  { %9107 = vmatpush1.bf16.msra.mxu0 %v9106_v59  ;;  %9267 = vmatpush1.bf16.msra.mxu1 %v9266_v42  ;;  %v12377_v57 = vmul.f32 %v10127_v40, %v11864_v13  ;;  %v5808_v13 = vld [vmem:[%s14682_s6 + $0x4d0] sm:$0xff]  ;;  %v9116_v42 = vpack.c.bf16 %v5819_v20, %v5815_v41  ;;  %v9118_v52 = vpack.c.bf16 %v5818_v39, %v5814_v36  ;;  %v5826_v12 = vld [vmem:[%s14682_s6 + $0x560] sm:$0xff]  ;;  %v5845_v36 = vld [vmem:[%s14682_s6 + $0x5f8] sm:$0xff]  ;;  %v5427_v39 = vadd.f32 1.0, %v12262_v6 }
 0x3ac   :  { %9109 = vmatprep.subr.bf16.mxu0 %v9108_v54  ;;  %9269 = vmatprep.subr.bf16.mxu1 %v9268_v28  ;;  %v9274_v15 = vpack.c.bf16 %v5812_v17, %v5808_v13  ;;  %v5823_v54 = vld [vmem:[%s14682_s6 + $0x548] sm:$0xff]  ;;  %v5837_v13 = vld [vmem:[%s14682_s6 + $0x5b8] sm:$0xff]  ;;  %v9122_v17 = vpack.c.bf16 %v5826_v12, %v5822_v32  ;;  %v9282_v41 = vpack.c.bf16 %v5828_v51, %v5824_v18  ;;  %v5834_v20 = vld [vmem:[%s14682_s6 + $0x5a0] sm:$0xff] }
 0x3ad   :  { %v10129_v58 = vpop.eup %10128  ;;  %6050 = vmatprep.mubr.f32.mxu0 %v12377_v57  ;;  %6317 = vmatprep.mubr.f32.mxu1 %v12377_v57  ;;  %v5827_v28 = vld [vmem:[%s14682_s6 + $0x568] sm:$0xff]  ;;  %v5840_v6 = vld [vmem:[%s14682_s6 + $0x5d0] sm:$0xff]  ;;  %v5849_v32 = vld [vmem:[%s14682_s6 + $0x618] sm:$0xff]  ;;  %10134 = vlog2.f32 %v5427_v39 }
 0x3ae   :  { %v10131_v34 = vpop.eup %10130  ;;  %6051 = vmatmul.mubr.f32.gmra.mrb[128].mxu0 %v12386_v7  ;;  %6318 = vmatmul.mubr.f32.gmra.mrb[104].mxu1 %v12386_v7  ;;  %v12414_v59 = vmul.f32 %v10129_v58, %v11868_v63  ;;  %v5820_v63 = vld [vmem:[%s14682_s6 + $0x530] sm:$0xff]  ;;  %v5830_v58 = vld [vmem:[%s14682_s6 + $0x580] sm:$0xff]  ;;  %v5853_v12 = vld [vmem:[%s14682_s6 + $0x638] sm:$0xff] }
 0x3af   :  { %9111 = vmatpush1.bf16.msra.mxu0 %v9110_v27  ;;  %9271 = vmatpush1.bf16.msra.mxu1 %v9270_v4  ;;  %v12411_v9 = vmul.f32 %v10131_v34, %v11873_v43  ;;  %v5816_v43 = vld [vmem:[%s14682_s6 + $0x510] sm:$0xff]  ;;  %v9120_v27 = vpack.c.bf16 %v5827_v28, %v5823_v54  ;;  %v9280_v4 = vpack.c.bf16 %v5829_v53, %v5825_v33  ;;  %v5838_v28 = vld [vmem:[%s14682_s6 + $0x5c0] sm:$0xff]  ;;  %v5863_v39 = vld [vmem:[%s14682_s6 + $0x688] sm:$0xff] }
 0x3b0   :  { %9113 = vmatprep.subr.bf16.mxu0 %v9112_v11  ;;  %9273 = vmatprep.subr.bf16.mxu1 %v9272_v61  ;;  %v9278_v48 = vpack.c.bf16 %v5820_v63, %v5816_v43  ;;  %v5831_v11 = vld [vmem:[%s14682_s6 + $0x588] sm:$0xff]  ;;  %v5832_v34 = vld [vmem:[%s14682_s6 + $0x590] sm:$0xff]  ;;  %v5435_v43 = vadd.f32 1.0, %v12266_v38  ;;  %v9126_v63 = vpack.c.bf16 %v5834_v20, %v5830_v58  ;;  %v5842_v33 = vld [vmem:[%s14682_s6 + $0x5e0] sm:$0xff] }
 0x3b1   :  { %6056 = vmatprep.mubr.f32.mxu0 %v12411_v9  ;;  %6323 = vmatprep.mubr.f32.mxu1 %v12411_v9  ;;  %v5835_v61 = vld [vmem:[%s14682_s6 + $0x5a8] sm:$0xff]  ;;  %v5844_v38 = vld [vmem:[%s14682_s6 + $0x5f0] sm:$0xff]  ;;  %v9130_v18 = vpack.c.bf16 %v5842_v33, %v5838_v28  ;;  %v5857_v58 = vld [vmem:[%s14682_s6 + $0x658] sm:$0xff]  ;;  %v5445_v28 = vadd.f32 1.0, %v12272_v60 }
 0x3b2   :  { %6057 = vmatmul.mubr.f32.gmra.mrb[130].mxu0 %v12414_v59  ;;  %6324 = vmatmul.mubr.f32.gmra.mrb[106].mxu1 %v12414_v59  ;;  %v9124_v47 = vpack.c.bf16 %v5835_v61, %v5831_v11  ;;  %10136 = vlog2.f32 %v5435_v43  ;;  %v9290_v51 = vpack.c.bf16 %v5844_v38, %v5840_v6  ;;  %v5846_v11 = vld [vmem:[%s14682_s6 + $0x600] sm:$0xff]  ;;  %v5861_v20 = vld [vmem:[%s14682_s6 + $0x678] sm:$0xff]  ;;  %v5867_v43 = vld [vmem:[%s14682_s6 + $0x6a8] sm:$0xff] }
 0x3b3   :  { %9115 = vmatpush1.bf16.msra.mxu0 %v9114_v62  ;;  %9275 = vmatpush1.bf16.msra.mxu1 %v9274_v15  ;;  %v5836_v62 = vld [vmem:[%s14682_s6 + $0x5b0] sm:$0xff]  ;;  %v5839_v15 = vld [vmem:[%s14682_s6 + $0x5c8] sm:$0xff]  ;;  %v5850_v61 = vld [vmem:[%s14682_s6 + $0x620] sm:$0xff] }
 0x3b4   :  { %v10133_v1 = vpop.eup %10132  ;;  %9117 = vmatprep.subr.bf16.mxu0 %v9116_v42  ;;  %9277 = vmatprep.subr.bf16.mxu1 %v9276_v0  ;;  %v5843_v42 = vld [vmem:[%s14682_s6 + $0x5e8] sm:$0xff]  ;;  %v5841_v0 = vld [vmem:[%s14682_s6 + $0x5d8] sm:$0xff]  ;;  %v9286_v54 = vpack.c.bf16 %v5836_v62, %v5832_v34  ;;  %v9134_v34 = vpack.c.bf16 %v5850_v61, %v5846_v11  ;;  %v5866_v6 = vld [vmem:[%s14682_s6 + $0x6a0] sm:$0xff] }
 0x3b5   :  { %v12451_v40 = vmul.f32 %v10133_v1, %v11871_v23  ;;  %v5833_v23 = vld [vmem:[%s14682_s6 + $0x598] sm:$0xff]  ;;  %v9128_v53 = vpack.c.bf16 %v5843_v42, %v5839_v15  ;;  %v9288_v1 = vpack.c.bf16 %v5845_v36, %v5841_v0  ;;  %v5854_v15 = vld [vmem:[%s14682_s6 + $0x640] sm:$0xff]  ;;  %v9296_v36 = vpack.c.bf16 %v5861_v20, %v5857_v58  ;;  %v5864_v60 = vld [vmem:[%s14682_s6 + $0x690] sm:$0xff] }
 0x3b6   :  { %v9284_v49 = vpack.c.bf16 %v5837_v13, %v5833_v23  ;;  %v9292_v13 = vpack.c.bf16 %v5853_v12, %v5849_v32  ;;  %v5858_v42 = vld [vmem:[%s14682_s6 + $0x660] sm:$0xff]  ;;  %v5868_v32 = vld [vmem:[%s14682_s6 + $0x6b0] sm:$0xff]  ;;  %v5871_v12 = vld [vmem:[%s14682_s6 + $0x6c8] sm:$0xff] }
 0x3b7   :  { %6127 = vmatprep.mubr.f32.mxu0 %v12451_v40  ;;  %6394 = vmatprep.mubr.f32.mxu1 %v12451_v40  ;;  %v9138_v33 = vpack.c.bf16 %v5858_v42, %v5854_v15  ;;  %v10135_v38 = vpop.eup %10134  ;;  %v5872_v20 = vld [vmem:[%s14682_s6 + $0x6d0] sm:$0xff]  ;;  %v5881_v15 = vld [vmem:[%s14682_s6 + $0x718] sm:$0xff] }
 0x3b8   :  { %9119 = vmatpush1.bf16.msra.mxu0 %v9118_v52  ;;  %9279 = vmatpush1.bf16.msra.mxu1 %v9278_v48  ;;  %v5847_v52 = vld [vmem:[%s14682_s6 + $0x608] sm:$0xff]  ;;  %v5539_v11 = vmul.f32 0.6931472, %v10135_v38  ;;  %v5885_v42 = vld [vmem:[%s14682_s6 + $0x738] sm:$0xff] }
 0x3b9   :  { %9121 = vmatprep.subr.bf16.mxu0 %v9120_v27  ;;  %9281 = vmatprep.subr.bf16.mxu1 %v9280_v4  ;;  %v5851_v48 = vld [vmem:[%s14682_s6 + $0x628] sm:$0xff]  ;;  %v5433_v27 = vadd.f32 1.0, %v12264_v55  ;;  %v5441_v4 = vadd.f32 1.0, %v12270_v21  ;;  %v5848_v55 = vld [vmem:[%s14682_s6 + $0x610] sm:$0xff] }
 0x3ba   :  { %v9132_v23 = vpack.c.bf16 %v5851_v48, %v5847_v52  ;;  %v5852_v21 = vld [vmem:[%s14682_s6 + $0x630] sm:$0xff]  ;;  %v9140_v52 = vpack.c.bf16 %v5867_v43, %v5863_v39  ;;  %v5882_v43 = vld [vmem:[%s14682_s6 + $0x720] sm:$0xff]  ;;  %v5887_v38 = vld [vmem:[%s14682_s6 + $0x748] sm:$0xff] }
 0x3bb   :  { %10138 = vlog2.f32 %v5433_v27  ;;  %v9294_v62 = vpack.c.bf16 %v5852_v21, %v5848_v55  ;;  %v5874_v55 = vld [vmem:[%s14682_s6 + $0x6e0] sm:$0xff] }
 0x3bc   :  { %9123 = vmatpush1.bf16.msra.mxu0 %v9122_v17  ;;  %9283 = vmatpush1.bf16.msra.mxu1 %v9282_v41  ;;  %v5855_v17 = vld [vmem:[%s14682_s6 + $0x648] sm:$0xff]  ;;  %10140 = vlog2.f32 %v5441_v4  ;;  %v10137_v27 = vpop.eup %10136 }
 0x3bd   :  { %9125 = vmatprep.subr.bf16.mxu0 %v9124_v47  ;;  %9285 = vmatprep.subr.bf16.mxu1 %v9284_v49  ;;  %v5859_v41 = vld [vmem:[%s14682_s6 + $0x668] sm:$0xff]  ;;  %v5439_v47 = vadd.f32 1.0, %v12268_v8  ;;  %v5447_v49 = vadd.f32 1.0, %v12283_v10  ;;  %v5856_v8 = vld [vmem:[%s14682_s6 + $0x650] sm:$0xff] }
 0x3be   :  { %v9136_v0 = vpack.c.bf16 %v5859_v41, %v5855_v17  ;;  %v5860_v10 = vld [vmem:[%s14682_s6 + $0x670] sm:$0xff]  ;;  %v5875_v4 = vld [vmem:[%s14682_s6 + $0x6e8] sm:$0xff]  ;;  %v5551_v17 = vmul.f32 0.6931472, %v10137_v27  ;;  %v5890_v27 = vld [vmem:[%s14682_s6 + $0x760] sm:$0xff] }
 0x3bf   :  { %10142 = vlog2.f32 %v5439_v47  ;;  %v9144_v41 = vpack.c.bf16 %v5875_v4, %v5871_v12  ;;  %v5876_v47 = vld [vmem:[%s14682_s6 + $0x6f0] sm:$0xff]  ;;  %v5886_v12 = vld [vmem:[%s14682_s6 + $0x740] sm:$0xff] }
 0x3c0   :  { %9127 = vmatpush1.bf16.msra.mxu0 %v9126_v63  ;;  %9287 = vmatpush1.bf16.msra.mxu1 %v9286_v54  ;;  %v5865_v63 = vld [vmem:[%s14682_s6 + $0x698] sm:$0xff]  ;;  %10144 = vlog2.f32 %v5447_v49  ;;  %v5879_v49 = vld [vmem:[%s14682_s6 + $0x708] sm:$0xff]  ;;  %v9306_v39 = vpack.c.bf16 %v5876_v47, %v5872_v20 }
 0x3c1   :  { %9129 = vmatprep.subr.bf16.mxu0 %v9128_v53  ;;  %9289 = vmatprep.subr.bf16.mxu1 %v9288_v1  ;;  %v5869_v54 = vld [vmem:[%s14682_s6 + $0x6b8] sm:$0xff]  ;;  %v9298_v53 = vpack.c.bf16 %v5860_v10, %v5856_v8  ;;  %v5862_v1 = vld [vmem:[%s14682_s6 + $0x680] sm:$0xff]  ;;  %10146 = vlog2.f32 %v5445_v28 }
 0x3c2   :  { %v9300_v48 = vpack.c.bf16 %v5869_v54, %v5865_v63  ;;  %v9142_v61 = vpack.c.bf16 %v5866_v6, %v5862_v1  ;;  %v5880_v63 = vld [vmem:[%s14682_s6 + $0x710] sm:$0xff]  ;;  %v9308_v6 = vpack.c.bf16 %v5885_v42, %v5881_v15  ;;  %v9154_v15 = vpack.c.bf16 %v5890_v27, %v5886_v12 }
 0x3c3   :  { %v5884_v54 = vld [vmem:[%s14682_s6 + $0x730] sm:$0xff] }
 0x3c4   :  { %9131 = vmatpush1.bf16.msra.mxu0 %v9130_v18  ;;  %9291 = vmatpush1.bf16.msra.mxu1 %v9290_v51  ;;  %v5873_v18 = vld [vmem:[%s14682_s6 + $0x6d8] sm:$0xff] }
 0x3c5   :  { %9133 = vmatprep.subr.bf16.mxu0 %v9132_v23  ;;  %9293 = vmatprep.subr.bf16.mxu1 %v9292_v13  ;;  %v5877_v51 = vld [vmem:[%s14682_s6 + $0x6f8] sm:$0xff]  ;;  %v9302_v23 = vpack.c.bf16 %v5868_v32, %v5864_v60  ;;  %v5870_v13 = vld [vmem:[%s14682_s6 + $0x6c0] sm:$0xff]  ;;  %v10139_v21 = vpop.eup %10138 }
 0x3c6   :  { %v9304_v58 = vpack.c.bf16 %v5877_v51, %v5873_v18  ;;  %v5549_v8 = vmul.f32 0.6931472, %v10139_v21  ;;  %v9146_v10 = vpack.c.bf16 %v5874_v55, %v5870_v13  ;;  %v5893_v32 = vld [vmem:[%s14682_s6 + $0x778] sm:$0xff]  ;;  %v9310_v18 = vpack.c.bf16 %v5884_v54, %v5880_v63  ;;  %v5888_v51 = vld [vmem:[%s14682_s6 + $0x750] sm:$0xff] }
 0x3c8   :  { %9135 = vmatpush1.bf16.msra.mxu0 %v9134_v34  ;;  %9295 = vmatpush1.bf16.msra.mxu1 %v9294_v62  ;;  %v10141_v34 = vpop.eup %10140  ;;  %v5883_v62 = vld [vmem:[%s14682_s6 + $0x728] sm:$0xff]  ;;  %v5581_v13 = vmul.f32 -0.75, %v5549_v8 }
 0x3c9   :  { %9137 = vmatprep.subr.bf16.mxu0 %v9136_v0  ;;  %9297 = vmatprep.subr.bf16.mxu1 %v9296_v36  ;;  %v5878_v0 = vld [vmem:[%s14682_s6 + $0x700] sm:$0xff]  ;;  %v5576_v36 = vmul.f32 -0.75, %v5539_v11  ;;  %v10143_v28 = vpop.eup %10142  ;;  %v9148_v1 = vpack.c.bf16 %v5883_v62, %v5879_v49  ;;  %v5892_v11 = vld [vmem:[%s14682_s6 + $0x770] sm:$0xff]  ;;  %v5901_v62 = vld [vmem:[%s14682_s6 + $0x7b8] sm:$0xff] }
 0x3ca   :  { %v10145_v60 = vpop.eup %10144  ;;  %v9150_v4 = vpack.c.bf16 %v5882_v43, %v5878_v0  ;;  %v5559_v55 = vmul.f32 0.6931472, %v10143_v28  ;;  %v9314_v42 = vpack.c.bf16 %v5892_v11, %v5888_v51  ;;  %v5608_v8 = vmul.f32 1.442695, %v5581_v13  ;;  %v5898_v43 = vld [vmem:[%s14682_s6 + $0x7a0] sm:$0xff]  ;;  %v5911_v13 = vld [vmem:[%s14682_s6 + $0x808] sm:$0xff] }
 0x3cb   :  { %v5571_v47 = vmul.f32 0.6931472, %v10145_v60 }
 0x3cc   :  { %9139 = vmatpush1.bf16.msra.mxu0 %v9138_v33  ;;  %9299 = vmatpush1.bf16.msra.mxu1 %v9298_v53  ;;  %v5582_v33 = vmul.f32 -0.75, %v5551_v17  ;;  %v5561_v53 = vmul.f32 0.6931472, %v10141_v34  ;;  %v5899_v17 = vld [vmem:[%s14682_s6 + $0x7a8] sm:$0xff]  ;;  %v5897_v34 = vld [vmem:[%s14682_s6 + $0x798] sm:$0xff] }
 0x3cd   :  { %9141 = vmatprep.subr.bf16.mxu0 %v9140_v52  ;;  %9301 = vmatprep.subr.bf16.mxu1 %v9300_v48  ;;  %v5891_v52 = vld [vmem:[%s14682_s6 + $0x768] sm:$0xff]  ;;  %v5889_v48 = vld [vmem:[%s14682_s6 + $0x758] sm:$0xff]  ;;  %v5592_v54 = vmul.f32 -0.75, %v5571_v47  ;;  %v9316_v28 = vpack.c.bf16 %v5901_v62, %v5897_v34  ;;  %v5910_v62 = vld [vmem:[%s14682_s6 + $0x800] sm:$0xff] }
 0x3ce   :  { %v9152_v21 = vpack.c.bf16 %v5891_v52, %v5887_v38  ;;  %v5587_v20 = vmul.f32 -0.75, %v5561_v53  ;;  %v9312_v49 = vpack.c.bf16 %v5893_v32, %v5889_v48  ;;  %v5900_v53 = vld [vmem:[%s14682_s6 + $0x7b0] sm:$0xff]  ;;  %v5905_v38 = vld [vmem:[%s14682_s6 + $0x7d8] sm:$0xff]  ;;  %v5516_v48 = vadd.f32 1.0, %v12311_v19 }
 0x3cf   :  { %v5909_v52 = vld [vmem:[%s14682_s6 + $0x7f8] sm:$0xff]  ;;  %v5630_v51 = vmul.f32 1.442695, %v5592_v54 }
 0x3d0   :  { %9143 = vmatpush1.bf16.msra.mxu0 %v9142_v61  ;;  %9303 = vmatpush1.bf16.msra.mxu1 %v9302_v23  ;;  %v5895_v61 = vld [vmem:[%s14682_s6 + $0x788] sm:$0xff]  ;;  %v5598_v23 = vmul.f32 1.442695, %v5576_v36  ;;  %v5894_v36 = vld [vmem:[%s14682_s6 + $0x780] sm:$0xff]  ;;  %v5620_v63 = vmul.f32 1.442695, %v5587_v20  ;;  %v9320_v11 = vpack.c.bf16 %v5909_v52, %v5905_v38 }
 0x3d1   :  { %9145 = vmatprep.subr.bf16.mxu0 %v9144_v41  ;;  %9305 = vmatprep.subr.bf16.mxu1 %v9304_v58  ;;  %v10147_v41 = vpop.eup %10146  ;;  %v5610_v58 = vmul.f32 1.442695, %v5582_v33  ;;  %v9156_v0 = vpack.c.bf16 %v5899_v17, %v5895_v61  ;;  %v5896_v33 = vld [vmem:[%s14682_s6 + $0x790] sm:$0xff]  ;;  %v9158_v60 = vpack.c.bf16 %v5898_v43, %v5894_v36  ;;  %v5917_v17 = vld [vmem:[%s14682_s6 + $0x838] sm:$0xff]  ;;  %v5919_v36 = vld [vmem:[%s14682_s6 + $0x848] sm:$0xff] }
 0x3d2   :  { %10148 = vpow2.f32 %v5598_v23  ;;  %v9318_v27 = vpack.c.bf16 %v5900_v53, %v5896_v33  ;;  %v5904_v61 = vld [vmem:[%s14682_s6 + $0x7d0] sm:$0xff]  ;;  %v5921_v43 = vld [vmem:[%s14682_s6 + $0x858] sm:$0xff]  ;;  %v5918_v33 = vld [vmem:[%s14682_s6 + $0x840] sm:$0xff] }
 0x3d3   :  { %10150 = vpow2.f32 %v5610_v58  ;;  %v5908_v23 = vld [vmem:[%s14682_s6 + $0x7f0] sm:$0xff]  ;;  %v5922_v53 = vld [vmem:[%s14682_s6 + $0x860] sm:$0xff] }
 0x3d4   :  { %9147 = vmatpush1.bf16.msra.mxu0 %v9146_v10  ;;  %9307 = vmatpush1.bf16.msra.mxu1 %v9306_v39  ;;  %v5586_v10 = vmul.f32 -0.75, %v5559_v55  ;;  %v5569_v39 = vmul.f32 0.6931472, %v10147_v41  ;;  %10152 = vpow2.f32 %v5608_v8  ;;  %v5915_v55 = vld [vmem:[%s14682_s6 + $0x828] sm:$0xff]  ;;  %v5521_v41 = vadd.f32 1.0, %v12300_v37  ;;  %v5914_v37 = vld [vmem:[%s14682_s6 + $0x820] sm:$0xff] }
 0x3d5   :  { %9149 = vmatprep.subr.bf16.mxu0 %v9148_v1  ;;  %9309 = vmatprep.subr.bf16.mxu1 %v9308_v6  ;;  %v5903_v1 = vld [vmem:[%s14682_s6 + $0x7c8] sm:$0xff]  ;;  %10154 = vpow2.f32 %v5620_v63  ;;  %v9322_v47 = vpack.c.bf16 %v5908_v23, %v5904_v61  ;;  %v5925_v63 = vld [vmem:[%s14682_s6 + $0x878] sm:$0xff]  ;;  %v9166_v54 = vpack.c.bf16 %v5914_v37, %v5910_v62  ;;  %v5930_v61 = vld [vmem:[%s14682_s6 + $0x8a0] sm:$0xff] }
 0x3d6   :  { %v5907_v6 = vld [vmem:[%s14682_s6 + $0x7e8] sm:$0xff]  ;;  %v5618_v32 = vmul.f32 1.442695, %v5586_v10  ;;  %v5591_v12 = vmul.f32 -0.75, %v5569_v39  ;;  %10156 = vlog2.f32 %v5516_v48  ;;  %v5526_v10 = vadd.f32 1.0, %v12349_v46  ;;  %v5924_v48 = vld [vmem:[%s14682_s6 + $0x870] sm:$0xff] }
 0x3d7   :  { %v9160_v19 = vpack.c.bf16 %v5907_v6, %v5903_v1  ;;  %v5923_v39 = vld [vmem:[%s14682_s6 + $0x868] sm:$0xff]  ;;  %v9328_v52 = vpack.c.bf16 %v5925_v63, %v5921_v43  ;;  %v5940_v43 = vld [vmem:[%s14682_s6 + $0x8f0] sm:$0xff] }
 0x3d8   :  { %9151 = vmatpush1.bf16.msra.mxu0 %v9150_v4  ;;  %9311 = vmatpush1.bf16.msra.mxu1 %v9310_v18  ;;  %v5902_v4 = vld [vmem:[%s14682_s6 + $0x7c0] sm:$0xff]  ;;  %10158 = vpow2.f32 %v5618_v32  ;;  %v5628_v58 = vmul.f32 1.442695, %v5591_v12  ;;  %v9168_v38 = vpack.c.bf16 %v5923_v39, %v5919_v36  ;;  %v5531_v12 = vadd.f32 1.0, %v12338_v2  ;;  %v5936_v36 = vld [vmem:[%s14682_s6 + $0x8d0] sm:$0xff]  ;;  %v5943_v63 = vld [vmem:[%s14682_s6 + $0x908] sm:$0xff] }
 0x3d9   :  { %9153 = vmatprep.subr.bf16.mxu0 %v9152_v21  ;;  %9313 = vmatprep.subr.bf16.mxu1 %v9312_v49  ;;  %v5906_v18 = vld [vmem:[%s14682_s6 + $0x7e0] sm:$0xff]  ;;  %v5913_v21 = vld [vmem:[%s14682_s6 + $0x818] sm:$0xff]  ;;  %10160 = vpow2.f32 %v5630_v51  ;;  %v9164_v49 = vpack.c.bf16 %v5915_v55, %v5911_v13  ;;  %v9170_v2 = vpack.c.bf16 %v5922_v53, %v5918_v33 }
 0x3da   :  { %v9162_v20 = vpack.c.bf16 %v5906_v18, %v5902_v4  ;;  %v9324_v34 = vpack.c.bf16 %v5917_v17, %v5913_v21  ;;  %10162 = vlog2.f32 %v5521_v41  ;;  %v5933_v4 = vld [vmem:[%s14682_s6 + $0x8b8] sm:$0xff]  ;;  %v5932_v17 = vld [vmem:[%s14682_s6 + $0x8b0] sm:$0xff]  ;;  %v5935_v41 = vld [vmem:[%s14682_s6 + $0x8c8] sm:$0xff] }
 0x3db   :  { %10164 = vpow2.f32 %v5628_v58 }
 0x3dc   :  { %9155 = vmatpush1.bf16.msra.mxu0 %v9154_v15  ;;  %9315 = vmatpush1.bf16.msra.mxu1 %v9314_v42  ;;  %v10149_v15 = vpop.eup %10148  ;;  %v5912_v42 = vld [vmem:[%s14682_s6 + $0x810] sm:$0xff]  ;;  %10166 = vlog2.f32 %v5526_v10 }
 0x3dd   :  { %9157 = vmatprep.subr.bf16.mxu0 %v9156_v0  ;;  %9317 = vmatprep.subr.bf16.mxu1 %v9316_v28  ;;  %v5916_v0 = vld [vmem:[%s14682_s6 + $0x830] sm:$0xff]  ;;  %v10151_v8 = vpop.eup %10150  ;;  %v12748_v28 = vmul.f32 %v10149_v15, %v11888_v35  ;;  %10168 = vlog2.f32 %v5531_v12 }
 0x3de   :  { %v9326_v46 = vpack.c.bf16 %v5916_v0, %v5912_v42  ;;  %v10153_v1 = vpop.eup %10152  ;;  %v12757_v6 = vmul.f32 %v10151_v8, %v11862_v50  ;;  %v5920_v35 = vld [vmem:[%s14682_s6 + $0x850] sm:$0xff]  ;;  %v5931_v50 = vld [vmem:[%s14682_s6 + $0x8a8] sm:$0xff]  ;;  %v5934_v42 = vld [vmem:[%s14682_s6 + $0x8c0] sm:$0xff] }
 0x3df   :  { %v10155_v32 = vpop.eup %10154  ;;  %v12783_v51 = vmul.f32 %v10153_v1, %v11875_v29  ;;  %v5928_v29 = vld [vmem:[%s14682_s6 + $0x890] sm:$0xff]  ;;  %v5938_v0 = vld [vmem:[%s14682_s6 + $0x8e0] sm:$0xff] }
 0x3e0   :  { %9159 = vmatpush1.bf16.msra.mxu0 %v9158_v60  ;;  %9319 = vmatpush1.bf16.msra.mxu1 %v9318_v27  ;;  %v5927_v60 = vld [vmem:[%s14682_s6 + $0x888] sm:$0xff]  ;;  %v5929_v27 = vld [vmem:[%s14682_s6 + $0x898] sm:$0xff]  ;;  %v10157_v18 = vpop.eup %10156  ;;  %v12792_v13 = vmul.f32 %v10155_v32, %v11894_v56  ;;  %v9334_v15 = vpack.c.bf16 %v5932_v17, %v5928_v29  ;;  %v9178_v1 = vpack.c.bf16 %v5938_v0, %v5934_v42  ;;  %v5946_v32 = vld [vmem:[%s14682_s6 + $0x920] sm:$0xff] }
 0x3e1   :  { %9161 = vmatprep.subr.bf16.mxu0 %v9160_v19  ;;  %9321 = vmatprep.subr.bf16.mxu1 %v9320_v11  ;;  %v9330_v19 = vpack.c.bf16 %v5924_v48, %v5920_v35  ;;  %v5926_v11 = vld [vmem:[%s14682_s6 + $0x880] sm:$0xff]  ;;  %v9172_v55 = vpack.c.bf16 %v5931_v50, %v5927_v60  ;;  %v9332_v21 = vpack.c.bf16 %v5933_v4, %v5929_v27  ;;  %v5939_v56 = vld [vmem:[%s14682_s6 + $0x8e8] sm:$0xff]  ;;  %v5944_v12 = vld [vmem:[%s14682_s6 + $0x910] sm:$0xff] }
 0x3e2   :  { %v10159_v23 = vpop.eup %10158  ;;  %v9338_v35 = vpack.c.bf16 %v5940_v43, %v5936_v36  ;;  %v5942_v60 = vld [vmem:[%s14682_s6 + $0x900] sm:$0xff]  ;;  %v5951_v27 = vld [vmem:[%s14682_s6 + $0x948] sm:$0xff] }
 0x3e3   :  { %v10161_v58 = vpop.eup %10160  ;;  %v12817_v37 = vmul.f32 %v10159_v23, %v11909_v24  ;;  %v9176_v24 = vpack.c.bf16 %v5939_v56, %v5935_v41  ;;  %v5955_v4 = vld [vmem:[%s14682_s6 + $0x968] sm:$0xff]  ;;  %v5962_v43 = vld [vmem:[%s14682_s6 + $0x9a0] sm:$0xff] }
 0x3e4   :  { %9163 = vmatpush1.bf16.msra.mxu0 %v9162_v20  ;;  %9323 = vmatpush1.bf16.msra.mxu1 %v9322_v47  ;;  %v5937_v20 = vld [vmem:[%s14682_s6 + $0x8d8] sm:$0xff]  ;;  %v10163_v62 = vpop.eup %10162  ;;  %v12829_v10 = vmul.f32 %v10161_v58, %v11881_v31  ;;  %v9184_v41 = vpack.c.bf16 %v5955_v4, %v5951_v27  ;;  %v5952_v58 = vld [vmem:[%s14682_s6 + $0x950] sm:$0xff] }
 0x3e5   :  { %9165 = vmatprep.subr.bf16.mxu0 %v9164_v49  ;;  %9325 = vmatprep.subr.bf16.mxu1 %v9324_v34  ;;  %v5941_v47 = vld [vmem:[%s14682_s6 + $0x8f8] sm:$0xff]  ;;  %v5543_v49 = vmul.f32 0.6931472, %v10157_v18  ;;  %v9174_v34 = vpack.c.bf16 %v5930_v61, %v5926_v11  ;;  %v10165_v8 = vpop.eup %10164  ;;  %v5553_v33 = vmul.f32 0.6931472, %v10163_v62  ;;  %v5972_v4 = vld [vmem:[%s14682_s6 + $0x9f0] sm:$0xff] }
 0x3e6   :  { %v9336_v39 = vpack.c.bf16 %v5941_v47, %v5937_v20  ;;  %v5945_v31 = vld [vmem:[%s14682_s6 + $0x918] sm:$0xff]  ;;  %v5956_v20 = vld [vmem:[%s14682_s6 + $0x970] sm:$0xff]  ;;  %v5959_v47 = vld [vmem:[%s14682_s6 + $0x988] sm:$0xff] }
 0x3e7   :  { %6128 = vmatmul.mubr.f32.vlgmr.msra.gmra.mrb[124].mxu0 %v12748_v28  ;;  %6395 = vmatmul.mubr.f32.vlgmr.msra.gmra.mrb[100].mxu1 %v12748_v28  ;;  %v5578_v53 = vmul.f32 -0.75, %v5543_v49  ;;  %v5957_v18 = vld [vmem:[%s14682_s6 + $0x978] sm:$0xff]  ;;  %v5583_v11 = vmul.f32 -0.75, %v5553_v33  ;;  %v5963_v49 = vld [vmem:[%s14682_s6 + $0x9a8] sm:$0xff] }
 0x3e8   :  { %6133 = vmatprep.mubr.f32.mxu0 %v12757_v6  ;;  %9167 = vmatpush1.bf16.msra.mxu0 %v9166_v54  ;;  %v5947_v54 = vld [vmem:[%s14682_s6 + $0x928] sm:$0xff]  ;;  %v5961_v62 = vld [vmem:[%s14682_s6 + $0x998] sm:$0xff] }
 0x3e9   :  { %6400 = vmatprep.mubr.f32.mxu1 %v12757_v6  ;;  %9327 = vmatpush1.bf16.msra.mxu1 %v9326_v46  ;;  %v5949_v46 = vld [vmem:[%s14682_s6 + $0x938] sm:$0xff]  ;;  %v9180_v48 = vpack.c.bf16 %v5947_v54, %v5943_v63  ;;  %v5602_v61 = vmul.f32 1.442695, %v5578_v53  ;;  %v5612_v42 = vmul.f32 1.442695, %v5583_v11  ;;  %v5960_v63 = vld [vmem:[%s14682_s6 + $0x990] sm:$0xff] }
 0x3ea   :  { %9169 = vmatprep.subr.bf16.mxu0 %v9168_v38  ;;  %9329 = vmatprep.subr.bf16.mxu1 %v9328_v52  ;;  %v10167_v38 = vpop.eup %10166  ;;  %v12851_v52 = vmul.f32 %v10165_v8, %v11898_v5  ;;  %v9340_v50 = vpack.c.bf16 %v5949_v46, %v5945_v31  ;;  %v5948_v5 = vld [vmem:[%s14682_s6 + $0x930] sm:$0xff]  ;;  %v9346_v8 = vpack.c.bf16 %v5956_v20, %v5952_v58  ;;  %v5967_v46 = vld [vmem:[%s14682_s6 + $0x9c8] sm:$0xff]  ;;  %v5969_v53 = vld [vmem:[%s14682_s6 + $0x9d8] sm:$0xff] }
 0x3eb   :  { %6134 = vmatmul.mubr.f32.gmra.mrb[126].mxu0 %v12783_v51  ;;  %6401 = vmatmul.mubr.f32.gmra.mrb[102].mxu1 %v12783_v51  ;;  %v5563_v23 = vmul.f32 0.6931472, %v10167_v38  ;;  %v10169_v29 = vpop.eup %10168  ;;  %v9342_v17 = vpack.c.bf16 %v5948_v5, %v5944_v12  ;;  %10170 = vpow2.f32 %v5602_v61  ;;  %v5964_v31 = vld [vmem:[%s14682_s6 + $0x9b0] sm:$0xff]  ;;  %v5971_v33 = vld [vmem:[%s14682_s6 + $0x9e8] sm:$0xff]  ;;  %v5966_v12 = vld [vmem:[%s14682_s6 + $0x9c0] sm:$0xff] }
 0x3ec   :  { %6139 = vmatprep.mubr.f32.mxu0 %v12792_v13  ;;  %9171 = vmatpush1.bf16.msra.mxu0 %v9170_v2  ;;  %v5953_v2 = vld [vmem:[%s14682_s6 + $0x958] sm:$0xff]  ;;  %v5573_v0 = vmul.f32 0.6931472, %v10169_v29  ;;  %10172 = vpow2.f32 %v5612_v42  ;;  %v5968_v5 = vld [vmem:[%s14682_s6 + $0x9d0] sm:$0xff]  ;;  %v6508_v29 = vld [vmem:[%s14684_s7] sm:$0xff] }
 0x3ed   :  { %6406 = vmatprep.mubr.f32.mxu1 %v12792_v13  ;;  %9331 = vmatpush1.bf16.msra.mxu1 %v9330_v19  ;;  %v5950_v19 = vld [vmem:[%s14682_s6 + $0x940] sm:$0xff]  ;;  %v9344_v56 = vpack.c.bf16 %v5957_v18, %v5953_v2  ;;  %v5588_v36 = vmul.f32 -0.75, %v5563_v23  ;;  %v6509_v2 = vld [vmem:[%s14684_s7 + $0x8] sm:$0xff]  ;;  %v6515_v11 = vld [vmem:[%s14684_s7 + $0x38] sm:$0xff] }
 0x3ee   :  { %9173 = vmatprep.subr.bf16.mxu0 %v9172_v55  ;;  %9333 = vmatprep.subr.bf16.mxu1 %v9332_v21  ;;  %v9182_v55 = vpack.c.bf16 %v5946_v32, %v5942_v60  ;;  %v5954_v21 = vld [vmem:[%s14682_s6 + $0x960] sm:$0xff]  ;;  %v5593_v38 = vmul.f32 -0.75, %v5573_v0  ;;  %v9350_v60 = vpack.c.bf16 %v5964_v31, %v5960_v63  ;;  %v9192_v32 = vpack.c.bf16 %v5971_v33, %v5967_v46  ;;  %v6513_v18 = vld [vmem:[%s14684_s7 + $0x28] sm:$0xff]  ;;  %v6514_v20 = vld [vmem:[%s14684_s7 + $0x30] sm:$0xff] }
 0x3ef   :  { %6140 = vmatmul.mubr.f32.gmra.mrb[128].mxu0 %v12817_v37  ;;  %6407 = vmatmul.mubr.f32.gmra.mrb[104].mxu1 %v12817_v37  ;;  %v6529_v31 = vld [vmem:[%s14684_s7 + $0xa8] sm:$0xff]  ;;  %v6527_v33 = vld [vmem:[%s14684_s7 + $0x98] sm:$0xff] }
 0x3f0   :  { %6145 = vmatprep.mubr.f32.mxu0 %v12829_v10  ;;  %9175 = vmatpush1.bf16.msra.mxu0 %v9174_v34  ;;  %v9186_v34 = vpack.c.bf16 %v5954_v21, %v5950_v19  ;;  %v6511_v19 = vld [vmem:[%s14684_s7 + $0x18] sm:$0xff]  ;;  %v5632_v61 = vmul.f32 1.442695, %v5593_v38  ;;  %v9356_v21 = vpack.c.bf16 %v6513_v18, %v6509_v2 }
 0x3f1   :  { %6412 = vmatprep.mubr.f32.mxu1 %v12829_v10  ;;  %9335 = vmatpush1.bf16.msra.mxu1 %v9334_v15  ;;  %v5965_v15 = vld [vmem:[%s14682_s6 + $0x9b8] sm:$0xff]  ;;  %v9516_v58 = vpack.c.bf16 %v6515_v11, %v6511_v19 }
 0x3f2   :  { %9177 = vmatprep.subr.bf16.mxu0 %v9176_v24  ;;  %9337 = vmatprep.subr.bf16.mxu1 %v9336_v39  ;;  %v9188_v24 = vpack.c.bf16 %v5963_v49, %v5959_v47  ;;  %v5958_v39 = vld [vmem:[%s14682_s6 + $0x980] sm:$0xff]  ;;  %v9348_v54 = vpack.c.bf16 %v5965_v15, %v5961_v62  ;;  %v6517_v47 = vld [vmem:[%s14684_s7 + $0x48] sm:$0xff]  ;;  %v6519_v62 = vld [vmem:[%s14684_s7 + $0x58] sm:$0xff] }
 0x3f3   :  { %6146 = vmatmul.mubr.f32.gmra.mrb[130].mxu0 %v12851_v52  ;;  %6413 = vmatmul.mubr.f32.gmra.mrb[106].mxu1 %v12851_v52  ;;  %v6521_v49 = vld [vmem:[%s14684_s7 + $0x68] sm:$0xff]  ;;  %v6523_v15 = vld [vmem:[%s14684_s7 + $0x78] sm:$0xff] }
 0x3f4   :  { %9179 = vmatpush1.bf16.msra.mxu0 %v9178_v1  ;;  %6216 = vmatprep.mubr.f32.mxu0 %v10183_v3  ;;  %v5973_v1 = vld [vmem:[%s14682_s6 + $0x9f8] sm:$0xff]  ;;  %v9520_v63 = vpack.c.bf16 %v6523_v15, %v6519_v62  ;;  %v6540_v62 = vld [vmem:[%s14684_s7 + $0x100] sm:$0xff] }
 0x3f5   :  { %9339 = vmatpush1.bf16.msra.mxu1 %v9338_v35  ;;  %9181 = vmatprep.subr.bf16.mxu0 %v9180_v48  ;;  %v5622_v35 = vmul.f32 1.442695, %v5588_v36  ;;  %v9190_v48 = vpack.c.bf16 %v5962_v43, %v5958_v39  ;;  %v9352_v27 = vpack.c.bf16 %v5973_v1, %v5969_v53  ;;  %v6516_v36 = vld [vmem:[%s14684_s7 + $0x40] sm:$0xff]  ;;  %v9360_v39 = vpack.c.bf16 %v6521_v49, %v6517_v47  ;;  %v6518_v43 = vld [vmem:[%s14684_s7 + $0x50] sm:$0xff]  ;;  %v6531_v53 = vld [vmem:[%s14684_s7 + $0xb8] sm:$0xff] }
 0x3f6   :  { %9341 = vmatprep.subr.bf16.mxu1 %v9340_v50  ;;  %6483 = vmatprep.mubr.f32.mxu1 %v10183_v3  ;;  %v5970_v50 = vld [vmem:[%s14682_s6 + $0x9e0] sm:$0xff]  ;;  %v6535_v2 = vld [vmem:[%s14684_s7 + $0xd8] sm:$0xff] }
 0x3f7   :  { %10174 = vpow2.f32 %v5622_v35  ;;  %v9194_v23 = vpack.c.bf16 %v5970_v50, %v5966_v12  ;;  %v6524_v35 = vld [vmem:[%s14684_s7 + $0x80] sm:$0xff]  ;;  %v6526_v12 = vld [vmem:[%s14684_s7 + $0x90] sm:$0xff]  ;;  %v9524_v50 = vpack.c.bf16 %v6531_v53, %v6527_v33  ;;  %v6539_v18 = vld [vmem:[%s14684_s7 + $0xf8] sm:$0xff] }
 0x3f8   :  { %9183 = vmatpush1.bf16.msra.mxu0 %v9182_v55  ;;  %v9354_v55 = vpack.c.bf16 %v5972_v4, %v5968_v5  ;;  %10176 = vpow2.f32 %v5632_v61  ;;  %v6533_v5 = vld [vmem:[%s14684_s7 + $0xc8] sm:$0xff]  ;;  %v6532_v61 = vld [vmem:[%s14684_s7 + $0xc0] sm:$0xff]  ;;  %v6547_v47 = vld [vmem:[%s14684_s7 + $0x138] sm:$0xff] }
 0x3f9   :  { %9343 = vmatpush1.bf16.msra.mxu1 %v9342_v17  ;;  %9185 = vmatprep.subr.bf16.mxu0 %v9184_v41  ;;  %v6512_v17 = vld [vmem:[%s14684_s7 + $0x20] sm:$0xff]  ;;  %v10171_v41 = vpop.eup %10170  ;;  %v6550_v53 = vld [vmem:[%s14684_s7 + $0x150] sm:$0xff] }
 0x3fa   :  { %9345 = vmatprep.subr.bf16.mxu1 %v9344_v56  ;;  %v6510_v56 = vld [vmem:[%s14684_s7 + $0x10] sm:$0xff]  ;;  %v12978_v42 = vmul.f32 %v10171_v41, %v11904_v14  ;;  %v6541_v41 = vld [vmem:[%s14684_s7 + $0x108] sm:$0xff]  ;;  %v6544_v15 = vld [vmem:[%s14684_s7 + $0x120] sm:$0xff] }
 0x3fb   :  { %v9518_v0 = vpack.c.bf16 %v6514_v20, %v6510_v56  ;;  %v6522_v14 = vld [vmem:[%s14684_s7 + $0x70] sm:$0xff]  ;;  %v6543_v20 = vld [vmem:[%s14684_s7 + $0x118] sm:$0xff]  ;;  %v6552_v33 = vld [vmem:[%s14684_s7 + $0x160] sm:$0xff] }
 0x3fc   :  { %9187 = vmatpush1.bf16.msra.mxu0 %v9186_v34  ;;  %v9358_v34 = vpack.c.bf16 %v6512_v17, %v6508_v29  ;;  %v9522_v38 = vpack.c.bf16 %v6522_v14, %v6518_v43  ;;  %v6534_v29 = vld [vmem:[%s14684_s7 + $0xd0] sm:$0xff]  ;;  %v9528_v17 = vpack.c.bf16 %v6539_v18, %v6535_v2  ;;  %v6551_v43 = vld [vmem:[%s14684_s7 + $0x158] sm:$0xff] }
 0x3fd   :  { %9347 = vmatpush1.bf16.msra.mxu1 %v9346_v8  ;;  %9189 = vmatprep.subr.bf16.mxu0 %v9188_v24  ;;  %v6520_v8 = vld [vmem:[%s14684_s7 + $0x60] sm:$0xff]  ;;  %v10173_v24 = vpop.eup %10172  ;;  %v6555_v14 = vld [vmem:[%s14684_s7 + $0x178] sm:$0xff]  ;;  %v6562_v18 = vld [vmem:[%s14684_s7 + $0x1b0] sm:$0xff] }
 0x3fe   :  { %9349 = vmatprep.subr.bf16.mxu1 %v9348_v54  ;;  %v6525_v54 = vld [vmem:[%s14684_s7 + $0x88] sm:$0xff]  ;;  %v9362_v46 = vpack.c.bf16 %v6520_v8, %v6516_v36  ;;  %v13008_v1 = vmul.f32 %v10173_v24, %v11902_v30  ;;  %v6530_v30 = vld [vmem:[%s14684_s7 + $0xb0] sm:$0xff] }
 0x3ff   :  { %v9526_v11 = vpack.c.bf16 %v6530_v30, %v6526_v12  ;;  %v6549_v8 = vld [vmem:[%s14684_s7 + $0x148] sm:$0xff] }
 0x400   :  { %9191 = vmatpush1.bf16.msra.mxu0 %v9190_v48  ;;  %v6528_v48 = vld [vmem:[%s14684_s7 + $0xa0] sm:$0xff]  ;;  %v6553_v24 = vld [vmem:[%s14684_s7 + $0x168] sm:$0xff] }
 0x401   :  { %9351 = vmatpush1.bf16.msra.mxu1 %v9350_v60  ;;  %9193 = vmatprep.subr.bf16.mxu0 %v9192_v32  ;;  %v10175_v60 = vpop.eup %10174  ;;  %v9364_v32 = vpack.c.bf16 %v6529_v31, %v6525_v54  ;;  %v9366_v4 = vpack.c.bf16 %v6528_v48, %v6524_v35  ;;  %v9376_v31 = vpack.c.bf16 %v6553_v24, %v6549_v8  ;;  %v6554_v35 = vld [vmem:[%s14684_s7 + $0x170] sm:$0xff]  ;;  %v6557_v48 = vld [vmem:[%s14684_s7 + $0x188] sm:$0xff]  ;;  %v6572_v8 = vld [vmem:[%s14684_s7 + $0x200] sm:$0xff] }
 0x402   :  { %9353 = vmatprep.subr.bf16.mxu1 %v9352_v27  ;;  %v6537_v27 = vld [vmem:[%s14684_s7 + $0xe8] sm:$0xff]  ;;  %v13039_v19 = vmul.f32 %v10175_v60, %v11938_v45  ;;  %v6538_v45 = vld [vmem:[%s14684_s7 + $0xf0] sm:$0xff]  ;;  %v9538_v30 = vpack.c.bf16 %v6554_v35, %v6550_v53  ;;  %v6576_v24 = vld [vmem:[%s14684_s7 + $0x220] sm:$0xff] }
 0x403   :  { %v6561_v60 = vld [vmem:[%s14684_s7 + $0x1a8] sm:$0xff]  ;;  %v6580_v35 = vld [vmem:[%s14684_s7 + $0x240] sm:$0xff] }
 0x404   :  { %9195 = vmatpush1.bf16.msra.mxu0 %v9194_v23  ;;  %v6536_v23 = vld [vmem:[%s14684_s7 + $0xe0] sm:$0xff] }
 0x405   :  { %9355 = vmatpush1.bf16.msra.mxu1 %v9354_v55  ;;  %9357 = vmatprep.subr.bf16.mxu0 %v9356_v21  ;;  %v10177_v55 = vpop.eup %10176  ;;  %v9368_v21 = vpack.c.bf16 %v6537_v27, %v6533_v5  ;;  %v9370_v56 = vpack.c.bf16 %v6536_v23, %v6532_v61  ;;  %v6556_v5 = vld [vmem:[%s14684_s7 + $0x180] sm:$0xff]  ;;  %v6569_v61 = vld [vmem:[%s14684_s7 + $0x1e8] sm:$0xff]  ;;  %v6567_v23 = vld [vmem:[%s14684_s7 + $0x1d8] sm:$0xff] }
 0x406   :  { %9517 = vmatprep.subr.bf16.mxu1 %v9516_v58  ;;  %v6545_v58 = vld [vmem:[%s14684_s7 + $0x128] sm:$0xff]  ;;  %v13070_v49 = vmul.f32 %v10177_v55, %v11935_v22  ;;  %v6546_v22 = vld [vmem:[%s14684_s7 + $0x130] sm:$0xff]  ;;  %v6560_v27 = vld [vmem:[%s14684_s7 + $0x1a0] sm:$0xff] }
 0x407   :  { %6217 = vmatmul.mubr.f32.vlgmr.msra.gmra.mrb[124].mxu0 %v12978_v42  ;;  %v9372_v36 = vpack.c.bf16 %v6545_v58, %v6541_v41  ;;  %v6571_v55 = vld [vmem:[%s14684_s7 + $0x1f8] sm:$0xff]  ;;  %v6568_v41 = vld [vmem:[%s14684_s7 + $0x1e0] sm:$0xff]  ;;  %v6566_v58 = vld [vmem:[%s14684_s7 + $0x1d0] sm:$0xff] }
 0x408   :  { %6484 = vmatmul.mubr.f32.vlgmr.msra.gmra.mrb[100].mxu1 %v12978_v42  ;;  %9359 = vmatpush1.bf16.msra.mxu0 %v9358_v34  ;;  %v9530_v34 = vpack.c.bf16 %v6538_v45, %v6534_v29 }
 0x409   :  { %9519 = vmatpush1.bf16.msra.mxu1 %v9518_v0  ;;  %6222 = vmatprep.mubr.f32.mxu0 %v10183_v3  ;;  %v6542_v0 = vld [vmem:[%s14684_s7 + $0x110] sm:$0xff] }
 0x40a   :  { %6489 = vmatprep.mubr.f32.mxu1 %v10183_v3  ;;  %9361 = vmatprep.subr.bf16.mxu0 %v9360_v39  ;;  %v9532_v39 = vpack.c.bf16 %v6547_v47, %v6543_v20  ;;  %v9534_v54 = vpack.c.bf16 %v6546_v22, %v6542_v0  ;;  %v6570_v20 = vld [vmem:[%s14684_s7 + $0x1f0] sm:$0xff]  ;;  %v6573_v47 = vld [vmem:[%s14684_s7 + $0x208] sm:$0xff] }
 0x40b   :  { %6223 = vmatmul.mubr.f32.gmra.mrb[126].mxu0 %v13008_v1  ;;  %9521 = vmatprep.subr.bf16.mxu1 %v9520_v63  ;;  %v9374_v63 = vpack.c.bf16 %v6544_v15, %v6540_v62  ;;  %v6575_v62 = vld [vmem:[%s14684_s7 + $0x218] sm:$0xff] }
 0x40c   :  { %6490 = vmatmul.mubr.f32.gmra.mrb[102].mxu1 %v13008_v1  ;;  %9363 = vmatpush1.bf16.msra.mxu0 %v9362_v46  ;;  %v6548_v46 = vld [vmem:[%s14684_s7 + $0x140] sm:$0xff]  ;;  %v6579_v15 = vld [vmem:[%s14684_s7 + $0x238] sm:$0xff] }
 0x40d   :  { %9523 = vmatpush1.bf16.msra.mxu1 %v9522_v38  ;;  %6228 = vmatprep.mubr.f32.mxu0 %v10183_v3  ;;  %v9536_v38 = vpack.c.bf16 %v6555_v14, %v6551_v43  ;;  %v9378_v12 = vpack.c.bf16 %v6552_v33, %v6548_v46  ;;  %v9548_v43 = vpack.c.bf16 %v6579_v15, %v6575_v62  ;;  %v6578_v14 = vld [vmem:[%s14684_s7 + $0x230] sm:$0xff]  ;;  %v6587_v46 = vld [vmem:[%s14684_s7 + $0x278] sm:$0xff] }
 0x40e   :  { %6495 = vmatprep.mubr.f32.mxu1 %v10183_v3  ;;  %9365 = vmatprep.subr.bf16.mxu0 %v9364_v32  ;;  %v6559_v32 = vld [vmem:[%s14684_s7 + $0x198] sm:$0xff]  ;;  %v9390_v33 = vpack.c.bf16 %v6576_v24, %v6572_v8  ;;  %v6602_v15 = vld [vmem:[%s14684_s7 + $0x2f0] sm:$0xff] }
 0x40f   :  { %6229 = vmatmul.mubr.f32.gmra.mrb[128].mxu0 %v13039_v19  ;;  %9525 = vmatprep.subr.bf16.mxu1 %v9524_v50  ;;  %v9380_v50 = vpack.c.bf16 %v6561_v60, %v6557_v48  ;;  %v6584_v48 = vld [vmem:[%s14684_s7 + $0x260] sm:$0xff]  ;;  %v6582_v60 = vld [vmem:[%s14684_s7 + $0x250] sm:$0xff]  ;;  %v6611_v8 = vld [vmem:[%s14684_s7 + $0x338] sm:$0xff] }
 0x410   :  { %6496 = vmatmul.mubr.f32.gmra.mrb[104].mxu1 %v13039_v19  ;;  %9367 = vmatpush1.bf16.msra.mxu0 %v9366_v4  ;;  %v6558_v4 = vld [vmem:[%s14684_s7 + $0x190] sm:$0xff] }
 0x411   :  { %9527 = vmatpush1.bf16.msra.mxu1 %v9526_v11  ;;  %6234 = vmatprep.mubr.f32.mxu0 %v10183_v3  ;;  %v6565_v11 = vld [vmem:[%s14684_s7 + $0x1c8] sm:$0xff]  ;;  %v9542_v29 = vpack.c.bf16 %v6562_v18, %v6558_v4  ;;  %v6588_v18 = vld [vmem:[%s14684_s7 + $0x280] sm:$0xff] }
 0x412   :  { %6501 = vmatprep.mubr.f32.mxu1 %v10183_v3  ;;  %9369 = vmatprep.subr.bf16.mxu0 %v9368_v21  ;;  %v9382_v21 = vpack.c.bf16 %v6560_v27, %v6556_v5  ;;  %v9384_v45 = vpack.c.bf16 %v6569_v61, %v6565_v11  ;;  %v6595_v5 = vld [vmem:[%s14684_s7 + $0x2b8] sm:$0xff]  ;;  %v9394_v27 = vpack.c.bf16 %v6584_v48, %v6580_v35  ;;  %v6592_v11 = vld [vmem:[%s14684_s7 + $0x2a0] sm:$0xff]  ;;  %v6590_v61 = vld [vmem:[%s14684_s7 + $0x290] sm:$0xff] }
 0x413   :  { %6235 = vmatmul.mubr.f32.gmra.mrb[130].mxu0 %v13070_v49  ;;  %9529 = vmatprep.subr.bf16.mxu1 %v9528_v17  ;;  %v6564_v17 = vld [vmem:[%s14684_s7 + $0x1c0] sm:$0xff]  ;;  %v6619_v35 = vld [vmem:[%s14684_s7 + $0x378] sm:$0xff] }
 0x414   :  { %6502 = vmatmul.mubr.f32.gmra.mrb[106].mxu1 %v13070_v49  ;;  %9371 = vmatpush1.bf16.msra.mxu0 %v9370_v56  ;;  %v9544_v56 = vpack.c.bf16 %v6571_v55, %v6567_v23  ;;  %v9386_v0 = vpack.c.bf16 %v6568_v41, %v6564_v17  ;;  %v6594_v55 = vld [vmem:[%s14684_s7 + $0x2b0] sm:$0xff]  ;;  %v6603_v17 = vld [vmem:[%s14684_s7 + $0x2f8] sm:$0xff]  ;;  %v9398_v41 = vpack.c.bf16 %v6592_v11, %v6588_v18 }
 0x415   :  { %6892 = vmatprep.mubr.f32.mxu0 %v12303_v26  ;;  %9531 = vmatpush1.bf16.msra.mxu1 %v9530_v34  ;;  %v6577_v34 = vld [vmem:[%s14684_s7 + $0x228] sm:$0xff]  ;;  %v6627_v18 = vld [vmem:[%s14684_s7 + $0x3b8] sm:$0xff] }
 0x416   :  { %7159 = vmatprep.mubr.f32.mxu1 %v12303_v26  ;;  %9373 = vmatprep.subr.bf16.mxu0 %v9372_v36  ;;  %v6563_v26 = vld [vmem:[%s14684_s7 + $0x1b8] sm:$0xff]  ;;  %v9546_v36 = vpack.c.bf16 %v6570_v20, %v6566_v58  ;;  %v9388_v22 = vpack.c.bf16 %v6577_v34, %v6573_v47  ;;  %v9558_v58 = vpack.c.bf16 %v6594_v55, %v6590_v61  ;;  %v6596_v20 = vld [vmem:[%s14684_s7 + $0x2c0] sm:$0xff]  ;;  %v6598_v34 = vld [vmem:[%s14684_s7 + $0x2d0] sm:$0xff] }
 0x417   :  { %9533 = vmatprep.subr.bf16.mxu1 %v9532_v39  ;;  %v9540_v2 = vpack.c.bf16 %v6563_v26, %v6559_v32  ;;  %v6574_v39 = vld [vmem:[%s14684_s7 + $0x210] sm:$0xff]  ;;  %v6600_v47 = vld [vmem:[%s14684_s7 + $0x2e0] sm:$0xff] }
 0x418   :  { %9375 = vmatpush1.bf16.msra.mxu0 %v9374_v63  ;;  %v6581_v63 = vld [vmem:[%s14684_s7 + $0x248] sm:$0xff]  ;;  %v9550_v53 = vpack.c.bf16 %v6578_v14, %v6574_v39  ;;  %v6586_v26 = vld [vmem:[%s14684_s7 + $0x270] sm:$0xff]  ;;  %v9402_v24 = vpack.c.bf16 %v6600_v47, %v6596_v20  ;;  %v9562_v39 = vpack.c.bf16 %v6602_v15, %v6598_v34  ;;  %v6604_v14 = vld [vmem:[%s14684_s7 + $0x300] sm:$0xff] }
 0x419   :  { %9535 = vmatpush1.bf16.msra.mxu1 %v9534_v54  ;;  %9377 = vmatprep.subr.bf16.mxu0 %v9376_v31  ;;  %v6585_v54 = vld [vmem:[%s14684_s7 + $0x268] sm:$0xff]  ;;  %v6583_v31 = vld [vmem:[%s14684_s7 + $0x258] sm:$0xff]  ;;  %v9554_v4 = vpack.c.bf16 %v6586_v26, %v6582_v60  ;;  %v6612_v26 = vld [vmem:[%s14684_s7 + $0x340] sm:$0xff] }
 0x41a   :  { %9537 = vmatprep.subr.bf16.mxu1 %v9536_v38  ;;  %v9392_v38 = vpack.c.bf16 %v6585_v54, %v6581_v63  ;;  %v9552_v32 = vpack.c.bf16 %v6587_v46, %v6583_v31  ;;  %v6608_v63 = vld [vmem:[%s14684_s7 + $0x320] sm:$0xff]  ;;  %v6606_v54 = vld [vmem:[%s14684_s7 + $0x310] sm:$0xff]  ;;  %v6635_v20 = vld [vmem:[%s14684_s7 + $0x3f8] sm:$0xff] }
 0x41b   :  { %v6610_v46 = vld [vmem:[%s14684_s7 + $0x330] sm:$0xff]  ;;  %v9406_v48 = vpack.c.bf16 %v6608_v63, %v6604_v14  ;;  %v6620_v55 = vld [vmem:[%s14684_s7 + $0x380] sm:$0xff]  ;;  %v6643_v14 = vld [vmem:[%s14684_s7 + $0x438] sm:$0xff] }
 0x41c   :  { %9379 = vmatpush1.bf16.msra.mxu0 %v9378_v12  ;;  %v6589_v12 = vld [vmem:[%s14684_s7 + $0x288] sm:$0xff]  ;;  %v9566_v60 = vpack.c.bf16 %v6610_v46, %v6606_v54  ;;  %v6628_v15 = vld [vmem:[%s14684_s7 + $0x3c0] sm:$0xff] }
 0x41d   :  { %9539 = vmatpush1.bf16.msra.mxu1 %v9538_v30  ;;  %9381 = vmatprep.subr.bf16.mxu0 %v9380_v50  ;;  %v6593_v30 = vld [vmem:[%s14684_s7 + $0x2a8] sm:$0xff]  ;;  %v6591_v50 = vld [vmem:[%s14684_s7 + $0x298] sm:$0xff] }
 0x41e   :  { %9541 = vmatprep.subr.bf16.mxu1 %v9540_v2  ;;  %v9396_v2 = vpack.c.bf16 %v6593_v30, %v6589_v12  ;;  %v9556_v23 = vpack.c.bf16 %v6595_v5, %v6591_v50  ;;  %v6616_v12 = vld [vmem:[%s14684_s7 + $0x360] sm:$0xff]  ;;  %v6614_v30 = vld [vmem:[%s14684_s7 + $0x350] sm:$0xff] }
 0x41f   :  { %v6618_v5 = vld [vmem:[%s14684_s7 + $0x370] sm:$0xff]  ;;  %v9410_v11 = vpack.c.bf16 %v6616_v12, %v6612_v26  ;;  %v6651_v26 = vld [vmem:[%s14684_s7 + $0x478] sm:$0xff] }
 0x420   :  { %9383 = vmatpush1.bf16.msra.mxu0 %v9382_v21  ;;  %v6597_v21 = vld [vmem:[%s14684_s7 + $0x2c8] sm:$0xff]  ;;  %v9570_v61 = vpack.c.bf16 %v6618_v5, %v6614_v30  ;;  %v6644_v5 = vld [vmem:[%s14684_s7 + $0x440] sm:$0xff] }
 0x421   :  { %9543 = vmatpush1.bf16.msra.mxu1 %v9542_v29  ;;  %9385 = vmatprep.subr.bf16.mxu0 %v9384_v45  ;;  %v6601_v29 = vld [vmem:[%s14684_s7 + $0x2e8] sm:$0xff]  ;;  %v6599_v45 = vld [vmem:[%s14684_s7 + $0x2d8] sm:$0xff] }
 0x422   :  { %9545 = vmatprep.subr.bf16.mxu1 %v9544_v56  ;;  %v9400_v56 = vpack.c.bf16 %v6601_v29, %v6597_v21  ;;  %v9560_v62 = vpack.c.bf16 %v6603_v17, %v6599_v45  ;;  %v6624_v21 = vld [vmem:[%s14684_s7 + $0x3a0] sm:$0xff]  ;;  %v6622_v29 = vld [vmem:[%s14684_s7 + $0x390] sm:$0xff] }
 0x423   :  { %v6626_v17 = vld [vmem:[%s14684_s7 + $0x3b0] sm:$0xff]  ;;  %v9414_v47 = vpack.c.bf16 %v6624_v21, %v6620_v55  ;;  %v6659_v55 = vld [vmem:[%s14684_s7 + $0x4b8] sm:$0xff] }
 0x424   :  { %9387 = vmatpush1.bf16.msra.mxu0 %v9386_v0  ;;  %v6605_v0 = vld [vmem:[%s14684_s7 + $0x308] sm:$0xff]  ;;  %v9574_v34 = vpack.c.bf16 %v6626_v17, %v6622_v29  ;;  %v6656_v17 = vld [vmem:[%s14684_s7 + $0x4a0] sm:$0xff] }
 0x425   :  { %9547 = vmatpush1.bf16.msra.mxu1 %v9546_v36  ;;  %9389 = vmatprep.subr.bf16.mxu0 %v9388_v22  ;;  %v6609_v36 = vld [vmem:[%s14684_s7 + $0x328] sm:$0xff]  ;;  %v6607_v22 = vld [vmem:[%s14684_s7 + $0x318] sm:$0xff] }
 0x426   :  { %9549 = vmatprep.subr.bf16.mxu1 %v9548_v43  ;;  %v9404_v43 = vpack.c.bf16 %v6609_v36, %v6605_v0  ;;  %v9564_v31 = vpack.c.bf16 %v6611_v8, %v6607_v22  ;;  %v6632_v0 = vld [vmem:[%s14684_s7 + $0x3e0] sm:$0xff]  ;;  %v6630_v36 = vld [vmem:[%s14684_s7 + $0x3d0] sm:$0xff] }
 0x427   :  { %v6634_v8 = vld [vmem:[%s14684_s7 + $0x3f0] sm:$0xff]  ;;  %v9418_v63 = vpack.c.bf16 %v6632_v0, %v6628_v15 }
 0x428   :  { %9391 = vmatpush1.bf16.msra.mxu0 %v9390_v33  ;;  %v6613_v33 = vld [vmem:[%s14684_s7 + $0x348] sm:$0xff]  ;;  %v9578_v54 = vpack.c.bf16 %v6634_v8, %v6630_v36  ;;  %v6664_v36 = vld [vmem:[%s14684_s7 + $0x4e0] sm:$0xff]  ;;  %v6666_v8 = vld [vmem:[%s14684_s7 + $0x4f0] sm:$0xff] }
 0x429   :  { %9551 = vmatpush1.bf16.msra.mxu1 %v9550_v53  ;;  %9393 = vmatprep.subr.bf16.mxu0 %v9392_v38  ;;  %v6617_v53 = vld [vmem:[%s14684_s7 + $0x368] sm:$0xff]  ;;  %v6615_v38 = vld [vmem:[%s14684_s7 + $0x358] sm:$0xff] }
 0x42a   :  { %9553 = vmatprep.subr.bf16.mxu1 %v9552_v32  ;;  %v9408_v32 = vpack.c.bf16 %v6617_v53, %v6613_v33  ;;  %v9568_v50 = vpack.c.bf16 %v6619_v35, %v6615_v38  ;;  %v6636_v33 = vld [vmem:[%s14684_s7 + $0x400] sm:$0xff]  ;;  %v6638_v38 = vld [vmem:[%s14684_s7 + $0x410] sm:$0xff] }
 0x42b   :  { %v6640_v53 = vld [vmem:[%s14684_s7 + $0x420] sm:$0xff]  ;;  %v6642_v35 = vld [vmem:[%s14684_s7 + $0x430] sm:$0xff] }
 0x42c   :  { %9395 = vmatpush1.bf16.msra.mxu0 %v9394_v27  ;;  %v6621_v27 = vld [vmem:[%s14684_s7 + $0x388] sm:$0xff]  ;;  %v9422_v12 = vpack.c.bf16 %v6640_v53, %v6636_v33  ;;  %v9582_v30 = vpack.c.bf16 %v6642_v35, %v6638_v38  ;;  %v6670_v33 = vld [vmem:[%s14684_s7 + $0x510] sm:$0xff] }
 0x42d   :  { %9555 = vmatpush1.bf16.msra.mxu1 %v9554_v4  ;;  %9397 = vmatprep.subr.bf16.mxu0 %v9396_v2  ;;  %v6625_v4 = vld [vmem:[%s14684_s7 + $0x3a8] sm:$0xff]  ;;  %v6623_v2 = vld [vmem:[%s14684_s7 + $0x398] sm:$0xff]  ;;  %v6674_v53 = vld [vmem:[%s14684_s7 + $0x530] sm:$0xff] }
 0x42e   :  { %9557 = vmatprep.subr.bf16.mxu1 %v9556_v23  ;;  %v9412_v23 = vpack.c.bf16 %v6625_v4, %v6621_v27  ;;  %v9572_v45 = vpack.c.bf16 %v6627_v18, %v6623_v2  ;;  %v6648_v27 = vld [vmem:[%s14684_s7 + $0x460] sm:$0xff]  ;;  %v6646_v4 = vld [vmem:[%s14684_s7 + $0x450] sm:$0xff]  ;;  %v6677_v38 = vld [vmem:[%s14684_s7 + $0x548] sm:$0xff] }
 0x42f   :  { %v6650_v18 = vld [vmem:[%s14684_s7 + $0x470] sm:$0xff]  ;;  %v9426_v21 = vpack.c.bf16 %v6648_v27, %v6644_v5  ;;  %v6681_v35 = vld [vmem:[%s14684_s7 + $0x568] sm:$0xff] }
 0x430   :  { %9399 = vmatpush1.bf16.msra.mxu0 %v9398_v41  ;;  %v6629_v41 = vld [vmem:[%s14684_s7 + $0x3c8] sm:$0xff]  ;;  %v9586_v29 = vpack.c.bf16 %v6650_v18, %v6646_v4  ;;  %v6691_v18 = vld [vmem:[%s14684_s7 + $0x5b8] sm:$0xff] }
 0x431   :  { %9559 = vmatpush1.bf16.msra.mxu1 %v9558_v58  ;;  %9401 = vmatprep.subr.bf16.mxu0 %v9400_v56  ;;  %v6633_v58 = vld [vmem:[%s14684_s7 + $0x3e8] sm:$0xff]  ;;  %v6631_v56 = vld [vmem:[%s14684_s7 + $0x3d8] sm:$0xff] }
 0x432   :  { %9561 = vmatprep.subr.bf16.mxu1 %v9560_v62  ;;  %v9416_v62 = vpack.c.bf16 %v6633_v58, %v6629_v41  ;;  %v9576_v22 = vpack.c.bf16 %v6635_v20, %v6631_v56  ;;  %v6654_v41 = vld [vmem:[%s14684_s7 + $0x490] sm:$0xff]  ;;  %v6661_v56 = vld [vmem:[%s14684_s7 + $0x4c8] sm:$0xff] }
 0x433   :  { %v6658_v58 = vld [vmem:[%s14684_s7 + $0x4b0] sm:$0xff]  ;;  %v6665_v20 = vld [vmem:[%s14684_s7 + $0x4e8] sm:$0xff] }
 0x434   :  { %9403 = vmatpush1.bf16.msra.mxu0 %v9402_v24  ;;  %v6637_v24 = vld [vmem:[%s14684_s7 + $0x408] sm:$0xff]  ;;  %v9590_v15 = vpack.c.bf16 %v6658_v58, %v6654_v41  ;;  %v9432_v0 = vpack.c.bf16 %v6665_v20, %v6661_v56  ;;  %v6699_v58 = vld [vmem:[%s14684_s7 + $0x5f8] sm:$0xff] }
 0x435   :  { %9563 = vmatpush1.bf16.msra.mxu1 %v9562_v39  ;;  %9405 = vmatprep.subr.bf16.mxu0 %v9404_v43  ;;  %v6641_v39 = vld [vmem:[%s14684_s7 + $0x428] sm:$0xff]  ;;  %v6639_v43 = vld [vmem:[%s14684_s7 + $0x418] sm:$0xff] }
 0x436   :  { %9565 = vmatprep.subr.bf16.mxu1 %v9564_v31  ;;  %v9420_v31 = vpack.c.bf16 %v6641_v39, %v6637_v24  ;;  %v9580_v46 = vpack.c.bf16 %v6643_v14, %v6639_v43  ;;  %v6669_v24 = vld [vmem:[%s14684_s7 + $0x508] sm:$0xff]  ;;  %v6671_v43 = vld [vmem:[%s14684_s7 + $0x518] sm:$0xff] }
 0x437   :  { %v6673_v39 = vld [vmem:[%s14684_s7 + $0x528] sm:$0xff]  ;;  %v6675_v14 = vld [vmem:[%s14684_s7 + $0x538] sm:$0xff] }
 0x438   :  { %9407 = vmatpush1.bf16.msra.mxu0 %v9406_v48  ;;  %v6645_v48 = vld [vmem:[%s14684_s7 + $0x448] sm:$0xff] }
 0x439   :  { %9567 = vmatpush1.bf16.msra.mxu1 %v9566_v60  ;;  %9409 = vmatprep.subr.bf16.mxu0 %v9408_v32  ;;  %v6649_v60 = vld [vmem:[%s14684_s7 + $0x468] sm:$0xff]  ;;  %v6647_v32 = vld [vmem:[%s14684_s7 + $0x458] sm:$0xff] }
 0x43a   :  { %9569 = vmatprep.subr.bf16.mxu1 %v9568_v50  ;;  %v9424_v50 = vpack.c.bf16 %v6649_v60, %v6645_v48  ;;  %v9584_v2 = vpack.c.bf16 %v6651_v26, %v6647_v32  ;;  %v6679_v48 = vld [vmem:[%s14684_s7 + $0x558] sm:$0xff]  ;;  %v9598_v26 = vpack.c.bf16 %v6674_v53, %v6670_v33  ;;  %v6685_v27 = vld [vmem:[%s14684_s7 + $0x588] sm:$0xff] }
 0x43b   :  { %v6683_v60 = vld [vmem:[%s14684_s7 + $0x578] sm:$0xff]  ;;  %v6689_v4 = vld [vmem:[%s14684_s7 + $0x5a8] sm:$0xff] }
 0x43c   :  { %9411 = vmatpush1.bf16.msra.mxu0 %v9410_v11  ;;  %v6653_v11 = vld [vmem:[%s14684_s7 + $0x488] sm:$0xff]  ;;  %v9600_v5 = vpack.c.bf16 %v6683_v60, %v6679_v48  ;;  %v6715_v53 = vld [vmem:[%s14684_s7 + $0x678] sm:$0xff]  ;;  %v6708_v60 = vld [vmem:[%s14684_s7 + $0x640] sm:$0xff] }
 0x43d   :  { %9571 = vmatpush1.bf16.msra.mxu1 %v9570_v61  ;;  %9413 = vmatprep.subr.bf16.mxu0 %v9412_v23  ;;  %v6657_v61 = vld [vmem:[%s14684_s7 + $0x4a8] sm:$0xff]  ;;  %v6655_v23 = vld [vmem:[%s14684_s7 + $0x498] sm:$0xff] }
 0x43e   :  { %9573 = vmatprep.subr.bf16.mxu1 %v9572_v45  ;;  %v9428_v45 = vpack.c.bf16 %v6657_v61, %v6653_v11  ;;  %v6697_v41 = vld [vmem:[%s14684_s7 + $0x5e8] sm:$0xff] }
 0x43f   :  { %v6713_v33 = vld [vmem:[%s14684_s7 + $0x668] sm:$0xff] }
 0x440   :  { %9415 = vmatpush1.bf16.msra.mxu0 %v9414_v47  ;;  %v6663_v47 = vld [vmem:[%s14684_s7 + $0x4d8] sm:$0xff] }
 0x441   :  { %9575 = vmatpush1.bf16.msra.mxu1 %v9574_v34  ;;  %9417 = vmatprep.subr.bf16.mxu0 %v9416_v62  ;;  %v6667_v34 = vld [vmem:[%s14684_s7 + $0x4f8] sm:$0xff] }
 0x442   :  { %9577 = vmatprep.subr.bf16.mxu1 %v9576_v22  ;;  %v6662_v22 = vld [vmem:[%s14684_s7 + $0x4d0] sm:$0xff] }
 0x444   :  { %9419 = vmatpush1.bf16.msra.mxu0 %v9418_v63 }
 0x445   :  { %9579 = vmatpush1.bf16.msra.mxu1 %v9578_v54  ;;  %9421 = vmatprep.subr.bf16.mxu0 %v9420_v31  ;;  %v9594_v54 = vpack.c.bf16 %v6666_v8, %v6662_v22  ;;  %v9436_v31 = vpack.c.bf16 %v6673_v39, %v6669_v24  ;;  %v6705_v22 = vld [vmem:[%s14684_s7 + $0x628] sm:$0xff]  ;;  %v6707_v8 = vld [vmem:[%s14684_s7 + $0x638] sm:$0xff] }
 0x446   :  { %9581 = vmatprep.subr.bf16.mxu1 %v9580_v46  ;;  %v6672_v46 = vld [vmem:[%s14684_s7 + $0x520] sm:$0xff] }
 0x447   :  { %6893 = vmatmul.mubr.f32.vlgmr.msra.gmra.mrb[132].mxu0 %v12314_v25 }
 0x448   :  { %7160 = vmatmul.mubr.f32.vlgmr.msra.gmra.mrb[108].mxu1 %v12314_v25  ;;  %6898 = vmatprep.mubr.f32.mxu0 %v12341_v44  ;;  %v6652_v25 = vld [vmem:[%s14684_s7 + $0x480] sm:$0xff] }
 0x449   :  { %9423 = vmatpush1.bf16.msra.mxu0 %v9422_v12  ;;  %7165 = vmatprep.mubr.f32.mxu1 %v12341_v44  ;;  %v9588_v44 = vpack.c.bf16 %v6659_v55, %v6655_v23  ;;  %v9430_v62 = vpack.c.bf16 %v6656_v17, %v6652_v25  ;;  %v9440_v12 = vpack.c.bf16 %v6681_v35, %v6677_v38  ;;  %v6684_v55 = vld [vmem:[%s14684_s7 + $0x580] sm:$0xff]  ;;  %v6690_v25 = vld [vmem:[%s14684_s7 + $0x5b0] sm:$0xff]  ;;  %v6693_v17 = vld [vmem:[%s14684_s7 + $0x5c8] sm:$0xff] }
 0x44a   :  { %9583 = vmatpush1.bf16.msra.mxu1 %v9582_v30  ;;  %9425 = vmatprep.subr.bf16.mxu0 %v9424_v50  ;;  %v6680_v30 = vld [vmem:[%s14684_s7 + $0x560] sm:$0xff]  ;;  %v6678_v50 = vld [vmem:[%s14684_s7 + $0x550] sm:$0xff]  ;;  %v9444_v23 = vpack.c.bf16 %v6689_v4, %v6685_v27 }
 0x44b   :  { %6899 = vmatmul.mubr.f32.gmra.mrb[134].mxu0 %v12352_v16  ;;  %9585 = vmatprep.subr.bf16.mxu1 %v9584_v2  ;;  %v6687_v2 = vld [vmem:[%s14684_s7 + $0x598] sm:$0xff] }
 0x44c   :  { %7166 = vmatmul.mubr.f32.gmra.mrb[110].mxu1 %v12352_v16  ;;  %6904 = vmatprep.mubr.f32.mxu0 %v12377_v57  ;;  %v6660_v16 = vld [vmem:[%s14684_s7 + $0x4c0] sm:$0xff] }
 0x44d   :  { %9427 = vmatpush1.bf16.msra.mxu0 %v9426_v21  ;;  %7171 = vmatprep.mubr.f32.mxu1 %v12377_v57  ;;  %v9592_v57 = vpack.c.bf16 %v6667_v34, %v6663_v47  ;;  %v9434_v63 = vpack.c.bf16 %v6664_v36, %v6660_v16  ;;  %v6688_v21 = vld [vmem:[%s14684_s7 + $0x5a0] sm:$0xff]  ;;  %v9448_v47 = vpack.c.bf16 %v6697_v41, %v6693_v17  ;;  %v6698_v16 = vld [vmem:[%s14684_s7 + $0x5f0] sm:$0xff]  ;;  %v6701_v36 = vld [vmem:[%s14684_s7 + $0x608] sm:$0xff] }
 0x44e   :  { %9587 = vmatpush1.bf16.msra.mxu1 %v9586_v29  ;;  %9429 = vmatprep.subr.bf16.mxu0 %v9428_v45  ;;  %v6686_v29 = vld [vmem:[%s14684_s7 + $0x590] sm:$0xff]  ;;  %v9604_v45 = vpack.c.bf16 %v6691_v18, %v6687_v2  ;;  %v9446_v56 = vpack.c.bf16 %v6688_v21, %v6684_v55  ;;  %v6692_v34 = vld [vmem:[%s14684_s7 + $0x5c0] sm:$0xff]  ;;  %v6725_v21 = vld [vmem:[%s14684_s7 + $0x6c8] sm:$0xff] }
 0x44f   :  { %6905 = vmatmul.mubr.f32.gmra.mrb[136].mxu0 %v12386_v7  ;;  %9589 = vmatprep.subr.bf16.mxu1 %v9588_v44  ;;  %v6695_v44 = vld [vmem:[%s14684_s7 + $0x5d8] sm:$0xff]  ;;  %v9606_v20 = vpack.c.bf16 %v6690_v25, %v6686_v29  ;;  %v6716_v18 = vld [vmem:[%s14684_s7 + $0x680] sm:$0xff]  ;;  %v6722_v55 = vld [vmem:[%s14684_s7 + $0x6b0] sm:$0xff] }
 0x450   :  { %7172 = vmatmul.mubr.f32.gmra.mrb[112].mxu1 %v12386_v7  ;;  %6910 = vmatprep.mubr.f32.mxu0 %v12411_v9  ;;  %v6668_v7 = vld [vmem:[%s14684_s7 + $0x500] sm:$0xff]  ;;  %v6729_v29 = vld [vmem:[%s14684_s7 + $0x6e8] sm:$0xff]  ;;  %v6731_v25 = vld [vmem:[%s14684_s7 + $0x6f8] sm:$0xff] }
 0x451   :  { %9431 = vmatpush1.bf16.msra.mxu0 %v9430_v62  ;;  %7177 = vmatprep.mubr.f32.mxu1 %v12411_v9  ;;  %v9596_v9 = vpack.c.bf16 %v6675_v14, %v6671_v43  ;;  %v9438_v32 = vpack.c.bf16 %v6672_v46, %v6668_v7  ;;  %v6696_v62 = vld [vmem:[%s14684_s7 + $0x5e0] sm:$0xff]  ;;  %v9452_v43 = vpack.c.bf16 %v6705_v22, %v6701_v36  ;;  %v6706_v7 = vld [vmem:[%s14684_s7 + $0x630] sm:$0xff]  ;;  %v6709_v46 = vld [vmem:[%s14684_s7 + $0x648] sm:$0xff] }
 0x452   :  { %9591 = vmatpush1.bf16.msra.mxu1 %v9590_v15  ;;  %9433 = vmatprep.subr.bf16.mxu0 %v9432_v0  ;;  %v6694_v15 = vld [vmem:[%s14684_s7 + $0x5d0] sm:$0xff]  ;;  %v9608_v0 = vpack.c.bf16 %v6699_v58, %v6695_v44  ;;  %v9450_v24 = vpack.c.bf16 %v6696_v62, %v6692_v34  ;;  %v6700_v14 = vld [vmem:[%s14684_s7 + $0x600] sm:$0xff]  ;;  %v9456_v48 = vpack.c.bf16 %v6713_v33, %v6709_v46  ;;  %v6733_v62 = vld [vmem:[%s14684_s7 + $0x708] sm:$0xff] }
 0x453   :  { %6911 = vmatmul.mubr.f32.gmra.mrb[138].mxu0 %v12414_v59  ;;  %9593 = vmatprep.subr.bf16.mxu1 %v9592_v57  ;;  %v6703_v57 = vld [vmem:[%s14684_s7 + $0x618] sm:$0xff]  ;;  %v9610_v39 = vpack.c.bf16 %v6698_v16, %v6694_v15  ;;  %v9464_v44 = vpack.c.bf16 %v6729_v29, %v6725_v21  ;;  %v6724_v58 = vld [vmem:[%s14684_s7 + $0x6c0] sm:$0xff]  ;;  %v6730_v34 = vld [vmem:[%s14684_s7 + $0x6f0] sm:$0xff] }
 0x454   :  { %7178 = vmatmul.mubr.f32.gmra.mrb[114].mxu1 %v12414_v59  ;;  %6981 = vmatprep.mubr.f32.mxu0 %v12451_v40  ;;  %v6676_v59 = vld [vmem:[%s14684_s7 + $0x540] sm:$0xff]  ;;  %v6737_v15 = vld [vmem:[%s14684_s7 + $0x728] sm:$0xff]  ;;  %v6739_v16 = vld [vmem:[%s14684_s7 + $0x738] sm:$0xff] }
 0x455   :  { %9435 = vmatpush1.bf16.msra.mxu0 %v9434_v63  ;;  %7248 = vmatprep.mubr.f32.mxu1 %v12451_v40  ;;  %v6682_v40 = vld [vmem:[%s14684_s7 + $0x570] sm:$0xff]  ;;  %v9442_v11 = vpack.c.bf16 %v6680_v30, %v6676_v59  ;;  %v6704_v63 = vld [vmem:[%s14684_s7 + $0x620] sm:$0xff]  ;;  %v6717_v30 = vld [vmem:[%s14684_s7 + $0x688] sm:$0xff] }
 0x456   :  { %9595 = vmatpush1.bf16.msra.mxu1 %v9594_v54  ;;  %9437 = vmatprep.subr.bf16.mxu0 %v9436_v31  ;;  %v9602_v61 = vpack.c.bf16 %v6682_v40, %v6678_v50  ;;  %v6702_v54 = vld [vmem:[%s14684_s7 + $0x610] sm:$0xff]  ;;  %v9612_v31 = vpack.c.bf16 %v6707_v8, %v6703_v57  ;;  %v9454_v38 = vpack.c.bf16 %v6704_v63, %v6700_v14  ;;  %v6721_v50 = vld [vmem:[%s14684_s7 + $0x6a8] sm:$0xff]  ;;  %v6723_v40 = vld [vmem:[%s14684_s7 + $0x6b8] sm:$0xff] }
 0x457   :  { %9597 = vmatprep.subr.bf16.mxu1 %v9596_v9  ;;  %v6711_v9 = vld [vmem:[%s14684_s7 + $0x658] sm:$0xff]  ;;  %v9614_v35 = vpack.c.bf16 %v6706_v7, %v6702_v54  ;;  %v6714_v59 = vld [vmem:[%s14684_s7 + $0x670] sm:$0xff]  ;;  %v9460_v2 = vpack.c.bf16 %v6721_v50, %v6717_v30  ;;  %v9468_v57 = vpack.c.bf16 %v6737_v15, %v6733_v62  ;;  %v6732_v8 = vld [vmem:[%s14684_s7 + $0x700] sm:$0xff] }
 0x458   :  { %v6738_v14 = vld [vmem:[%s14684_s7 + $0x730] sm:$0xff]  ;;  %v6741_v63 = vld [vmem:[%s14684_s7 + $0x748] sm:$0xff]  ;;  %v6747_v7 = vld [vmem:[%s14684_s7 + $0x778] sm:$0xff] }
 0x459   :  { %9439 = vmatpush1.bf16.msra.mxu0 %v9438_v32  ;;  %v6712_v32 = vld [vmem:[%s14684_s7 + $0x660] sm:$0xff]  ;;  %v6745_v54 = vld [vmem:[%s14684_s7 + $0x768] sm:$0xff] }
 0x45a   :  { %9599 = vmatpush1.bf16.msra.mxu1 %v9598_v26  ;;  %9441 = vmatprep.subr.bf16.mxu0 %v9440_v12  ;;  %v6710_v26 = vld [vmem:[%s14684_s7 + $0x650] sm:$0xff]  ;;  %v9616_v12 = vpack.c.bf16 %v6715_v53, %v6711_v9  ;;  %v9458_v27 = vpack.c.bf16 %v6712_v32, %v6708_v60  ;;  %v9472_v9 = vpack.c.bf16 %v6745_v54, %v6741_v63  ;;  %v6740_v53 = vld [vmem:[%s14684_s7 + $0x740] sm:$0xff]  ;;  %v6749_v32 = vld [vmem:[%s14684_s7 + $0x788] sm:$0xff] }
 0x45b   :  { %9601 = vmatprep.subr.bf16.mxu1 %v9600_v5  ;;  %v6719_v5 = vld [vmem:[%s14684_s7 + $0x698] sm:$0xff]  ;;  %v9618_v4 = vpack.c.bf16 %v6714_v59, %v6710_v26  ;;  %v6746_v60 = vld [vmem:[%s14684_s7 + $0x770] sm:$0xff]  ;;  %v6753_v26 = vld [vmem:[%s14684_s7 + $0x7a8] sm:$0xff] }
 0x45c   :  { %v6755_v59 = vld [vmem:[%s14684_s7 + $0x7b8] sm:$0xff] }
 0x45d   :  { %9443 = vmatpush1.bf16.msra.mxu0 %v9442_v11  ;;  %v6720_v11 = vld [vmem:[%s14684_s7 + $0x6a0] sm:$0xff] }
 0x45e   :  { %9603 = vmatpush1.bf16.msra.mxu1 %v9602_v61  ;;  %9445 = vmatprep.subr.bf16.mxu0 %v9444_v23  ;;  %v6718_v61 = vld [vmem:[%s14684_s7 + $0x690] sm:$0xff]  ;;  %v9620_v23 = vpack.c.bf16 %v6723_v40, %v6719_v5  ;;  %v9462_v17 = vpack.c.bf16 %v6720_v11, %v6716_v18  ;;  %v9476_v5 = vpack.c.bf16 %v6753_v26, %v6749_v32  ;;  %v6748_v40 = vld [vmem:[%s14684_s7 + $0x780] sm:$0xff]  ;;  %v6757_v11 = vld [vmem:[%s14684_s7 + $0x7c8] sm:$0xff] }
 0x45f   :  { %9605 = vmatprep.subr.bf16.mxu1 %v9604_v45  ;;  %v6727_v45 = vld [vmem:[%s14684_s7 + $0x6d8] sm:$0xff]  ;;  %v9622_v41 = vpack.c.bf16 %v6722_v55, %v6718_v61  ;;  %v6754_v18 = vld [vmem:[%s14684_s7 + $0x7b0] sm:$0xff]  ;;  %v6761_v61 = vld [vmem:[%s14684_s7 + $0x7e8] sm:$0xff] }
 0x460   :  { %v6763_v55 = vld [vmem:[%s14684_s7 + $0x7f8] sm:$0xff] }
 0x461   :  { %9447 = vmatpush1.bf16.msra.mxu0 %v9446_v56  ;;  %v6728_v56 = vld [vmem:[%s14684_s7 + $0x6e0] sm:$0xff] }
 0x462   :  { %9607 = vmatpush1.bf16.msra.mxu1 %v9606_v20  ;;  %9449 = vmatprep.subr.bf16.mxu0 %v9448_v47  ;;  %v6726_v20 = vld [vmem:[%s14684_s7 + $0x6d0] sm:$0xff]  ;;  %v9624_v47 = vpack.c.bf16 %v6731_v25, %v6727_v45  ;;  %v9466_v36 = vpack.c.bf16 %v6728_v56, %v6724_v58  ;;  %v9480_v45 = vpack.c.bf16 %v6761_v61, %v6757_v11  ;;  %v6756_v25 = vld [vmem:[%s14684_s7 + $0x7c0] sm:$0xff]  ;;  %v6765_v56 = vld [vmem:[%s14684_s7 + $0x808] sm:$0xff] }
 0x463   :  { %9609 = vmatprep.subr.bf16.mxu1 %v9608_v0  ;;  %v6735_v0 = vld [vmem:[%s14684_s7 + $0x718] sm:$0xff]  ;;  %v9626_v22 = vpack.c.bf16 %v6730_v34, %v6726_v20  ;;  %v6762_v58 = vld [vmem:[%s14684_s7 + $0x7f0] sm:$0xff]  ;;  %v6769_v20 = vld [vmem:[%s14684_s7 + $0x828] sm:$0xff] }
 0x464   :  { %v6771_v34 = vld [vmem:[%s14684_s7 + $0x838] sm:$0xff]  ;;  %v6792_v61 = vld [vmem:[%s14684_s7 + $0x8e0] sm:$0xff] }
 0x465   :  { %9451 = vmatpush1.bf16.msra.mxu0 %v9450_v24  ;;  %v6736_v24 = vld [vmem:[%s14684_s7 + $0x720] sm:$0xff] }
 0x466   :  { %9611 = vmatpush1.bf16.msra.mxu1 %v9610_v39  ;;  %9453 = vmatprep.subr.bf16.mxu0 %v9452_v43  ;;  %v6734_v39 = vld [vmem:[%s14684_s7 + $0x710] sm:$0xff]  ;;  %v9628_v43 = vpack.c.bf16 %v6739_v16, %v6735_v0  ;;  %v9470_v46 = vpack.c.bf16 %v6736_v24, %v6732_v8  ;;  %v9484_v0 = vpack.c.bf16 %v6769_v20, %v6765_v56  ;;  %v6773_v24 = vld [vmem:[%s14684_s7 + $0x848] sm:$0xff] }
 0x467   :  { %9613 = vmatprep.subr.bf16.mxu1 %v9612_v31  ;;  %v6743_v31 = vld [vmem:[%s14684_s7 + $0x758] sm:$0xff]  ;;  %v9630_v33 = vpack.c.bf16 %v6738_v14, %v6734_v39  ;;  %v6770_v8 = vld [vmem:[%s14684_s7 + $0x830] sm:$0xff]  ;;  %v6777_v39 = vld [vmem:[%s14684_s7 + $0x868] sm:$0xff] }
 0x468   :  { %v6779_v14 = vld [vmem:[%s14684_s7 + $0x878] sm:$0xff]  ;;  %v6798_v56 = vld [vmem:[%s14684_s7 + $0x910] sm:$0xff] }
 0x469   :  { %9455 = vmatpush1.bf16.msra.mxu0 %v9454_v38  ;;  %v6744_v38 = vld [vmem:[%s14684_s7 + $0x760] sm:$0xff]  ;;  %v6802_v20 = vld [vmem:[%s14684_s7 + $0x930] sm:$0xff] }
 0x46a   :  { %9615 = vmatpush1.bf16.msra.mxu1 %v9614_v35  ;;  %9457 = vmatprep.subr.bf16.mxu0 %v9456_v48  ;;  %v6742_v35 = vld [vmem:[%s14684_s7 + $0x750] sm:$0xff]  ;;  %v9632_v48 = vpack.c.bf16 %v6747_v7, %v6743_v31  ;;  %v9474_v30 = vpack.c.bf16 %v6744_v38, %v6740_v53  ;;  %v9488_v31 = vpack.c.bf16 %v6777_v39, %v6773_v24  ;;  %v6772_v7 = vld [vmem:[%s14684_s7 + $0x840] sm:$0xff]  ;;  %v6781_v38 = vld [vmem:[%s14684_s7 + $0x888] sm:$0xff] }
 0x46b   :  { %9617 = vmatprep.subr.bf16.mxu1 %v9616_v12  ;;  %v6751_v12 = vld [vmem:[%s14684_s7 + $0x798] sm:$0xff]  ;;  %v9634_v50 = vpack.c.bf16 %v6746_v60, %v6742_v35  ;;  %v6778_v53 = vld [vmem:[%s14684_s7 + $0x870] sm:$0xff]  ;;  %v6785_v35 = vld [vmem:[%s14684_s7 + $0x8a8] sm:$0xff] }
 0x46c   :  { %v6787_v60 = vld [vmem:[%s14684_s7 + $0x8b8] sm:$0xff]  ;;  %v6810_v24 = vld [vmem:[%s14684_s7 + $0x970] sm:$0xff]  ;;  %v6813_v39 = vld [vmem:[%s14684_s7 + $0x988] sm:$0xff] }
 0x46d   :  { %9459 = vmatpush1.bf16.msra.mxu0 %v9458_v27  ;;  %v6752_v27 = vld [vmem:[%s14684_s7 + $0x7a0] sm:$0xff] }
 0x46e   :  { %9619 = vmatpush1.bf16.msra.mxu1 %v9618_v4  ;;  %9461 = vmatprep.subr.bf16.mxu0 %v9460_v2  ;;  %v6750_v4 = vld [vmem:[%s14684_s7 + $0x790] sm:$0xff]  ;;  %v9636_v2 = vpack.c.bf16 %v6755_v59, %v6751_v12  ;;  %v9478_v21 = vpack.c.bf16 %v6752_v27, %v6748_v40  ;;  %v9492_v12 = vpack.c.bf16 %v6785_v35, %v6781_v38  ;;  %v6784_v59 = vld [vmem:[%s14684_s7 + $0x8a0] sm:$0xff]  ;;  %v6793_v40 = vld [vmem:[%s14684_s7 + $0x8e8] sm:$0xff] }
 0x46f   :  { %9621 = vmatprep.subr.bf16.mxu1 %v9620_v23  ;;  %v6759_v23 = vld [vmem:[%s14684_s7 + $0x7d8] sm:$0xff]  ;;  %v9638_v29 = vpack.c.bf16 %v6754_v18, %v6750_v4  ;;  %v6818_v38 = vld [vmem:[%s14684_s7 + $0x9b0] sm:$0xff]  ;;  %v6821_v35 = vld [vmem:[%s14684_s7 + $0x9c8] sm:$0xff] }
 0x470   :  { %v6791_v27 = vld [vmem:[%s14684_s7 + $0x8d8] sm:$0xff] }
 0x471   :  { %9463 = vmatpush1.bf16.msra.mxu0 %v9462_v17  ;;  %v6760_v17 = vld [vmem:[%s14684_s7 + $0x7e0] sm:$0xff]  ;;  %v6795_v4 = vld [vmem:[%s14684_s7 + $0x8f8] sm:$0xff] }
 0x472   :  { %9623 = vmatpush1.bf16.msra.mxu1 %v9622_v41  ;;  %9465 = vmatprep.subr.bf16.mxu0 %v9464_v44  ;;  %v6758_v41 = vld [vmem:[%s14684_s7 + $0x7d0] sm:$0xff]  ;;  %v9640_v44 = vpack.c.bf16 %v6763_v55, %v6759_v23  ;;  %v9482_v62 = vpack.c.bf16 %v6760_v17, %v6756_v25  ;;  %v6803_v25 = vld [vmem:[%s14684_s7 + $0x938] sm:$0xff] }
 0x473   :  { %9625 = vmatprep.subr.bf16.mxu1 %v9624_v47  ;;  %v6767_v47 = vld [vmem:[%s14684_s7 + $0x818] sm:$0xff]  ;;  %v9642_v15 = vpack.c.bf16 %v6762_v58, %v6758_v41  ;;  %v6790_v23 = vld [vmem:[%s14684_s7 + $0x8d0] sm:$0xff]  ;;  %v6800_v58 = vld [vmem:[%s14684_s7 + $0x920] sm:$0xff] }
 0x474   :  { %v9644_v16 = vpack.c.bf16 %v6771_v34, %v6767_v47  ;;  %v6794_v55 = vld [vmem:[%s14684_s7 + $0x8f0] sm:$0xff]  ;;  %v6805_v47 = vld [vmem:[%s14684_s7 + $0x948] sm:$0xff] }
 0x475   :  { %9467 = vmatpush1.bf16.msra.mxu0 %v9466_v36  ;;  %v6764_v36 = vld [vmem:[%s14684_s7 + $0x800] sm:$0xff]  ;;  %v9658_v41 = vpack.c.bf16 %v6794_v55, %v6790_v23  ;;  %v6809_v34 = vld [vmem:[%s14684_s7 + $0x968] sm:$0xff]  ;;  %v7560_v23 = vld [vmem:[%s14685_s10 + $0x50] sm:$0xff] }
 0x476   :  { %9627 = vmatpush1.bf16.msra.mxu1 %v9626_v22  ;;  %9469 = vmatprep.subr.bf16.mxu0 %v9468_v57  ;;  %v6768_v22 = vld [vmem:[%s14684_s7 + $0x820] sm:$0xff]  ;;  %v6766_v57 = vld [vmem:[%s14684_s7 + $0x810] sm:$0xff] }
 0x477   :  { %9629 = vmatprep.subr.bf16.mxu1 %v9628_v43  ;;  %v6775_v43 = vld [vmem:[%s14684_s7 + $0x858] sm:$0xff]  ;;  %v9486_v63 = vpack.c.bf16 %v6768_v22, %v6764_v36  ;;  %v9646_v54 = vpack.c.bf16 %v6770_v8, %v6766_v57  ;;  %v9504_v36 = vpack.c.bf16 %v6809_v34, %v6805_v47  ;;  %v6808_v22 = vld [vmem:[%s14684_s7 + $0x960] sm:$0xff]  ;;  %v6806_v57 = vld [vmem:[%s14684_s7 + $0x950] sm:$0xff] }
 0x479   :  { %9471 = vmatpush1.bf16.msra.mxu0 %v9470_v46  ;;  %v6776_v46 = vld [vmem:[%s14684_s7 + $0x860] sm:$0xff] }
 0x47a   :  { %9631 = vmatpush1.bf16.msra.mxu1 %v9630_v33  ;;  %9473 = vmatprep.subr.bf16.mxu0 %v9472_v9  ;;  %v6774_v33 = vld [vmem:[%s14684_s7 + $0x850] sm:$0xff]  ;;  %v9648_v9 = vpack.c.bf16 %v6779_v14, %v6775_v43  ;;  %v9490_v32 = vpack.c.bf16 %v6776_v46, %v6772_v7  ;;  %v6817_v43 = vld [vmem:[%s14684_s7 + $0x9a8] sm:$0xff]  ;;  %v6815_v14 = vld [vmem:[%s14684_s7 + $0x998] sm:$0xff] }
 0x47b   :  { %9633 = vmatprep.subr.bf16.mxu1 %v9632_v48  ;;  %v6783_v48 = vld [vmem:[%s14684_s7 + $0x898] sm:$0xff]  ;;  %v9650_v26 = vpack.c.bf16 %v6778_v53, %v6774_v33  ;;  %v9508_v7 = vpack.c.bf16 %v6817_v43, %v6813_v39  ;;  %v6812_v46 = vld [vmem:[%s14684_s7 + $0x980] sm:$0xff] }
 0x47c   :  { %v6816_v33 = vld [vmem:[%s14684_s7 + $0x9a0] sm:$0xff] }
 0x47d   :  { %9475 = vmatpush1.bf16.msra.mxu0 %v9474_v30  ;;  %v6782_v30 = vld [vmem:[%s14684_s7 + $0x890] sm:$0xff]  ;;  %v7562_v43 = vld [vmem:[%s14685_s10 + $0x60] sm:$0xff] }
 0x47e   :  { %9635 = vmatpush1.bf16.msra.mxu1 %v9634_v50  ;;  %9477 = vmatprep.subr.bf16.mxu0 %v9476_v5  ;;  %v6786_v50 = vld [vmem:[%s14684_s7 + $0x8b0] sm:$0xff]  ;;  %v6789_v5 = vld [vmem:[%s14684_s7 + $0x8c8] sm:$0xff] }
 0x47f   :  { %9637 = vmatprep.subr.bf16.mxu1 %v9636_v2  ;;  %v9654_v18 = vpack.c.bf16 %v6786_v50, %v6782_v30  ;;  %v9496_v11 = vpack.c.bf16 %v6793_v40, %v6789_v5  ;;  %v6824_v30 = vld [vmem:[%s14684_s7 + $0x9e0] sm:$0xff]  ;;  %v6826_v5 = vld [vmem:[%s14684_s7 + $0x9f0] sm:$0xff]  ;;  %v7551_v40 = vld [vmem:[%s14685_s10 + $0x8] sm:$0xff] }
 0x481   :  { %9479 = vmatpush1.bf16.msra.mxu0 %v9478_v21  ;;  %v6797_v21 = vld [vmem:[%s14684_s7 + $0x908] sm:$0xff] }
 0x482   :  { %9639 = vmatpush1.bf16.msra.mxu1 %v9638_v29  ;;  %9481 = vmatprep.subr.bf16.mxu0 %v9480_v45  ;;  %v6801_v29 = vld [vmem:[%s14684_s7 + $0x928] sm:$0xff]  ;;  %v6799_v45 = vld [vmem:[%s14684_s7 + $0x918] sm:$0xff] }
 0x483   :  { %9641 = vmatprep.subr.bf16.mxu1 %v9640_v44  ;;  %v9500_v44 = vpack.c.bf16 %v6801_v29, %v6797_v21 }
 0x485   :  { %9483 = vmatpush1.bf16.msra.mxu0 %v9482_v62  ;;  %v6807_v62 = vld [vmem:[%s14684_s7 + $0x958] sm:$0xff] }
 0x486   :  { %9643 = vmatpush1.bf16.msra.mxu1 %v9642_v15  ;;  %9485 = vmatprep.subr.bf16.mxu0 %v9484_v0  ;;  %v6811_v15 = vld [vmem:[%s14684_s7 + $0x978] sm:$0xff] }
 0x487   :  { %9645 = vmatprep.subr.bf16.mxu1 %v9644_v16  ;;  %v9662_v16 = vpack.c.bf16 %v6802_v20, %v6798_v56  ;;  %v9664_v8 = vpack.c.bf16 %v6811_v15, %v6807_v62 }
 0x488   :  { %6982 = vmatmul.mubr.f32.vlgmr.msra.gmra.mrb[132].mxu0 %v12748_v28 }
 0x489   :  { %7249 = vmatmul.mubr.f32.vlgmr.msra.gmra.mrb[108].mxu1 %v12748_v28  ;;  %6987 = vmatprep.mubr.f32.mxu0 %v12757_v6  ;;  %v6780_v28 = vld [vmem:[%s14684_s7 + $0x880] sm:$0xff] }
 0x48a   :  { %9487 = vmatpush1.bf16.msra.mxu0 %v9486_v63  ;;  %7254 = vmatprep.mubr.f32.mxu1 %v12757_v6  ;;  %v9652_v6 = vpack.c.bf16 %v6787_v60, %v6783_v48  ;;  %v9494_v2 = vpack.c.bf16 %v6784_v59, %v6780_v28  ;;  %v6819_v63 = vld [vmem:[%s14684_s7 + $0x9b8] sm:$0xff]  ;;  %v6825_v48 = vld [vmem:[%s14684_s7 + $0x9e8] sm:$0xff]  ;;  %v6820_v59 = vld [vmem:[%s14684_s7 + $0x9c0] sm:$0xff] }
 0x48b   :  { %9647 = vmatpush1.bf16.msra.mxu1 %v9646_v54  ;;  %9489 = vmatprep.subr.bf16.mxu0 %v9488_v31  ;;  %v9666_v31 = vpack.c.bf16 %v6810_v24, %v6806_v57  ;;  %v9668_v53 = vpack.c.bf16 %v6819_v63, %v6815_v14  ;;  %v6823_v60 = vld [vmem:[%s14684_s7 + $0x9d8] sm:$0xff]  ;;  %v9512_v28 = vpack.c.bf16 %v6825_v48, %v6821_v35  ;;  %v7566_v24 = vld [vmem:[%s14685_s10 + $0x80] sm:$0xff] }
 0x48c   :  { %6988 = vmatmul.mubr.f32.gmra.mrb[134].mxu0 %v12783_v51  ;;  %9649 = vmatprep.subr.bf16.mxu1 %v9648_v9  ;;  %v6814_v9 = vld [vmem:[%s14684_s7 + $0x990] sm:$0xff]  ;;  %v7565_v14 = vld [vmem:[%s14685_s10 + $0x78] sm:$0xff]  ;;  %v7574_v48 = vld [vmem:[%s14685_s10 + $0xc0] sm:$0xff] }
 0x48d   :  { %7255 = vmatmul.mubr.f32.gmra.mrb[110].mxu1 %v12783_v51  ;;  %6993 = vmatprep.mubr.f32.mxu0 %v12792_v13  ;;  %v6788_v51 = vld [vmem:[%s14684_s7 + $0x8c0] sm:$0xff]  ;;  %v9686_v63 = vpack.c.bf16 %v7565_v14, %v7562_v43 }
 0x48e   :  { %9491 = vmatpush1.bf16.msra.mxu0 %v9490_v32  ;;  %7260 = vmatprep.mubr.f32.mxu1 %v12792_v13  ;;  %v9656_v13 = vpack.c.bf16 %v6795_v4, %v6791_v27  ;;  %v9498_v17 = vpack.c.bf16 %v6792_v61, %v6788_v51  ;;  %v6827_v32 = vld [vmem:[%s14684_s7 + $0x9f8] sm:$0xff]  ;;  %v7554_v27 = vld [vmem:[%s14685_s10 + $0x20] sm:$0xff]  ;;  %v9514_v4 = vpack.c.bf16 %v6824_v30, %v6820_v59  ;;  %v7580_v59 = vld [vmem:[%s14685_s10 + $0xf0] sm:$0xff] }
 0x48f   :  { %9651 = vmatpush1.bf16.msra.mxu1 %v9650_v26  ;;  %9493 = vmatprep.subr.bf16.mxu0 %v9492_v12  ;;  %v9510_v26 = vpack.c.bf16 %v6816_v33, %v6812_v46  ;;  %v9670_v12 = vpack.c.bf16 %v6818_v38, %v6814_v9  ;;  %v9672_v50 = vpack.c.bf16 %v6827_v32, %v6823_v60  ;;  %v7553_v51 = vld [vmem:[%s14685_s10 + $0x18] sm:$0xff]  ;;  %v7568_v46 = vld [vmem:[%s14685_s10 + $0x90] sm:$0xff]  ;;  %v7571_v33 = vld [vmem:[%s14685_s10 + $0xa8] sm:$0xff] }
 0x490   :  { %6994 = vmatmul.mubr.f32.gmra.mrb[136].mxu0 %v12817_v37  ;;  %9653 = vmatprep.subr.bf16.mxu1 %v9652_v6  ;;  %v6822_v6 = vld [vmem:[%s14684_s7 + $0x9d0] sm:$0xff]  ;;  %v7557_v61 = vld [vmem:[%s14685_s10 + $0x38] sm:$0xff]  ;;  %v9690_v9 = vpack.c.bf16 %v7571_v33, %v7568_v46  ;;  %v7578_v38 = vld [vmem:[%s14685_s10 + $0xe0] sm:$0xff] }
 0x491   :  { %7261 = vmatmul.mubr.f32.gmra.mrb[112].mxu1 %v12817_v37  ;;  %6999 = vmatprep.mubr.f32.mxu0 %v12829_v10  ;;  %v6796_v37 = vld [vmem:[%s14684_s7 + $0x900] sm:$0xff]  ;;  %v9680_v55 = vpack.c.bf16 %v7560_v23, %v7557_v61  ;;  %v7577_v60 = vld [vmem:[%s14685_s10 + $0xd8] sm:$0xff]  ;;  %v7583_v30 = vld [vmem:[%s14685_s10 + $0x108] sm:$0xff] }
 0x492   :  { %9495 = vmatpush1.bf16.msra.mxu0 %v9494_v2  ;;  %7266 = vmatprep.mubr.f32.mxu1 %v12829_v10  ;;  %v9660_v10 = vpack.c.bf16 %v6803_v25, %v6799_v45  ;;  %v9502_v0 = vpack.c.bf16 %v6800_v58, %v6796_v37  ;;  %v9674_v2 = vpack.c.bf16 %v6826_v5, %v6822_v6  ;;  %v7590_v5 = vld [vmem:[%s14685_s10 + $0x140] sm:$0xff]  ;;  %v7592_v61 = vld [vmem:[%s14685_s10 + $0x150] sm:$0xff]  ;;  %v7595_v23 = vld [vmem:[%s14685_s10 + $0x168] sm:$0xff] }
 0x493   :  { %9655 = vmatpush1.bf16.msra.mxu1 %v9654_v18  ;;  %9497 = vmatprep.subr.bf16.mxu0 %v9496_v11  ;;  %v9676_v18 = vpack.c.bf16 %v7554_v27, %v7551_v40  ;;  %v7550_v11 = vld [vmem:[%s14685_s10] sm:$0xff]  ;;  %v9694_v32 = vpack.c.bf16 %v7577_v60, %v7574_v48  ;;  %v9698_v6 = vpack.c.bf16 %v7583_v30, %v7580_v59  ;;  %v7608_v46 = vld [vmem:[%s14685_s10 + $0x1d0] sm:$0xff] }
 0x494   :  { %7000 = vmatmul.mubr.f32.gmra.mrb[138].mxu0 %v12851_v52  ;;  %9657 = vmatprep.subr.bf16.mxu1 %v9656_v13  ;;  %v9678_v13 = vpack.c.bf16 %v7553_v51, %v7550_v11  ;;  %v7586_v27 = vld [vmem:[%s14685_s10 + $0x120] sm:$0xff]  ;;  %v7596_v11 = vld [vmem:[%s14685_s10 + $0x170] sm:$0xff] }
 0x495   :  { %7267 = vmatmul.mubr.f32.gmra.mrb[114].mxu1 %v12851_v52  ;;  %7070 = vmatprep.mubr.f32.mxu0 %v10183_v3  ;;  %v6804_v52 = vld [vmem:[%s14684_s7 + $0x940] sm:$0xff]  ;;  %v7612_v30 = vld [vmem:[%s14685_s10 + $0x1f0] sm:$0xff] }
 0x496   :  { %9499 = vmatpush1.bf16.msra.mxu0 %v9498_v17  ;;  %7337 = vmatprep.mubr.f32.mxu1 %v10183_v3  ;;  %v9506_v54 = vpack.c.bf16 %v6808_v22, %v6804_v52  ;;  %v7556_v52 = vld [vmem:[%s14685_s10 + $0x30] sm:$0xff]  ;;  %v7559_v22 = vld [vmem:[%s14685_s10 + $0x48] sm:$0xff]  ;;  %v7606_v33 = vld [vmem:[%s14685_s10 + $0x1c0] sm:$0xff] }
 0x497   :  { %9659 = vmatpush1.bf16.msra.mxu1 %v9658_v41  ;;  %9501 = vmatprep.subr.bf16.mxu0 %v9500_v44  ;;  %v9682_v57 = vpack.c.bf16 %v7559_v22, %v7556_v52  ;;  %v7602_v52 = vld [vmem:[%s14685_s10 + $0x1a0] sm:$0xff]  ;;  %v7600_v22 = vld [vmem:[%s14685_s10 + $0x190] sm:$0xff] }
 0x498   :  { %9661 = vmatprep.subr.bf16.mxu1 %v9660_v10  ;;  %v7614_v59 = vld [vmem:[%s14685_s10 + $0x200] sm:$0xff] }
 0x49a   :  { %9503 = vmatpush1.bf16.msra.mxu0 %v9502_v0 }
 0x49b   :  { %9663 = vmatpush1.bf16.msra.mxu1 %v9662_v16  ;;  %9505 = vmatprep.subr.bf16.mxu0 %v9504_v36 }
 0x49c   :  { %9665 = vmatprep.subr.bf16.mxu1 %v9664_v8  ;;  %v7563_v8 = vld [vmem:[%s14685_s10 + $0x68] sm:$0xff] }
 0x49d   :  { %v9684_v39 = vpack.c.bf16 %v7566_v24, %v7563_v8  ;;  %v7603_v8 = vld [vmem:[%s14685_s10 + $0x1a8] sm:$0xff]  ;;  %v7598_v24 = vld [vmem:[%s14685_s10 + $0x180] sm:$0xff] }
 0x49e   :  { %9507 = vmatpush1.bf16.msra.mxu0 %v9506_v54  ;;  %v7569_v54 = vld [vmem:[%s14685_s10 + $0x98] sm:$0xff]  ;;  %v9740_v43 = vpack.c.bf16 %v7603_v8, %v7600_v22  ;;  %v7616_v22 = vld [vmem:[%s14685_s10 + $0x210] sm:$0xff]  ;;  %v7570_v8 = vld [vmem:[%s14685_s10 + $0xa0] sm:$0xff] }
 0x49f   :  { %9667 = vmatpush1.bf16.msra.mxu1 %v9666_v31  ;;  %9509 = vmatprep.subr.bf16.mxu0 %v9508_v7  ;;  %v7572_v31 = vld [vmem:[%s14685_s10 + $0xb0] sm:$0xff] }
 0x4a0   :  { %9669 = vmatprep.subr.bf16.mxu1 %v9668_v53  ;;  %v9688_v7 = vpack.c.bf16 %v7572_v31, %v7569_v54  ;;  %v7575_v53 = vld [vmem:[%s14685_s10 + $0xc8] sm:$0xff] }
 0x4a1   :  { %v9692_v35 = vpack.c.bf16 %v7578_v38, %v7575_v53  ;;  %v7555_v54 = vld [vmem:[%s14685_s10 + $0x28] sm:$0xff]  ;;  %v7609_v53 = vld [vmem:[%s14685_s10 + $0x1d8] sm:$0xff]  ;;  %v7604_v38 = vld [vmem:[%s14685_s10 + $0x1b0] sm:$0xff] }
 0x4a2   :  { %9511 = vmatpush1.bf16.msra.mxu0 %v9510_v26  ;;  %v7581_v26 = vld [vmem:[%s14685_s10 + $0xf8] sm:$0xff]  ;;  %v9744_v48 = vpack.c.bf16 %v7609_v53, %v7606_v33  ;;  %v7576_v53 = vld [vmem:[%s14685_s10 + $0xd0] sm:$0xff] }
 0x4a3   :  { %9671 = vmatpush1.bf16.msra.mxu1 %v9670_v12  ;;  %9513 = vmatprep.subr.bf16.mxu0 %v9512_v28  ;;  %v7584_v12 = vld [vmem:[%s14685_s10 + $0x110] sm:$0xff] }
 0x4a4   :  { %9673 = vmatprep.subr.bf16.mxu1 %v9672_v50  ;;  %v9696_v28 = vpack.c.bf16 %v7584_v12, %v7581_v26  ;;  %v7587_v50 = vld [vmem:[%s14685_s10 + $0x128] sm:$0xff]  ;;  %v7561_v26 = vld [vmem:[%s14685_s10 + $0x58] sm:$0xff] }
 0x4a5   :  { %v9700_v40 = vpack.c.bf16 %v7590_v5, %v7587_v50  ;;  %v7615_v50 = vld [vmem:[%s14685_s10 + $0x208] sm:$0xff]  ;;  %v7610_v5 = vld [vmem:[%s14685_s10 + $0x1e0] sm:$0xff] }
 0x4a6   :  { %9515 = vmatpush1.bf16.msra.mxu0 %v9514_v4  ;;  %v7589_v4 = vld [vmem:[%s14685_s10 + $0x138] sm:$0xff] }
 0x4a7   :  { %9675 = vmatpush1.bf16.msra.mxu1 %v9674_v2  ;;  %9677 = vmatprep.subr.bf16.mxu0 %v9676_v18  ;;  %v9702_v2 = vpack.c.bf16 %v7589_v4, %v7586_v27  ;;  %v7593_v18 = vld [vmem:[%s14685_s10 + $0x158] sm:$0xff]  ;;  %v9748_v27 = vpack.c.bf16 %v7615_v50, %v7612_v30  ;;  %v7631_v30 = vld [vmem:[%s14685_s10 + $0x288] sm:$0xff]  ;;  %v7582_v50 = vld [vmem:[%s14685_s10 + $0x100] sm:$0xff] }
 0x4a8   :  { %v9704_v51 = vpack.c.bf16 %v7596_v11, %v7593_v18  ;;  %9741 = vmatprep.subr.bf16.mxu1 %v9740_v43  ;;  %v7567_v18 = vld [vmem:[%s14685_s10 + $0x88] sm:$0xff]  ;;  %v7617_v11 = vld [vmem:[%s14685_s10 + $0x218] sm:$0xff] }
 0x4a9   :  { %7071 = vmatmul.mubr.f32.vlgmr.msra.gmra.mrb[132].mxu0 %v12978_v42  ;;  %v7623_v43 = vld [vmem:[%s14685_s10 + $0x248] sm:$0xff] }
 0x4aa   :  { %7338 = vmatmul.mubr.f32.vlgmr.msra.gmra.mrb[108].mxu1 %v12978_v42  ;;  %7076 = vmatprep.mubr.f32.mxu0 %v10183_v3 }
 0x4ab   :  { %7343 = vmatprep.mubr.f32.mxu1 %v10183_v3  ;;  %9679 = vmatpush1.bf16.msra.mxu0 %v9678_v13  ;;  %v9706_v13 = vpack.c.bf16 %v7595_v23, %v7592_v61  ;;  %v7620_v61 = vld [vmem:[%s14685_s10 + $0x230] sm:$0xff]  ;;  %v7618_v23 = vld [vmem:[%s14685_s10 + $0x220] sm:$0xff] }
 0x4ac   :  { %9681 = vmatprep.subr.bf16.mxu0 %v9680_v55  ;;  %v7599_v55 = vld [vmem:[%s14685_s10 + $0x188] sm:$0xff] }
 0x4ad   :  { %7077 = vmatmul.mubr.f32.gmra.mrb[134].mxu0 %v13008_v1 }
 0x4ae   :  { %7344 = vmatmul.mubr.f32.gmra.mrb[110].mxu1 %v13008_v1  ;;  %7082 = vmatprep.mubr.f32.mxu0 %v10183_v3 }
 0x4af   :  { %7349 = vmatprep.mubr.f32.mxu1 %v10183_v3  ;;  %9683 = vmatpush1.bf16.msra.mxu0 %v9682_v57  ;;  %v9708_v57 = vpack.c.bf16 %v7602_v52, %v7599_v55  ;;  %v9720_v55 = vpack.c.bf16 %v7620_v61, %v7617_v11  ;;  %v7634_v61 = vld [vmem:[%s14685_s10 + $0x2a0] sm:$0xff] }
 0x4b0   :  { %9685 = vmatprep.subr.bf16.mxu0 %v9684_v39  ;;  %v7601_v39 = vld [vmem:[%s14685_s10 + $0x198] sm:$0xff] }
 0x4b1   :  { %7083 = vmatmul.mubr.f32.gmra.mrb[136].mxu0 %v13039_v19  ;;  %v9710_v14 = vpack.c.bf16 %v7601_v39, %v7598_v24  ;;  %v7573_v39 = vld [vmem:[%s14685_s10 + $0xb8] sm:$0xff] }
 0x4b2   :  { %7350 = vmatmul.mubr.f32.gmra.mrb[112].mxu1 %v13039_v19  ;;  %7088 = vmatprep.mubr.f32.mxu0 %v10183_v3 }
 0x4b3   :  { %7355 = vmatprep.mubr.f32.mxu1 %v10183_v3  ;;  %9687 = vmatpush1.bf16.msra.mxu0 %v9686_v63  ;;  %v7552_v63 = vld [vmem:[%s14685_s10 + $0x10] sm:$0xff] }
 0x4b4   :  { %9689 = vmatprep.subr.bf16.mxu0 %v9688_v7  ;;  %v9742_v31 = vpack.c.bf16 %v7555_v54, %v7552_v63  ;;  %v7605_v7 = vld [vmem:[%s14685_s10 + $0x1b8] sm:$0xff]  ;;  %v9754_v63 = vpack.c.bf16 %v7573_v39, %v7570_v8  ;;  %v7642_v8 = vld [vmem:[%s14685_s10 + $0x2e0] sm:$0xff] }
 0x4b5   :  { %7089 = vmatmul.mubr.f32.gmra.mrb[138].mxu0 %v13070_v49 }
 0x4b6   :  { %7356 = vmatmul.mubr.f32.gmra.mrb[114].mxu1 %v13070_v49 }
 0x4b7   :  { %9691 = vmatpush1.bf16.msra.mxu0 %v9690_v9  ;;  %9743 = vmatpush3.bf16.msra.mxu1 %v9742_v31  ;;  %v9712_v9 = vpack.c.bf16 %v7608_v46, %v7605_v7  ;;  %v7624_v31 = vld [vmem:[%s14685_s10 + $0x250] sm:$0xff]  ;;  %v7627_v7 = vld [vmem:[%s14685_s10 + $0x268] sm:$0xff]  ;;  %v7622_v46 = vld [vmem:[%s14685_s10 + $0x240] sm:$0xff] }
 0x4b8   :  { %9693 = vmatprep.subr.bf16.mxu0 %v9692_v35  ;;  %v7607_v35 = vld [vmem:[%s14685_s10 + $0x1c8] sm:$0xff]  ;;  %9745 = vmatprep.subr.bf16.mxu1 %v9744_v48  ;;  %v9756_v33 = vpack.c.bf16 %v7627_v7, %v7624_v31  ;;  %v7629_v48 = vld [vmem:[%s14685_s10 + $0x278] sm:$0xff]  ;;  %v7594_v7 = vld [vmem:[%s14685_s10 + $0x160] sm:$0xff] }
 0x4b9   :  { %v9714_v60 = vpack.c.bf16 %v7607_v35, %v7604_v38  ;;  %v7579_v38 = vld [vmem:[%s14685_s10 + $0xe8] sm:$0xff] }
 0x4bb   :  { %9695 = vmatpush1.bf16.msra.mxu0 %v9694_v32  ;;  %v7558_v32 = vld [vmem:[%s14685_s10 + $0x40] sm:$0xff] }
 0x4bc   :  { %9697 = vmatprep.subr.bf16.mxu0 %v9696_v28  ;;  %v9746_v12 = vpack.c.bf16 %v7561_v26, %v7558_v32  ;;  %v7611_v28 = vld [vmem:[%s14685_s10 + $0x1e8] sm:$0xff]  ;;  %v7630_v32 = vld [vmem:[%s14685_s10 + $0x280] sm:$0xff]  ;;  %v9758_v26 = vpack.c.bf16 %v7579_v38, %v7576_v53 }
 0x4bd   :  { %v7788_v53 = vld [vmem:[%s14686_s11 + $0x8] sm:$0xff]  ;;  %v7791_v38 = vld [vmem:[%s14686_s11 + $0x20] sm:$0xff] }
 0x4be   :  { %9747 = vmatpush3.bf16.msra.mxu1 %v9746_v12 }
 0x4bf   :  { %9699 = vmatpush1.bf16.msra.mxu0 %v9698_v6  ;;  %v9716_v6 = vpack.c.bf16 %v7614_v59, %v7611_v28  ;;  %9749 = vmatprep.subr.bf16.mxu1 %v9748_v27  ;;  %v7633_v28 = vld [vmem:[%s14685_s10 + $0x298] sm:$0xff]  ;;  %v7628_v59 = vld [vmem:[%s14685_s10 + $0x270] sm:$0xff]  ;;  %v7638_v27 = vld [vmem:[%s14685_s10 + $0x2c0] sm:$0xff] }
 0x4c0   :  { %9701 = vmatprep.subr.bf16.mxu0 %v9700_v40  ;;  %v7613_v40 = vld [vmem:[%s14685_s10 + $0x1f8] sm:$0xff] }
 0x4c1   :  { %v9718_v4 = vpack.c.bf16 %v7613_v40, %v7610_v5  ;;  %v7585_v5 = vld [vmem:[%s14685_s10 + $0x118] sm:$0xff]  ;;  %v7635_v40 = vld [vmem:[%s14685_s10 + $0x2a8] sm:$0xff] }
 0x4c2   :  { %v9762_v11 = vpack.c.bf16 %v7585_v5, %v7582_v50 }
 0x4c3   :  { %9703 = vmatpush1.bf16.msra.mxu0 %v9702_v2  ;;  %v7564_v2 = vld [vmem:[%s14685_s10 + $0x70] sm:$0xff] }
 0x4c4   :  { %9705 = vmatprep.subr.bf16.mxu0 %v9704_v51  ;;  %v9750_v51 = vpack.c.bf16 %v7567_v18, %v7564_v2  ;;  %v7639_v2 = vld [vmem:[%s14685_s10 + $0x2c8] sm:$0xff]  ;;  %v9730_v18 = vpack.c.bf16 %v7631_v30, %v7628_v59 }
 0x4c6   :  { %9751 = vmatpush3.bf16.msra.mxu1 %v9750_v51  ;;  %v9732_v51 = vpack.c.bf16 %v7638_v27, %v7635_v40 }
 0x4c7   :  { %9707 = vmatpush1.bf16.msra.mxu0 %v9706_v13  ;;  %v7621_v13 = vld [vmem:[%s14685_s10 + $0x238] sm:$0xff] }
 0x4c8   :  { %9709 = vmatprep.subr.bf16.mxu0 %v9708_v57  ;;  %v9752_v52 = vpack.c.bf16 %v7621_v13, %v7618_v23  ;;  %v7619_v57 = vld [vmem:[%s14685_s10 + $0x228] sm:$0xff]  ;;  %v7637_v23 = vld [vmem:[%s14685_s10 + $0x2b8] sm:$0xff]  ;;  %v7588_v13 = vld [vmem:[%s14685_s10 + $0x130] sm:$0xff] }
 0x4c9   :  { %v9722_v24 = vpack.c.bf16 %v7619_v57, %v7616_v22  ;;  %v7641_v22 = vld [vmem:[%s14685_s10 + $0x2d8] sm:$0xff]  ;;  %v7644_v57 = vld [vmem:[%s14685_s10 + $0x2f0] sm:$0xff]  ;;  %v9734_v39 = vpack.c.bf16 %v7637_v23, %v7634_v61 }
 0x4ca   :  { %9753 = vmatprep.subr.bf16.mxu1 %v9752_v52  ;;  %v7591_v52 = vld [vmem:[%s14685_s10 + $0x148] sm:$0xff] }
 0x4cb   :  { %9711 = vmatpush1.bf16.msra.mxu0 %v9710_v14  ;;  %v7626_v14 = vld [vmem:[%s14685_s10 + $0x260] sm:$0xff]  ;;  %9755 = vmatpush3.bf16.msra.mxu1 %v9754_v63  ;;  %v7640_v63 = vld [vmem:[%s14685_s10 + $0x2d0] sm:$0xff] }
 0x4cc   :  { %9713 = vmatprep.subr.bf16.mxu0 %v9712_v9  ;;  %v9724_v54 = vpack.c.bf16 %v7626_v14, %v7623_v43  ;;  %v7625_v9 = vld [vmem:[%s14685_s10 + $0x258] sm:$0xff]  ;;  %9757 = vmatprep.subr.bf16.mxu1 %v9756_v33  ;;  %v9766_v43 = vpack.c.bf16 %v7591_v52, %v7588_v13  ;;  %v9736_v14 = vpack.c.bf16 %v7644_v57, %v7641_v22 }
 0x4cd   :  { %v9726_v35 = vpack.c.bf16 %v7625_v9, %v7622_v46  ;;  %v7597_v46 = vld [vmem:[%s14685_s10 + $0x178] sm:$0xff] }
 0x4ce   :  { %v9770_v9 = vpack.c.bf16 %v7597_v46, %v7594_v7 }
 0x4cf   :  { %9715 = vmatpush1.bf16.msra.mxu0 %v9714_v60  ;;  %v7632_v60 = vld [vmem:[%s14685_s10 + $0x290] sm:$0xff]  ;;  %9759 = vmatpush3.bf16.msra.mxu1 %v9758_v26 }
 0x4d0   :  { %9717 = vmatprep.subr.bf16.mxu0 %v9716_v6  ;;  %v9728_v12 = vpack.c.bf16 %v7632_v60, %v7629_v48  ;;  %v9760_v6 = vpack.c.bf16 %v7633_v28, %v7630_v32  ;;  %v9772_v48 = vpack.c.bf16 %v7791_v38, %v7788_v53  ;;  %v7840_v60 = vld [vmem:[%s14686_s11 + $0x1a8] sm:$0xff] }
 0x4d2   :  { %9761 = vmatprep.subr.bf16.mxu1 %v9760_v6 }
 0x4d3   :  { %9719 = vmatpush1.bf16.msra.mxu0 %v9718_v4  ;;  %v7636_v4 = vld [vmem:[%s14685_s10 + $0x2b0] sm:$0xff]  ;;  %9763 = vmatpush3.bf16.msra.mxu1 %v9762_v11 }
 0x4d4   :  { %9721 = vmatprep.subr.bf16.mxu0 %v9720_v55  ;;  %v9764_v55 = vpack.c.bf16 %v7639_v2, %v7636_v4 }
 0x4d6   :  { %9765 = vmatprep.subr.bf16.mxu1 %v9764_v55 }
 0x4d7   :  { %9723 = vmatpush1.bf16.msra.mxu0 %v9722_v24  ;;  %v7645_v24 = vld [vmem:[%s14685_s10 + $0x2f8] sm:$0xff]  ;;  %9767 = vmatpush3.bf16.msra.mxu1 %v9766_v43 }
 0x4d8   :  { %9725 = vmatprep.subr.bf16.mxu0 %v9724_v54  ;;  %v7643_v54 = vld [vmem:[%s14685_s10 + $0x2e8] sm:$0xff]  ;;  %v9768_v31 = vpack.c.bf16 %v7645_v24, %v7642_v8 }
 0x4d9   :  { %v9738_v33 = vpack.c.bf16 %v7643_v54, %v7640_v63 }
 0x4da   :  { %v13993_v42 = vpop.f32.mrb[124].mxu0  ;;  %9769 = vmatprep.subr.bf16.mxu1 %v9768_v31 }
 0x4db   :  { %v13995_v21 = vpop.f32.mrb[100].mxu1  ;;  %v13997_v1 = vpop.f32.mrb[125].mxu0  ;;  %9727 = vmatpush1.bf16.msra.mxu0 %v9726_v35  ;;  %v7837_v35 = vld [vmem:[%s14686_s11 + $0x190] sm:$0xff]  ;;  %9771 = vmatpush3.bf16.msra.mxu1 %v9770_v9  ;;  %v7362_v26 = vmul.f32 %v13993_v42, %v13993_v42 }
 0x4dc   :  { %v14001_v29 = vmul.f32 %v13995_v21, %v13993_v42  ;;  %v14003_v45 = vpop.f32.mrb[101].mxu1  ;;  %9729 = vmatprep.subr.bf16.mxu0 %v9728_v12  ;;  %v9836_v32 = vpack.c.bf16 %v7840_v60, %v7837_v35  ;;  %9773 = vmatprep.subr.bf16.mxu1 %v9772_v48  ;;  %v7363_v12 = vmul.f32 %v13997_v1, %v13997_v1 }
 0x4dd   :  { %v14007_v19 = vmul.f32 %v14003_v45, %v13997_v1 }
 0x4de   :  { %v14009_v3 = vpop.f32.mrb[126].mxu0 }
 0x4df   :  { %v14011_v25 = vpop.f32.mrb[102].mxu1  ;;  %v14013_v49 = vpop.f32.mrb[127].mxu0  ;;  %9731 = vmatpush1.bf16.msra.mxu0 %v9730_v18  ;;  %v7364_v59 = vmul.f32 %v14009_v3, %v14009_v3 }
 0x4e0   :  { %v14017_v17 = vmul.f32 %v14011_v25, %v14009_v3  ;;  %v14019_v41 = vpop.f32.mrb[103].mxu1  ;;  %9733 = vmatprep.subr.bf16.mxu0 %v9732_v51  ;;  %v7365_v30 = vmul.f32 %v14013_v49, %v14013_v49 }
 0x4e1   :  { %v14023_v44 = vmul.f32 %v14019_v41, %v14013_v49 }
 0x4e2   :  { %v14025_v37 = vpop.f32.mrb[128].mxu0 }
 0x4e3   :  { %v14027_v58 = vpop.f32.mrb[104].mxu1  ;;  %v14029_v56 = vpop.f32.mrb[129].mxu0  ;;  %9735 = vmatpush1.bf16.msra.mxu0 %v9734_v39  ;;  %v7366_v51 = vmul.f32 %v14025_v37, %v14025_v37 }
 0x4e4   :  { %v14033_v10 = vmul.f32 %v14027_v58, %v14025_v37  ;;  %v14035_v20 = vpop.f32.mrb[105].mxu1  ;;  %9737 = vmatprep.subr.bf16.mxu0 %v9736_v14  ;;  %v7367_v55 = vmul.f32 %v14029_v56, %v14029_v56 }
 0x4e5   :  { %v14039_v47 = vmul.f32 %v14035_v20, %v14029_v56 }
 0x4e6   :  { %v14041_v34 = vpop.f32.mrb[130].mxu0 }
 0x4e7   :  { %v14043_v62 = vpop.f32.mrb[106].mxu1  ;;  %v14045_v15 = vpop.f32.mrb[131].mxu0  ;;  %9739 = vmatpush1.bf16.msra.mxu0 %v9738_v33 }
 0x4e8   :  { %v14049_v0 = vmul.f32 %v14043_v62, %v14041_v34  ;;  %v14051_v16 = vpop.f32.mrb[107].mxu1  ;;  %9837 = vmatprep.subr.bf16.mxu0 %v9836_v32  ;;  %v7369_v33 = vmul.f32 %v14045_v15, %v14045_v15 }
 0x4e9   :  { %v14055_v36 = vmul.f32 %v14051_v16, %v14045_v15 }
 0x57c   :  { %v7072_v28 = vpop.f32.mrb[132].mxu0 }
 0x57d   :  { %v7370_v6 = vmul.f32 %v7072_v28, %v7072_v28  ;;  %v7454_v50 = vmul.f32 %v7072_v28, %v13995_v21  ;;  %v7339_v5 = vpop.f32.mrb[108].mxu1  ;;  %v7074_v40 = vpop.f32.mrb[133].mxu0 }
 0x57e   :  { %v7412_v27 = vmul.f32 %v7339_v5, %v7072_v28  ;;  %v7446_v4 = vmul.f32 %v7339_v5, %v13993_v42  ;;  %v7371_v2 = vmul.f32 %v7074_v40, %v7074_v40  ;;  %v7455_v18 = vmul.f32 %v7074_v40, %v14003_v45  ;;  %v7341_v11 = vpop.f32.mrb[109].mxu1 }
 0x57f   :  { %v7378_v61 = vadd.f32 %v7370_v6, %v7362_v26  ;;  %v7413_v23 = vmul.f32 %v7341_v11, %v7074_v40  ;;  %v7447_v13 = vmul.f32 %v7341_v11, %v13997_v1 }
 0x580   :  { %v7420_v21 = vadd.f32 %v7412_v27, %v14001_v29  ;;  %v7462_v52 = vsub.f32 %v7446_v4, %v7454_v50  ;;  %v7379_v22 = vadd.f32 %v7371_v2, %v7363_v12  ;;  %v7078_v57 = vpop.f32.mrb[134].mxu0  ;;  %v7368_v29 = vmul.f32 %v14041_v34, %v14041_v34 }
 0x581   :  { %v7421_v42 = vadd.f32 %v7413_v23, %v14007_v19  ;;  %v7463_v8 = vsub.f32 %v7447_v13, %v7455_v18  ;;  %v7372_v45 = vmul.f32 %v7078_v57, %v7078_v57  ;;  %v7456_v24 = vmul.f32 %v7078_v57, %v14011_v25  ;;  %v7345_v39 = vpop.f32.mrb[110].mxu1  ;;  %v7080_v43 = vpop.f32.mrb[135].mxu0 }
 0x582   :  { %v7414_v14 = vmul.f32 %v7345_v39, %v7078_v57  ;;  %v7448_v63 = vmul.f32 %v7345_v39, %v14009_v3  ;;  %v7373_v1 = vmul.f32 %v7080_v43, %v7080_v43  ;;  %v7457_v54 = vmul.f32 %v7080_v43, %v14019_v41  ;;  %v7347_v31 = vpop.f32.mrb[111].mxu1 }
 0x583   :  { %v7380_v7 = vadd.f32 %v7372_v45, %v7364_v59  ;;  %v7415_v46 = vmul.f32 %v7347_v31, %v7080_v43  ;;  %v7449_v19 = vmul.f32 %v7347_v31, %v14013_v49 }
 0x584   :  { %v7422_v25 = vadd.f32 %v7414_v14, %v14017_v17  ;;  %v7464_v9 = vsub.f32 %v7448_v63, %v7456_v24  ;;  %v7381_v53 = vadd.f32 %v7373_v1, %v7365_v30  ;;  %v7084_v38 = vpop.f32.mrb[136].mxu0 }
 0x585   :  { %v7386_v3 = vadd.f32 %v7380_v7, %v7378_v61  ;;  %v7423_v35 = vadd.f32 %v7415_v46, %v14023_v44  ;;  %v7465_v41 = vsub.f32 %v7449_v19, %v7457_v54  ;;  %v7374_v48 = vmul.f32 %v7084_v38, %v7084_v38  ;;  %v7351_v60 = vpop.f32.mrb[112].mxu1  ;;  %v7086_v32 = vpop.f32.mrb[137].mxu0 }
 0x586   :  { %v7428_v26 = vadd.f32 %v7422_v25, %v7420_v21  ;;  %v7470_v12 = vadd.f32 %v7464_v9, %v7462_v52  ;;  %v7395_v28 = vadd.f32 %v7381_v53, %v7379_v22  ;;  %v7458_v49 = vmul.f32 %v7084_v38, %v14027_v58  ;;  %v7353_v59 = vpop.f32.mrb[113].mxu1 }
 0x587   :  { %v7437_v6 = vadd.f32 %v7423_v35, %v7421_v42  ;;  %v7479_v50 = vadd.f32 %v7465_v41, %v7463_v8  ;;  %v7382_v5 = vadd.f32 %v7374_v48, %v7366_v51  ;;  %v7416_v17 = vmul.f32 %v7351_v60, %v7084_v38 }
 0x588   :  { %v7450_v30 = vmul.f32 %v7351_v60, %v14025_v37  ;;  %v7375_v40 = vmul.f32 %v7086_v32, %v7086_v32  ;;  %v7459_v27 = vmul.f32 %v7086_v32, %v14035_v20  ;;  %v7417_v44 = vmul.f32 %v7353_v59, %v7086_v32  ;;  %v7090_v4 = vpop.f32.mrb[138].mxu0 }
 0x589   :  { %v7387_v2 = vadd.f32 %v7386_v3, %v7382_v5  ;;  %v7424_v18 = vadd.f32 %v7416_v17, %v14033_v10  ;;  %v7451_v11 = vmul.f32 %v7353_v59, %v14029_v56  ;;  %v7376_v61 = vmul.f32 %v7090_v4, %v7090_v4  ;;  %v7357_v23 = vpop.f32.mrb[114].mxu1  ;;  %v7092_v58 = vpop.f32.mrb[139].mxu0 }
 0x58a   :  { %v7466_v13 = vsub.f32 %v7450_v30, %v7458_v49  ;;  %v7383_v21 = vadd.f32 %v7375_v40, %v7367_v55  ;;  %v7425_v51 = vadd.f32 %v7417_v44, %v14039_v47  ;;  %v7460_v52 = vmul.f32 %v7090_v4, %v14043_v62  ;;  %v7359_v37 = vpop.f32.mrb[115].mxu1 }
 0x58b   :  { %v7429_v22 = vadd.f32 %v7428_v26, %v7424_v18  ;;  %v7467_v57 = vsub.f32 %v7451_v11, %v7459_v27  ;;  %v7384_v20 = vadd.f32 %v7376_v61, %v7368_v29  ;;  %v7418_v42 = vmul.f32 %v7357_v23, %v7090_v4 }
 0x58c   :  { %v7471_v8 = vadd.f32 %v7470_v12, %v7466_v13  ;;  %v7396_v45 = vadd.f32 %v7395_v28, %v7383_v21  ;;  %v7438_v24 = vadd.f32 %v7437_v6, %v7425_v51  ;;  %v7452_v10 = vmul.f32 %v7357_v23, %v14041_v34 }
 0x58d   :  { %v7480_v56 = vadd.f32 %v7479_v50, %v7467_v57  ;;  %v7388_v39 = vadd.f32 %v7387_v2, %v7384_v20  ;;  %v7426_v43 = vadd.f32 %v7418_v42, %v14049_v0  ;;  %v7377_v14 = vmul.f32 %v7092_v58, %v7092_v58 }
 0x58e   :  { %v7468_v55 = vsub.f32 %v7452_v10, %v7460_v52  ;;  %v7461_v47 = vmul.f32 %v7092_v58, %v14051_v16  ;;  %v7419_v63 = vmul.f32 %v7359_v37, %v7092_v58  ;;  %v7453_v62 = vmul.f32 %v7359_v37, %v14045_v15  ;;  %v7494_v37 = vld [vmem:[%s14687_s8] sm:$0x3] }
 0x58f   :  { %v7389_v1 = vrot.slane %v7388_v39, 4  ;;  %v7430_v54 = vadd.f32 %v7429_v22, %v7426_v43  ;;  %v7385_v31 = vadd.f32 %v7377_v14, %v7369_v33  ;;  %v10185_v49 = vmov 1966171168  }
 0x590   :  { %v7472_v29 = vadd.f32 %v7471_v8, %v7468_v55  ;;  %v7427_v7 = vadd.f32 %v7419_v63, %v14055_v36  ;;  %v7469_v46 = vsub.f32 %v7453_v62, %v7461_v47  ;;  %v7499_v59 = vunpack.c.l.s4 %v10185_v49  ;;  %v7795_v49 = vld [vmem:[%s14686_s11 + $0x40] sm:$0xff] }
 0x591   :  { %v7390_v19 = vadd.f32 %v7389_v1, %v7388_v39  ;;  %v7397_v34 = vadd.f32 %v7396_v45, %v7385_v31  ;;  %v7431_v33 = vrot.slane %v7430_v54, 4  ;;  %v7501_v6 = vlaneseq  ;;  %v7514_v45 = vld [vmem:[%s14688_s9] sm:$0x3] }
 0x592   :  { %v7439_v25 = vadd.f32 %v7438_v24, %v7427_v7  ;;  %v7481_v9 = vadd.f32 %v7480_v56, %v7469_v46  ;;  %v7473_v26 = vrot.slane %v7472_v29, 4  ;;  %v7500_v40 = vunpack.c.0.s8 %v7499_v59  ;;  %v7790_v7 = vld [vmem:[%s14686_s11 + $0x18] sm:$0xff]  ;;  %v7789_v46 = vld [vmem:[%s14686_s11 + $0x10] sm:$0xff] }
 0x593   :  { %v7391_v53 = vrot.slane %v7390_v19, 2  ;;  %v7398_v0 = vrot.slane %v7397_v34, 4  ;;  %v7432_v50 = vadd.f32 %v7431_v33, %v7430_v54  ;;  %v7502_v27 = vshrl.u32 %v7501_v6, 7  ;;  %v7798_v59 = vld [vmem:[%s14686_s11 + $0x58] sm:$0xff] }
 0x594   :  { %v7440_v12 = vrot.slane %v7439_v25, 4  ;;  %v7482_v28 = vrot.slane %v7481_v9, 4  ;;  %v7474_v5 = vadd.f32 %v7473_v26, %v7472_v29  ;;  %v7787_v29 = vld [vmem:[%s14686_s11] sm:$0xff]  ;;  %vm8056_vm5 = vcmp.lt.s32.totalorder %v7501_v6, 288 }
 0x595   :  { %v7392_v38 = vadd.f32 %v7391_v53, %v7390_v19  ;;  %v7399_v3 = vadd.f32 %v7398_v0, %v7397_v34  ;;  %v7433_v44 = vrot.slane %v7432_v50, 2  ;;  %v14380_v61 = vsub.s32 %v7500_v40, %v7502_v27  ;;  %v7792_v19 = vld [vmem:[%s14686_s11 + $0x28] sm:$0xff]  ;;  %v7794_v0 = vld [vmem:[%s14686_s11 + $0x38] sm:$0xff]  ;;  %v7803_v40 = vld [vmem:[%s14686_s11 + $0x80] sm:$0xff] }
 0x596   :  { %v7441_v17 = vadd.f32 %v7440_v12, %v7439_v25  ;;  %v7483_v30 = vadd.f32 %v7482_v28, %v7481_v9  ;;  %v7475_v4 = vrot.slane %v7474_v5, 2  ;;  %v7519_v10 = vsub.s32 0, %v7502_v27  ;;  %v7796_v12 = vld [vmem:[%s14686_s11 + $0x48] sm:$0xff] }
 0x597   :  { %v7393_v35 = vrot.slane %v7392_v38, 1  ;;  %v7400_v16 = vrot.slane %v7399_v3, 2  ;;  %v7434_v58 = vadd.f32 %v7433_v44, %v7432_v50  ;;  %v7523_v56 = vsub.s32 1, %v7502_v27  ;;  %v7800_v50 = vld [vmem:[%s14686_s11 + $0x68] sm:$0xff]  ;;  %v7849_v27 = vld [vmem:[%s14686_s11 + $0x1f0] sm:$0xff] }
 0x598   :  { %v7442_v2 = vrot.slane %v7441_v17, 2  ;;  %v7484_v18 = vrot.slane %v7483_v30, 2  ;;  %v7476_v13 = vadd.f32 %v7475_v4, %v7474_v5  ;;  %v9774_v33 = vpack.c.bf16 %v7790_v7, %v7787_v29  ;;  %v7852_v44 = vld [vmem:[%s14686_s11 + $0x208] sm:$0xff]  ;;  %v7813_v29 = vld [vmem:[%s14686_s11 + $0xd0] sm:$0xff] }
 0x599   :  { %v7394_v41 = vadd.f32 %v7393_v35, %v7392_v38  ;;  %v7401_v48 = vadd.f32 %v7400_v16, %v7399_v3  ;;  %v7435_v57 = vrot.slane %v7434_v58, 1  ;;  %v7797_v35 = vld [vmem:[%s14686_s11 + $0x50] sm:$0xff]  ;;  %v7843_v16 = vld [vmem:[%s14686_s11 + $0x1c0] sm:$0xff]  ;;  %v9838_v26 = vpack.c.bf16 %v7792_v19, %v7789_v46  ;;  %v7816_v7 = vld [vmem:[%s14686_s11 + $0xe8] sm:$0xff] }
 0x59a   :  { %v7443_v21 = vadd.f32 %v7442_v2, %v7441_v17  ;;  %v7485_v51 = vadd.f32 %v7484_v18, %v7483_v30  ;;  %v7477_v20 = vrot.slane %v7476_v13, 1  ;;  %v9776_v17 = vpack.c.bf16 %v7797_v35, %v7794_v0  ;;  %v7799_v18 = vld [vmem:[%s14686_s11 + $0x60] sm:$0xff]  ;;  %v7818_v46 = vld [vmem:[%s14686_s11 + $0xf8] sm:$0xff]  ;;  %v7821_v19 = vld [vmem:[%s14686_s11 + $0x110] sm:$0xff] }
 0x59b   :  { %v7488_v15 = vadd.f32 0.0001, %v7394_v41  ;;  %v7402_v60 = vrot.slane %v7401_v48, 1  ;;  %v7436_v14 = vadd.f32 %v7435_v57, %v7434_v58  ;;  %v7846_v41 = vld [vmem:[%s14686_s11 + $0x1d8] sm:$0xff]  ;;  %v9842_v2 = vpack.c.bf16 %v7798_v59, %v7795_v49  ;;  %v7817_v0 = vld [vmem:[%s14686_s11 + $0xf0] sm:$0xff] }
 0x59c   :  { %v7444_v42 = vrot.slane %v7443_v21, 1  ;;  %v7486_v8 = vrot.slane %v7485_v51, 1  ;;  %v7478_v55 = vadd.f32 %v7477_v20, %v7476_v13  ;;  %v9840_v30 = vpack.c.bf16 %v7846_v41, %v7843_v16  ;;  %v7801_v13 = vld [vmem:[%s14686_s11 + $0x70] sm:$0xff]  ;;  %v7819_v16 = vld [vmem:[%s14686_s11 + $0x100] sm:$0xff]  ;;  %v7822_v41 = vld [vmem:[%s14686_s11 + $0x118] sm:$0xff] }
 0x59d   :  { %v7403_v32 = vadd.f32 %v7402_v60, %v7401_v48  ;;  %10178 = vrcp.f32 %v7488_v15  ;;  %v9844_v58 = vpack.c.bf16 %v7852_v44, %v7849_v27  ;;  %v7825_v59 = vld [vmem:[%s14686_s11 + $0x130] sm:$0xff]  ;;  %v7882_v27 = vld [vmem:[%s14686_s11 + $0x2f8] sm:$0xff] }
 0x59e   :  { %v7445_v47 = vadd.f32 %v7444_v42, %v7443_v21  ;;  %v7487_v63 = vadd.f32 %v7486_v8, %v7485_v51  ;;  %v7804_v21 = vld [vmem:[%s14686_s11 + $0x88] sm:$0xff]  ;;  %v7806_v51 = vld [vmem:[%s14686_s11 + $0x98] sm:$0xff]  ;;  %v7805_v42 = vld [vmem:[%s14686_s11 + $0x90] sm:$0xff] }
 0x59f   :  { %v7489_v36 = vadd.f32 0.0001, %v7403_v32  ;;  %v9846_v20 = vpack.c.bf16 %v7804_v21, %v7801_v13  ;;  %v7808_v8 = vld [vmem:[%s14686_s11 + $0xa8] sm:$0xff]  ;;  %v7834_v13 = vld [vmem:[%s14686_s11 + $0x178] sm:$0xff] }
 0x5a0   :  { %v7836_v21 = vld [vmem:[%s14686_s11 + $0x188] sm:$0xff] }
 0x5a1   :  { %10180 = vrcp.f32 %v7489_v36  ;;  %v7793_v36 = vld [vmem:[%s14686_s11 + $0x30] sm:$0xff] }
 0x5a2   :  { %v9778_v4 = vpack.c.bf16 %v7796_v12, %v7793_v36  ;;  %v7823_v36 = vld [vmem:[%s14686_s11 + $0x120] sm:$0xff]  ;;  %v7826_v12 = vld [vmem:[%s14686_s11 + $0x138] sm:$0xff] }
 0x5a3   :  { %v9798_v44 = vpack.c.bf16 %v7826_v12, %v7823_v36  ;;  %v7878_v36 = vld [vmem:[%s14686_s11 + $0x2d8] sm:$0xff]  ;;  %v7881_v12 = vld [vmem:[%s14686_s11 + $0x2f0] sm:$0xff] }
 0x5a7   :  { %v10179_v11 = vpop.eup %10178 }
 0x5ab   :  { %v10181_v23 = vpop.eup %10180 }
 0x5ac   :  { %v7497_v52 = vcombine.low %v10179_v11, %v10181_v23  ;;  %v7802_v11 = vld [vmem:[%s14686_s11 + $0x78] sm:$0xff]  ;;  %v9780_v23 = vpack.c.bf16 %v7803_v40, %v7800_v50  ;;  %v7828_v50 = vld [vmem:[%s14686_s11 + $0x148] sm:$0xff]  ;;  %v7879_v40 = vld [vmem:[%s14686_s11 + $0x2e0] sm:$0xff] }
 0x5ad   :  { %v9782_v57 = vpack.c.bf16 %v7802_v11, %v7799_v18  ;;  %v9864_v11 = vpack.c.bf16 %v7882_v27, %v7879_v40 }
 0x5ae   :  { %v7504_v22 = vrot.slane %v7497_v52, %v14380_v61  ;;  %v7809_v52 = vld [vmem:[%s14686_s11 + $0xb0] sm:$0xff] }
 0x5b0   :  { %v7511_v24 = vrot.slane %v7504_v22, %v14380_v61  ;;  %v7858_v22 = vld [vmem:[%s14686_s11 + $0x238] sm:$0xff] }
 0x5b2   :  { %v7513_v39 = vmul.f32 %v7511_v24, %v7494_v37  ;;  %v7515_v43 = vmul.f32 %v7514_v45, %v7511_v24  ;;  %v7855_v37 = vld [vmem:[%s14686_s11 + $0x220] sm:$0xff]  ;;  %v9784_v45 = vpack.c.bf16 %v7809_v52, %v7806_v51 }
 0x5b3   :  { %v9848_v24 = vpack.c.bf16 %v7858_v22, %v7855_v37  ;;  %v7839_v51 = vld [vmem:[%s14686_s11 + $0x1a0] sm:$0xff] }
 0x5b4   :  { %v7520_v62 = vrot.slane %v7513_v39, %v7519_v10  ;;  %v7524_v1 = vrot.slane %v7513_v39, %v7523_v56  ;;  %v7533_v54 = vrot.slane %v7515_v43, %v7519_v10  ;;  %v7537_v31 = vrot.slane %v7515_v43, %v7523_v56  ;;  %v7807_v10 = vld [vmem:[%s14686_s11 + $0xa0] sm:$0xff]  ;;  %v7810_v56 = vld [vmem:[%s14686_s11 + $0xb8] sm:$0xff]  ;;  %v7812_v39 = vld [vmem:[%s14686_s11 + $0xc8] sm:$0xff] }
 0x5b5   :  { %v7815_v43 = vld [vmem:[%s14686_s11 + $0xe0] sm:$0xff]  ;;  %v9804_v22 = vpack.c.bf16 %v7839_v51, %v7836_v21 }
 0x5b6   :  { %v7528_v34 = vmul.f32 %v7524_v1, %v7445_v47  ;;  %v7541_v25 = vmul.f32 %v7537_v31, %v7487_v63  ;;  %v7527_v9 = vmul.f32 %v7520_v62, %v7436_v14  ;;  %v7540_v53 = vmul.f32 %v7533_v54, %v7478_v55 }
 0x5b7   :  { %v7545_v38 = vmul.f32 %v7537_v31, %v7445_v47  ;;  %v7547_v3 = vmul.f32 %v7524_v1, %v7487_v63  ;;  %v7544_v48 = vmul.f32 %v7533_v54, %v7436_v14  ;;  %v7546_v15 = vmul.f32 %v7520_v62, %v7478_v55  ;;  %v7861_v14 = vld [vmem:[%s14686_s11 + $0x250] sm:$0xff]  ;;  %v7864_v55 = vld [vmem:[%s14686_s11 + $0x268] sm:$0xff]  ;;  %v7811_v62 = vld [vmem:[%s14686_s11 + $0xc0] sm:$0xff] }
 0x5b8   :  { %v7543_v60 = vsub.f32 %v7528_v34, %v7541_v25  ;;  %v7542_v32 = vsub.f32 %v7527_v9, %v7540_v53  ;;  %v9786_v47 = vpack.c.bf16 %v7808_v8, %v7805_v42  ;;  %v9850_v63 = vpack.c.bf16 %v7810_v56, %v7807_v10  ;;  %v7814_v1 = vld [vmem:[%s14686_s11 + $0xd8] sm:$0xff]  ;;  %v7867_v34 = vld [vmem:[%s14686_s11 + $0x280] sm:$0xff]  ;;  %v7845_v8 = vld [vmem:[%s14686_s11 + $0x1d0] sm:$0xff] }
 0x5b9   :  { %v7549_v28 = vadd.f32 %v7547_v3, %v7545_v38  ;;  %v14429_v5 = vadd.f32 %v7546_v15, %v7544_v48  ;;  %v9788_v54 = vpack.c.bf16 %v7815_v43, %v7812_v39  ;;  %v9852_v31 = vpack.c.bf16 %v7864_v55, %v7861_v14  ;;  %v7870_v25 = vld [vmem:[%s14686_s11 + $0x298] sm:$0xff]  ;;  %v7820_v38 = vld [vmem:[%s14686_s11 + $0x108] sm:$0xff]  ;;  %v7827_v15 = vld [vmem:[%s14686_s11 + $0x140] sm:$0xff] }
 0x5ba   :  { %7710 = vmatprep.mubr.f32.mxu0 %v7543_v60  ;;  %7781 = vmatprep.mubr.f32.mxu1 %v7543_v60  ;;  %v9790_v9 = vpack.c.bf16 %v7814_v1, %v7811_v62  ;;  %v9854_v53 = vpack.c.bf16 %v7816_v7, %v7813_v29  ;;  %v9792_v3 = vpack.c.bf16 %v7821_v19, %v7818_v46  ;;  %v7824_v48 = vld [vmem:[%s14686_s11 + $0x128] sm:$0xff]  ;;  %v7873_v60 = vld [vmem:[%s14686_s11 + $0x2b0] sm:$0xff]  ;;  %v7842_v42 = vld [vmem:[%s14686_s11 + $0x1b8] sm:$0xff] }
 0x5bb   :  { %7711 = vmatmul.mubr.f32.vlgmr.msra.gmra.mrb[140].mxu0 %v7542_v32  ;;  %7782 = vmatmul.mubr.f32.vlgmr.msra.gmra.mrb[116].mxu1 %v7542_v32  ;;  %v9856_v35 = vpack.c.bf16 %v7870_v25, %v7867_v34  ;;  %v7876_v32 = vld [vmem:[%s14686_s11 + $0x2c8] sm:$0xff]  ;;  %v7841_v10 = vld [vmem:[%s14686_s11 + $0x1b0] sm:$0xff]  ;;  %v7851_v43 = vld [vmem:[%s14686_s11 + $0x200] sm:$0xff] }
 0x5bc   :  { %9775 = vmatpush1.bf16.msra.mxu1 %v9774_v33  ;;  %9839 = vmatpush3.bf16.msra.mxu0 %v9838_v26  ;;  %v9794_v33 = vpack.c.bf16 %v7820_v38, %v7817_v0  ;;  %v9858_v26 = vpack.c.bf16 %v7822_v41, %v7819_v16  ;;  %v9860_v49 = vpack.c.bf16 %v7876_v32, %v7873_v60  ;;  %v7844_v56 = vld [vmem:[%s14686_s11 + $0x1c8] sm:$0xff]  ;;  %v7854_v62 = vld [vmem:[%s14686_s11 + $0x218] sm:$0xff]  ;;  %v7857_v1 = vld [vmem:[%s14686_s11 + $0x230] sm:$0xff] }
 0x5bd   :  { %7947 = vmatprep.mubr.f32.mxu1 %v7549_v28  ;;  %8018 = vmatprep.mubr.f32.mxu0 %v7549_v28  ;;  %v9796_v28 = vpack.c.bf16 %v7827_v15, %v7824_v48  ;;  %v7848_v39 = vld [vmem:[%s14686_s11 + $0x1e8] sm:$0xff]  ;;  %v9810_v14 = vpack.c.bf16 %v7844_v56, %v7841_v10  ;;  %v7853_v29 = vld [vmem:[%s14686_s11 + $0x210] sm:$0xff]  ;;  %v7863_v19 = vld [vmem:[%s14686_s11 + $0x260] sm:$0xff] }
 0x5be   :  { %9777 = vmatprep.subr.bf16.mxu1 %v9776_v17  ;;  %9841 = vmatprep.subr.bf16.mxu0 %v9840_v30  ;;  %v7830_v17 = vld [vmem:[%s14686_s11 + $0x158] sm:$0xff]  ;;  %v7833_v30 = vld [vmem:[%s14686_s11 + $0x170] sm:$0xff]  ;;  %v9812_v55 = vpack.c.bf16 %v7851_v43, %v7848_v39  ;;  %v7856_v7 = vld [vmem:[%s14686_s11 + $0x228] sm:$0xff] }
 0x5bf   :  { %v9800_v18 = vpack.c.bf16 %v7833_v30, %v7830_v17  ;;  %v7860_v46 = vld [vmem:[%s14686_s11 + $0x248] sm:$0xff]  ;;  %v9818_v34 = vpack.c.bf16 %v7856_v7, %v7853_v29  ;;  %v7866_v0 = vld [vmem:[%s14686_s11 + $0x278] sm:$0xff]  ;;  %v7869_v38 = vld [vmem:[%s14686_s11 + $0x290] sm:$0xff] }
 0x5c0   :  { %9779 = vmatpush1.bf16.msra.mxu1 %v9778_v4  ;;  %9843 = vmatpush3.bf16.msra.mxu0 %v9842_v2  ;;  %v9862_v4 = vpack.c.bf16 %v7828_v50, %v7825_v59  ;;  %v7829_v2 = vld [vmem:[%s14686_s11 + $0x150] sm:$0xff]  ;;  %v9820_v25 = vpack.c.bf16 %v7863_v19, %v7860_v46  ;;  %v7868_v41 = vld [vmem:[%s14686_s11 + $0x288] sm:$0xff]  ;;  %v7875_v15 = vld [vmem:[%s14686_s11 + $0x2c0] sm:$0xff] }
 0x5c1   :  { %9781 = vmatprep.subr.bf16.mxu1 %v9780_v23  ;;  %9845 = vmatprep.subr.bf16.mxu0 %v9844_v58  ;;  %v7832_v23 = vld [vmem:[%s14686_s11 + $0x168] sm:$0xff]  ;;  %v7831_v58 = vld [vmem:[%s14686_s11 + $0x160] sm:$0xff]  ;;  %v7865_v16 = vld [vmem:[%s14686_s11 + $0x270] sm:$0xff] }
 0x5c2   :  { %v9802_v52 = vpack.c.bf16 %v7832_v23, %v7829_v2  ;;  %v9866_v37 = vpack.c.bf16 %v7834_v13, %v7831_v58  ;;  %v7872_v48 = vld [vmem:[%s14686_s11 + $0x2a8] sm:$0xff]  ;;  %v9826_v60 = vpack.c.bf16 %v7868_v41, %v7865_v16  ;;  %v7877_v59 = vld [vmem:[%s14686_s11 + $0x2d0] sm:$0xff] }
 0x5c3   :  { %v9828_v32 = vpack.c.bf16 %v7875_v15, %v7872_v48  ;;  %v7880_v50 = vld [vmem:[%s14686_s11 + $0x2e8] sm:$0xff] }
 0x5c4   :  { %9783 = vmatpush1.bf16.msra.mxu1 %v9782_v57  ;;  %9847 = vmatpush3.bf16.msra.mxu0 %v9846_v20  ;;  %v7835_v57 = vld [vmem:[%s14686_s11 + $0x180] sm:$0xff]  ;;  %v7838_v20 = vld [vmem:[%s14686_s11 + $0x198] sm:$0xff]  ;;  %v9834_v17 = vpack.c.bf16 %v7880_v50, %v7877_v59 }
 0x5c5   :  { %9785 = vmatprep.subr.bf16.mxu1 %v9784_v45  ;;  %9849 = vmatprep.subr.bf16.mxu0 %v9848_v24  ;;  %v9806_v45 = vpack.c.bf16 %v7838_v20, %v7835_v57  ;;  %v9808_v24 = vpack.c.bf16 %v7845_v8, %v7842_v42 }
 0x5c8   :  { %9787 = vmatpush1.bf16.msra.mxu1 %v9786_v47  ;;  %9851 = vmatpush3.bf16.msra.mxu0 %v9850_v63  ;;  %v7847_v47 = vld [vmem:[%s14686_s11 + $0x1e0] sm:$0xff]  ;;  %v7850_v63 = vld [vmem:[%s14686_s11 + $0x1f8] sm:$0xff] }
 0x5c9   :  { %9789 = vmatprep.subr.bf16.mxu1 %v9788_v54  ;;  %9853 = vmatprep.subr.bf16.mxu0 %v9852_v31  ;;  %v9814_v54 = vpack.c.bf16 %v7850_v63, %v7847_v47  ;;  %v9816_v31 = vpack.c.bf16 %v7857_v1, %v7854_v62 }
 0x5cc   :  { %9791 = vmatpush1.bf16.msra.mxu1 %v9790_v9  ;;  %9855 = vmatpush3.bf16.msra.mxu0 %v9854_v53  ;;  %v7859_v9 = vld [vmem:[%s14686_s11 + $0x240] sm:$0xff]  ;;  %v7862_v53 = vld [vmem:[%s14686_s11 + $0x258] sm:$0xff] }
 0x5cd   :  { %9793 = vmatprep.subr.bf16.mxu1 %v9792_v3  ;;  %9857 = vmatprep.subr.bf16.mxu0 %v9856_v35  ;;  %v9822_v3 = vpack.c.bf16 %v7862_v53, %v7859_v9  ;;  %v9824_v35 = vpack.c.bf16 %v7869_v38, %v7866_v0 }
 0x5d0   :  { %9795 = vmatpush1.bf16.msra.mxu1 %v9794_v33  ;;  %9859 = vmatpush3.bf16.msra.mxu0 %v9858_v26  ;;  %v7871_v33 = vld [vmem:[%s14686_s11 + $0x2a0] sm:$0xff]  ;;  %v7874_v26 = vld [vmem:[%s14686_s11 + $0x2b8] sm:$0xff] }
 0x5d1   :  { %9797 = vmatprep.subr.bf16.mxu1 %v9796_v28  ;;  %9861 = vmatprep.subr.bf16.mxu0 %v9860_v49  ;;  %v9830_v28 = vpack.c.bf16 %v7874_v26, %v7871_v33  ;;  %v9832_v49 = vpack.c.bf16 %v7881_v12, %v7878_v36 }
 0x5d4   :  { %9799 = vmatpush1.bf16.msra.mxu1 %v9798_v44  ;;  %9863 = vmatpush3.bf16.msra.mxu0 %v9862_v4 }
 0x5d5   :  { %9801 = vmatprep.subr.bf16.mxu1 %v9800_v18  ;;  %9865 = vmatprep.subr.bf16.mxu0 %v9864_v11 }
 0x5d8   :  { %9803 = vmatpush1.bf16.msra.mxu1 %v9802_v52  ;;  %9867 = vmatpush3.bf16.msra.mxu0 %v9866_v37 }
 0x5d9   :  { %9805 = vmatprep.subr.bf16.mxu1 %v9804_v22 }
 0x5db   :  { %8019 = vmatmul.mubr.f32.vlgmr.msra.gmra.mrb[142].mxu0 %v14429_v5 }
 0x5dc   :  { %9807 = vmatpush1.bf16.msra.mxu1 %v9806_v45 }
 0x5dd   :  { %9809 = vmatprep.subr.bf16.mxu1 %v9808_v24 }
 0x5e0   :  { %9811 = vmatpush1.bf16.msra.mxu1 %v9810_v14 }
 0x5e1   :  { %9813 = vmatprep.subr.bf16.mxu1 %v9812_v55 }
 0x5e4   :  { %9815 = vmatpush1.bf16.msra.mxu1 %v9814_v54 }
 0x5e5   :  { %9817 = vmatprep.subr.bf16.mxu1 %v9816_v31 }
 0x5e8   :  { %9819 = vmatpush1.bf16.msra.mxu1 %v9818_v34 }
 0x5e9   :  { %9821 = vmatprep.subr.bf16.mxu1 %v9820_v25 }
 0x5ec   :  { %9823 = vmatpush1.bf16.msra.mxu1 %v9822_v3 }
 0x5ed   :  { %9825 = vmatprep.subr.bf16.mxu1 %v9824_v35 }
 0x5f0   :  { %9827 = vmatpush1.bf16.msra.mxu1 %v9826_v60 }
 0x5f1   :  { %9829 = vmatprep.subr.bf16.mxu1 %v9828_v32 }
 0x5f4   :  { %9831 = vmatpush1.bf16.msra.mxu1 %v9830_v28 }
 0x5f5   :  { %9833 = vmatprep.subr.bf16.mxu1 %v9832_v49 }
 0x5f8   :  { %9835 = vmatpush1.bf16.msra.mxu1 %v9834_v17 }
 0x5fb   :  { %7948 = vmatmul.mubr.f32.vlgmr.msra.gmra.mrb[118].mxu1 %v14429_v5 }
 0x68e   :  { %v7712_v30 = vpop.f32.mrb[140].mxu0  ;;  %v8470_v40 = vpop.f32.mrb[116].mxu1 }
 0x68f   :  { %v7714_v27 = vpop.f32.mrb[141].mxu0  ;;  %v8471_v44 = vpop.f32.mrb[117].mxu1 }
 0x690   :  { %v8472_v4 = vadd.f32 %v8471_v44, %v8470_v40 }
 0x6ae   :  { %v8505_v2 = vpop.f32.mrb[142].mxu0 }
 0x6af   :  { %v8506_v18 = vpop.f32.mrb[143].mxu0 }
 0x6b0   :  { %v8507_v11 = vadd.f32 %v8506_v18, %v8505_v2 }
 0x6b2   :  { %v8026_v23 = vsub.f32 %v8472_v4, %v8507_v11 }
 0x6b4   :  { %v8044_v37 = vrot.slane %v8026_v23, %v14380_v61 }
 0x6ce   :  { %v7949_v58 = vpop.f32.mrb[118].mxu1 }
 0x6cf   :  { %v8024_v13 = vsub.f32 %v7712_v30, %v7949_v58  ;;  %v7951_v21 = vpop.f32.mrb[119].mxu1 }
 0x6d0   :  { %v8025_v51 = vsub.f32 %v7714_v27, %v7951_v21 }
 0x6d2   :  { %v8030_v52 = vcombine.low %v8024_v13, %v8025_v51 }
 0x6d4   :  { %v8037_v22 = vrot.slane %v8030_v52, %v14380_v61 }
 0x6d6   :  { %v8045_v57 = vcombine.low %v8037_v22, %v8044_v37 }
 0x6d8   :  { %v8052_v5 = vrot.slane %v8045_v57, %v14380_v61 }
 0x6da   :  { %8058 = vst.msk [vmem:[%s14689_s12] sm:$0x7] %vm8056_vm5, %v8052_v5 }

</bundles_post_ra>
